<compile_context>
chip_gen: v7x
topology: tpu7x:2x2x1
jax: 0.10.0
libtpu: 0.0.40
codegen_flags: <defaults>
</compile_context>

<pallas_src>
import functools

import numpy as np
import jax
import jax.numpy as jnp
from jax.experimental import pallas as pl
from jax.experimental.pallas import tpu as pltpu


C_IN = 55
POOL_W = 11          # pool1 output width (AdaptiveAvgPool2d((1, 11)))


def _round_up(x, m):
    return ((x + m - 1) // m) * m


def _tree_sum(terms):
    """Pairwise tree-sum of a list of arrays (short dependent-add chains)."""
    terms = list(terms)
    while len(terms) > 1:
        nxt = [terms[i] + terms[i + 1] for i in range(0, len(terms) - 1, 2)]
        if len(terms) % 2:
            nxt.append(terms[-1])
        terms = nxt
    return terms[0]


def adaptive_pool_bins(w_in: int, w_out: int):
    """Exact PyTorch AdaptiveAvgPool1d bin edges as static (start, end) tuples."""
    bins = []
    for j in range(w_out):
        s = (j * w_in) // w_out
        e = -((-(j + 1) * w_in) // w_out)      # ceil((j+1) * w_in / w_out)
        bins.append((s, e))
    return tuple(bins)


def adaptive_pool_matrix(w_in: int, w_out: int) -> np.ndarray:
    """Pooling matrix form of the same bins (used by the pure-JAX reference only)."""
    P = np.zeros((w_out, w_in), np.float32)
    for j, (s, e) in enumerate(adaptive_pool_bins(w_in, w_out)):
        P[j, s:e] = 1.0 / (e - s)
    return P


# ----------------------------------------------------------------------------
# Pallas kernel: one grid step == one block of B_BLK batch elements.
# All 1x1 convs are 2-D MXU matmuls over channels; both adaptive pools are VPU.
# ----------------------------------------------------------------------------
def conv1_model_kernel(x_ref, w1_ref, w2_ref, w3_ref, w4_ref, w5_ref, w6_ref,
                       wfc_ref, bfc_ref, gamma_ref, beta_ref, out_ref,
                       *, b_blk, h_dim, w_dim, bins):
    cdt = w2_ref.dtype                          # conv1 compute dtype (f32 or bf16)
    x = x_ref[...]                              # (RB, 55), RB = b_blk * H * W

    # conv1: 55 -> 128 -> 160 -> 128, 1x1 conv + ReLU  (M = RB), f32 accumulation.
    h = jnp.maximum(jnp.dot(x, w1_ref[...], preferred_element_type=jnp.float32), 0.0)
    h = jnp.maximum(jnp.dot(h.astype(cdt), w2_ref[...],
                            preferred_element_type=jnp.float32), 0.0)
    h = jnp.maximum(jnp.dot(h.astype(cdt), w3_ref[...],
                            preferred_element_type=jnp.float32), 0.0)   # (RB, 128) f32

    # pool1 step 1: tree-sum over H (pure VPU; leading-axis slices are free views).
    h4 = h.reshape(b_blk, h_dim, w_dim, 128)
    hs = _tree_sum([h4[:, hh] for hh in range(h_dim)])      # (b_blk, W, 128)

    # pool1 step 2: 11 adaptive bins over W with static PyTorch bin edges.
    # Output is built POSITION-major so the later pool2 is a free-reshape + tree-mean.
    cols = []
    for (s, e) in bins:
        col = _tree_sum([hs[:, r, :] for r in range(s, e)])
        cols.append(col * (1.0 / (h_dim * (e - s))))         # fold the 1/H here
    z = jnp.concatenate(cols, axis=0)                         # (11*b_blk, 128), f32

    # conv2: 128 -> 160 -> 128 -> 128, 1x1 conv + ReLU  (M = 11*b_blk), f32.
    z = jnp.maximum(jnp.dot(z, w4_ref[...], preferred_element_type=jnp.float32), 0.0)
    z = jnp.maximum(jnp.dot(z, w5_ref[...], preferred_element_type=jnp.float32), 0.0)
    z = jnp.maximum(jnp.dot(z, w6_ref[...], preferred_element_type=jnp.float32), 0.0)

    # pool2: mean over the 11 pooled positions (position-major -> free leading split).
    z3 = z.reshape(POOL_W, b_blk, 128)
    p = _tree_sum([z3[j] for j in range(POOL_W)]) * (1.0 / POOL_W)   # (b_blk, 128)

    # fc + LayerNorm(128)
    f = jnp.dot(p, wfc_ref[...], preferred_element_type=jnp.float32) + bfc_ref[...]
    mu = jnp.mean(f, axis=-1, keepdims=True)
    var = jnp.mean((f - mu) ** 2, axis=-1, keepdims=True)
    y = (f - mu) * jax.lax.rsqrt(var + 1e-5)                 # eps keeps padded rows finite
    out_ref[...] = (y * gamma_ref[...] + beta_ref[...]).astype(out_ref.dtype)


# ----------------------------------------------------------------------------
# Wrapper
# ----------------------------------------------------------------------------
def _choose_batch_block(B, HW, *, target_rows=2048, vmem_budget=20 * 2**20):
    """Batch-block size: multiple of 8 (sublane-dense), row block ~target_rows,
    bounded by an explicit VMEM budget, and >= 2 parallel grid steps when the
    batch allows (v7x has two TensorCores)."""
    # per-row f32 VMEM bytes: x (double-buffered) + live conv1 intermediates.
    bytes_per_row = 4 * (2 * C_IN + 128 + 160 + 128 + 128)
    rb_cap = max(HW, vmem_budget // bytes_per_row)
    bb = max(1, min(target_rows, rb_cap) // max(HW, 1))
    bb = max(8, (bb // 8) * 8)
    if B > 8:                                   # keep both v7x TensorCores busy
        bb = min(bb, max(8, _round_up((B + 1) // 2, 8)))
    bb = min(bb, _round_up(B, 8))
    # TODO(synk): for very large H*W (8*HW rows already over budget) add an inner
    # "arbitrary" grid axis over H*W chunks accumulating the H-sum in VMEM scratch.
    vmem_limit_bytes = 32 * 2**20               # safe on v5e/v6e/v7x; > v5e's 16 MiB default
    return bb, vmem_limit_bytes


def conv1_model_forward(feature, params, *, conv1_dtype=jnp.float32):
    """feature: (..., 55, H, W) float32 -> (..., 128) float32."""
    lead = feature.shape[:-3]
    C, H, W = feature.shape[-3:]
    assert C == C_IN
    B = int(np.prod(lead)) if lead else 1
    HW = H * W

    b_blk, vmem_limit = _choose_batch_block(B, HW)
    B_pad = _round_up(B, b_blk)
    RB = b_blk * HW                              # rows per grid step

    # NCHW -> channels-last in one fused XLA pass.  No channel padding (the MXU
    # takes K=55 directly); batch pad only when B is not a multiple of b_blk.
    # TODO(synk): accept channels-last input upstream (or DMA NCHW blocks and
    # transpose in-kernel) to remove this one extra HBM pass over the input.
    x = feature.reshape(B, C, H, W)
    if B_pad != B:
        x = jnp.pad(x, ((0, B_pad - B), (0, 0), (0, 0), (0, 0)))
    x = x.transpose(0, 2, 3, 1).reshape(B_pad * HW, C).astype(conv1_dtype)

    w1 = params["w1"].astype(conv1_dtype)
    w2 = params["w2"].astype(conv1_dtype)
    w3 = params["w3"].astype(conv1_dtype)

    bins = adaptive_pool_bins(W, POOL_W)
    kernel = functools.partial(conv1_model_kernel,
                               b_blk=b_blk, h_dim=H, w_dim=W, bins=bins)

    # Weight / constant specs: index_map is constant, so Pallas fetches them once.
    full = lambda shape: pl.BlockSpec(shape, lambda b: (0, 0))

    out = pl.pallas_call(
        kernel,
        out_shape=jax.ShapeDtypeStruct((B_pad, 128), jnp.float32),
        grid=(B_pad // b_blk,),
        in_specs=[
            pl.BlockSpec((RB, C), lambda b: (b, 0)),    # x rows for this batch block
            full((C, 128)),                             # w1
            full((128, 160)),                           # w2
            full((160, 128)),                           # w3
            full((128, 160)),                           # w4
            full((160, 128)),                           # w5
            full((128, 128)),                           # w6
            full((128, 128)),                           # wfc
            full((1, 128)),                             # bfc
            full((1, 128)),                             # gamma
            full((1, 128)),                             # beta
        ],
        out_specs=pl.BlockSpec((b_blk, 128), lambda b: (b, 0)),
        compiler_params=pltpu.CompilerParams(
            dimension_semantics=("parallel",),
            vmem_limit_bytes=vmem_limit),
    )(x, w1, w2, w3, params["w4"], params["w5"], params["w6"],
      params["wfc"], params["bfc"], params["gamma"], params["beta"])

    out = out[:B]
    return out.reshape(*lead, 128)


# ----------------------------------------------------------------------------
# Params + pure-JAX reference (mirrors the PyTorch forward; Conv2d layers are
# bias=False in the spec, fc has a bias, LayerNorm is affine).
# ----------------------------------------------------------------------------
def make_params(key):
    ks = jax.random.split(key, 8)

    def w(k, shape, fan_in):
        return (jax.random.normal(k, shape, jnp.float32) / np.sqrt(fan_in)).astype(jnp.float32)

    return dict(
        w1=w(ks[0], (C_IN, 128), C_IN),
        w2=w(ks[1], (128, 160), 128),
        w3=w(ks[2], (160, 128), 160),
        w4=w(ks[3], (128, 160), 128),
        w5=w(ks[4], (160, 128), 160),
        w6=w(ks[5], (128, 128), 128),
        wfc=w(ks[6], (128, 128), 128),          # stored (in, out)
        bfc=w(ks[7], (1, 128), 128),
        gamma=jnp.ones((1, 128), jnp.float32),
        beta=jnp.zeros((1, 128), jnp.float32),
    )


def conv1_model_reference(feature, params):
    lead = feature.shape[:-3]
    C, H, W = feature.shape[-3:]
    B = int(np.prod(lead)) if lead else 1
    x = feature.reshape(B, C, H, W).transpose(0, 2, 3, 1).reshape(B, H * W, C).astype(jnp.float32)

    relu = lambda a: jnp.maximum(a, 0.0)
    h = relu(x @ params["w1"])
    h = relu(h @ params["w2"])
    h = relu(h @ params["w3"])                      # (B, H*W, 128)

    P = adaptive_pool_matrix(W, POOL_W)
    Q = jnp.asarray(np.tile(P, (1, H)) / H)         # (11, H*W) — exact pool1 (H out = 1)
    z = jnp.einsum("jp,bpc->bjc", Q, h)             # (B, 11, 128)

    z = relu(z @ params["w4"])
    z = relu(z @ params["w5"])
    z = relu(z @ params["w6"])
    p = jnp.mean(z, axis=1)                         # (B, 128)

    f = p @ params["wfc"] + params["bfc"][0]
    mu = jnp.mean(f, axis=-1, keepdims=True)
    var = jnp.mean((f - mu) ** 2, axis=-1, keepdims=True)
    y = (f - mu) / jnp.sqrt(var + 1e-5)
    y = y * params["gamma"][0] + params["beta"][0]
    return y.reshape(*lead, 128)


if __name__ == "__main__":
    key = jax.random.PRNGKey(0)
    k_param, k_x = jax.random.split(key)

    params = make_params(k_param)

    # small feature tensor: leading dims (2, 3), channels 55, H=4, W=16
    feature = jax.random.normal(k_x, (2, 3, 55, 4, 16), jnp.float32)

    ref = conv1_model_reference(feature, params)

    # f32 path: exact module semantics, 1e-4 tolerance.
    out = jax.block_until_ready(conv1_model_forward(feature, params))
    assert out.shape == (2, 3, 128)
    assert np.allclose(np.asarray(out), np.asarray(ref), atol=1e-4, rtol=1e-4)

    # bf16 conv1 path (fast MXU mode): sanity-check only, looser tolerance.
    out_bf16 = jax.block_until_ready(
        conv1_model_forward(feature, params, conv1_dtype=jnp.bfloat16))
    assert out_bf16.shape == (2, 3, 128)
    assert np.isfinite(np.asarray(out_bf16)).all()
    assert float(np.max(np.abs(np.asarray(out_bf16) - np.asarray(ref)))) < 0.25

    print("KERNEL_OK")
</pallas_src>

<mosaic_0001>
module attributes {stable_mosaic.version = 11 : i64} {
  func.func @conv1_model_kernel(%arg0: i32, %arg1: memref<512x55xf32, #tpu.memory_space<vmem>>, %arg2: memref<55x128xf32, #tpu.memory_space<vmem>>, %arg3: memref<128x160xf32, #tpu.memory_space<vmem>>, %arg4: memref<160x128xf32, #tpu.memory_space<vmem>>, %arg5: memref<128x160xf32, #tpu.memory_space<vmem>>, %arg6: memref<160x128xf32, #tpu.memory_space<vmem>>, %arg7: memref<128x128xf32, #tpu.memory_space<vmem>>, %arg8: memref<128x128xf32, #tpu.memory_space<vmem>>, %arg9: memref<1x128xf32, #tpu.memory_space<vmem>>, %arg10: memref<1x128xf32, #tpu.memory_space<vmem>>, %arg11: memref<1x128xf32, #tpu.memory_space<vmem>>, %arg12: memref<8x128xf32, #tpu.memory_space<vmem>>) attributes {dimension_semantics = [#tpu.dimension_semantics<parallel>], iteration_bounds = array<i64: 1>, scalar_prefetch = 0 : i64, scratch_operands = 0 : i64, tpu.core_type = #tpu.core_type<tc>, window_params = [{transform_indices = @transform_0, window_bounds = array<i64: 512, 55>}, {pipeline_mode = #tpu.pipeline_mode<synchronous>, transform_indices = @transform_1, window_bounds = array<i64: 55, 128>}, {pipeline_mode = #tpu.pipeline_mode<synchronous>, transform_indices = @transform_2, window_bounds = array<i64: 128, 160>}, {pipeline_mode = #tpu.pipeline_mode<synchronous>, transform_indices = @transform_3, window_bounds = array<i64: 160, 128>}, {pipeline_mode = #tpu.pipeline_mode<synchronous>, transform_indices = @transform_4, window_bounds = array<i64: 128, 160>}, {pipeline_mode = #tpu.pipeline_mode<synchronous>, transform_indices = @transform_5, window_bounds = array<i64: 160, 128>}, {pipeline_mode = #tpu.pipeline_mode<synchronous>, transform_indices = @transform_6, window_bounds = array<i64: 128, 128>}, {pipeline_mode = #tpu.pipeline_mode<synchronous>, transform_indices = @transform_7, window_bounds = array<i64: 128, 128>}, {pipeline_mode = #tpu.pipeline_mode<synchronous>, transform_indices = @transform_8, window_bounds = array<i64: 1, 128>}, {pipeline_mode = #tpu.pipeline_mode<synchronous>, transform_indices = @transform_9, window_bounds = array<i64: 1, 128>}, {pipeline_mode = #tpu.pipeline_mode<synchronous>, transform_indices = @transform_10, window_bounds = array<i64: 1, 128>}, {transform_indices = @transform_11, window_bounds = array<i64: 8, 128>}]} {
    %c0 = arith.constant 0 : index
    %c0_0 = arith.constant 0 : index
    %0 = vector.load %arg1[%c0, %c0_0] : memref<512x55xf32, #tpu.memory_space<vmem>>, vector<512x55xf32>
    %c0_1 = arith.constant 0 : index
    %c0_2 = arith.constant 0 : index
    %1 = vector.load %arg2[%c0_1, %c0_2] : memref<55x128xf32, #tpu.memory_space<vmem>>, vector<55x128xf32>
    %cst = arith.constant dense<0.000000e+00> : vector<512x128xf32>
    %2 = tpu.matmul %0, %1, %cst {dimension_numbers = #tpu.dot_dimension_numbers<[1], [0], [0], [1], [0, 0, 1, 1], [], []>} : vector<512x55xf32>, vector<55x128xf32>, vector<512x128xf32> -> vector<512x128xf32>
    %cst_3 = arith.constant 0.000000e+00 : f32
    %3 = vector.broadcast %cst_3 : f32 to vector<512x128xf32>
    %4 = arith.maximumf %2, %3 : vector<512x128xf32>
    %c0_4 = arith.constant 0 : index
    %c0_5 = arith.constant 0 : index
    %5 = vector.load %arg3[%c0_4, %c0_5] : memref<128x160xf32, #tpu.memory_space<vmem>>, vector<128x160xf32>
    %cst_6 = arith.constant dense<0.000000e+00> : vector<512x160xf32>
    %6 = tpu.matmul %4, %5, %cst_6 {dimension_numbers = #tpu.dot_dimension_numbers<[1], [0], [0], [1], [0, 0, 1, 1], [], []>} : vector<512x128xf32>, vector<128x160xf32>, vector<512x160xf32> -> vector<512x160xf32>
    %cst_7 = arith.constant 0.000000e+00 : f32
    %7 = vector.broadcast %cst_7 : f32 to vector<512x160xf32>
    %8 = arith.maximumf %6, %7 : vector<512x160xf32>
    %c0_8 = arith.constant 0 : index
    %c0_9 = arith.constant 0 : index
    %9 = vector.load %arg4[%c0_8, %c0_9] : memref<160x128xf32, #tpu.memory_space<vmem>>, vector<160x128xf32>
    %cst_10 = arith.constant dense<0.000000e+00> : vector<512x128xf32>
    %10 = tpu.matmul %8, %9, %cst_10 {dimension_numbers = #tpu.dot_dimension_numbers<[1], [0], [0], [1], [0, 0, 1, 1], [], []>} : vector<512x160xf32>, vector<160x128xf32>, vector<512x128xf32> -> vector<512x128xf32>
    %cst_11 = arith.constant 0.000000e+00 : f32
    %11 = vector.broadcast %cst_11 : f32 to vector<512x128xf32>
    %12 = arith.maximumf %10, %11 : vector<512x128xf32>
    %13 = vector.shape_cast %12 : vector<512x128xf32> to vector<8x4x16x128xf32>
    %14 = vector.extract_strided_slice %13 {offsets = [0, 0, 0, 0], sizes = [8, 1, 16, 128], strides = [1, 1, 1, 1]} : vector<8x4x16x128xf32> to vector<8x1x16x128xf32>
    %15 = vector.shape_cast %14 : vector<8x1x16x128xf32> to vector<8x16x128xf32>
    %16 = vector.extract_strided_slice %13 {offsets = [0, 1, 0, 0], sizes = [8, 1, 16, 128], strides = [1, 1, 1, 1]} : vector<8x4x16x128xf32> to vector<8x1x16x128xf32>
    %17 = vector.shape_cast %16 : vector<8x1x16x128xf32> to vector<8x16x128xf32>
    %18 = vector.extract_strided_slice %13 {offsets = [0, 2, 0, 0], sizes = [8, 1, 16, 128], strides = [1, 1, 1, 1]} : vector<8x4x16x128xf32> to vector<8x1x16x128xf32>
    %19 = vector.shape_cast %18 : vector<8x1x16x128xf32> to vector<8x16x128xf32>
    %20 = vector.extract_strided_slice %13 {offsets = [0, 3, 0, 0], sizes = [8, 1, 16, 128], strides = [1, 1, 1, 1]} : vector<8x4x16x128xf32> to vector<8x1x16x128xf32>
    %21 = vector.shape_cast %20 : vector<8x1x16x128xf32> to vector<8x16x128xf32>
    %22 = arith.addf %15, %17 : vector<8x16x128xf32>
    %23 = arith.addf %19, %21 : vector<8x16x128xf32>
    %24 = arith.addf %22, %23 : vector<8x16x128xf32>
    %25 = vector.extract_strided_slice %24 {offsets = [0, 0, 0], sizes = [8, 1, 128], strides = [1, 1, 1]} : vector<8x16x128xf32> to vector<8x1x128xf32>
    %26 = vector.shape_cast %25 : vector<8x1x128xf32> to vector<8x128xf32>
    %27 = vector.extract_strided_slice %24 {offsets = [0, 1, 0], sizes = [8, 1, 128], strides = [1, 1, 1]} : vector<8x16x128xf32> to vector<8x1x128xf32>
    %28 = vector.shape_cast %27 : vector<8x1x128xf32> to vector<8x128xf32>
    %29 = arith.addf %26, %28 : vector<8x128xf32>
    %cst_12 = arith.constant 1.250000e-01 : f32
    %30 = vector.broadcast %cst_12 : f32 to vector<8x128xf32>
    %31 = arith.mulf %29, %30 : vector<8x128xf32>
    %32 = vector.extract_strided_slice %24 {offsets = [0, 1, 0], sizes = [8, 1, 128], strides = [1, 1, 1]} : vector<8x16x128xf32> to vector<8x1x128xf32>
    %33 = vector.shape_cast %32 : vector<8x1x128xf32> to vector<8x128xf32>
    %34 = vector.extract_strided_slice %24 {offsets = [0, 2, 0], sizes = [8, 1, 128], strides = [1, 1, 1]} : vector<8x16x128xf32> to vector<8x1x128xf32>
    %35 = vector.shape_cast %34 : vector<8x1x128xf32> to vector<8x128xf32>
    %36 = arith.addf %33, %35 : vector<8x128xf32>
    %cst_13 = arith.constant 1.250000e-01 : f32
    %37 = vector.broadcast %cst_13 : f32 to vector<8x128xf32>
    %38 = arith.mulf %36, %37 : vector<8x128xf32>
    %39 = vector.extract_strided_slice %24 {offsets = [0, 2, 0], sizes = [8, 1, 128], strides = [1, 1, 1]} : vector<8x16x128xf32> to vector<8x1x128xf32>
    %40 = vector.shape_cast %39 : vector<8x1x128xf32> to vector<8x128xf32>
    %41 = vector.extract_strided_slice %24 {offsets = [0, 3, 0], sizes = [8, 1, 128], strides = [1, 1, 1]} : vector<8x16x128xf32> to vector<8x1x128xf32>
    %42 = vector.shape_cast %41 : vector<8x1x128xf32> to vector<8x128xf32>
    %43 = vector.extract_strided_slice %24 {offsets = [0, 4, 0], sizes = [8, 1, 128], strides = [1, 1, 1]} : vector<8x16x128xf32> to vector<8x1x128xf32>
    %44 = vector.shape_cast %43 : vector<8x1x128xf32> to vector<8x128xf32>
    %45 = arith.addf %40, %42 : vector<8x128xf32>
    %46 = arith.addf %45, %44 : vector<8x128xf32>
    %cst_14 = arith.constant 0.0833333358 : f32
    %47 = vector.broadcast %cst_14 : f32 to vector<8x128xf32>
    %48 = arith.mulf %46, %47 : vector<8x128xf32>
    %49 = vector.extract_strided_slice %24 {offsets = [0, 4, 0], sizes = [8, 1, 128], strides = [1, 1, 1]} : vector<8x16x128xf32> to vector<8x1x128xf32>
    %50 = vector.shape_cast %49 : vector<8x1x128xf32> to vector<8x128xf32>
    %51 = vector.extract_strided_slice %24 {offsets = [0, 5, 0], sizes = [8, 1, 128], strides = [1, 1, 1]} : vector<8x16x128xf32> to vector<8x1x128xf32>
    %52 = vector.shape_cast %51 : vector<8x1x128xf32> to vector<8x128xf32>
    %53 = arith.addf %50, %52 : vector<8x128xf32>
    %cst_15 = arith.constant 1.250000e-01 : f32
    %54 = vector.broadcast %cst_15 : f32 to vector<8x128xf32>
    %55 = arith.mulf %53, %54 : vector<8x128xf32>
    %56 = vector.extract_strided_slice %24 {offsets = [0, 5, 0], sizes = [8, 1, 128], strides = [1, 1, 1]} : vector<8x16x128xf32> to vector<8x1x128xf32>
    %57 = vector.shape_cast %56 : vector<8x1x128xf32> to vector<8x128xf32>
    %58 = vector.extract_strided_slice %24 {offsets = [0, 6, 0], sizes = [8, 1, 128], strides = [1, 1, 1]} : vector<8x16x128xf32> to vector<8x1x128xf32>
    %59 = vector.shape_cast %58 : vector<8x1x128xf32> to vector<8x128xf32>
    %60 = vector.extract_strided_slice %24 {offsets = [0, 7, 0], sizes = [8, 1, 128], strides = [1, 1, 1]} : vector<8x16x128xf32> to vector<8x1x128xf32>
    %61 = vector.shape_cast %60 : vector<8x1x128xf32> to vector<8x128xf32>
    %62 = arith.addf %57, %59 : vector<8x128xf32>
    %63 = arith.addf %62, %61 : vector<8x128xf32>
    %cst_16 = arith.constant 0.0833333358 : f32
    %64 = vector.broadcast %cst_16 : f32 to vector<8x128xf32>
    %65 = arith.mulf %63, %64 : vector<8x128xf32>
    %66 = vector.extract_strided_slice %24 {offsets = [0, 7, 0], sizes = [8, 1, 128], strides = [1, 1, 1]} : vector<8x16x128xf32> to vector<8x1x128xf32>
    %67 = vector.shape_cast %66 : vector<8x1x128xf32> to vector<8x128xf32>
    %68 = vector.extract_strided_slice %24 {offsets = [0, 8, 0], sizes = [8, 1, 128], strides = [1, 1, 1]} : vector<8x16x128xf32> to vector<8x1x128xf32>
    %69 = vector.shape_cast %68 : vector<8x1x128xf32> to vector<8x128xf32>
    %70 = arith.addf %67, %69 : vector<8x128xf32>
    %cst_17 = arith.constant 1.250000e-01 : f32
    %71 = vector.broadcast %cst_17 : f32 to vector<8x128xf32>
    %72 = arith.mulf %70, %71 : vector<8x128xf32>
    %73 = vector.extract_strided_slice %24 {offsets = [0, 8, 0], sizes = [8, 1, 128], strides = [1, 1, 1]} : vector<8x16x128xf32> to vector<8x1x128xf32>
    %74 = vector.shape_cast %73 : vector<8x1x128xf32> to vector<8x128xf32>
    %75 = vector.extract_strided_slice %24 {offsets = [0, 9, 0], sizes = [8, 1, 128], strides = [1, 1, 1]} : vector<8x16x128xf32> to vector<8x1x128xf32>
    %76 = vector.shape_cast %75 : vector<8x1x128xf32> to vector<8x128xf32>
    %77 = vector.extract_strided_slice %24 {offsets = [0, 10, 0], sizes = [8, 1, 128], strides = [1, 1, 1]} : vector<8x16x128xf32> to vector<8x1x128xf32>
    %78 = vector.shape_cast %77 : vector<8x1x128xf32> to vector<8x128xf32>
    %79 = arith.addf %74, %76 : vector<8x128xf32>
    %80 = arith.addf %79, %78 : vector<8x128xf32>
    %cst_18 = arith.constant 0.0833333358 : f32
    %81 = vector.broadcast %cst_18 : f32 to vector<8x128xf32>
    %82 = arith.mulf %80, %81 : vector<8x128xf32>
    %83 = vector.extract_strided_slice %24 {offsets = [0, 10, 0], sizes = [8, 1, 128], strides = [1, 1, 1]} : vector<8x16x128xf32> to vector<8x1x128xf32>
    %84 = vector.shape_cast %83 : vector<8x1x128xf32> to vector<8x128xf32>
    %85 = vector.extract_strided_slice %24 {offsets = [0, 11, 0], sizes = [8, 1, 128], strides = [1, 1, 1]} : vector<8x16x128xf32> to vector<8x1x128xf32>
    %86 = vector.shape_cast %85 : vector<8x1x128xf32> to vector<8x128xf32>
    %87 = arith.addf %84, %86 : vector<8x128xf32>
    %cst_19 = arith.constant 1.250000e-01 : f32
    %88 = vector.broadcast %cst_19 : f32 to vector<8x128xf32>
    %89 = arith.mulf %87, %88 : vector<8x128xf32>
    %90 = vector.extract_strided_slice %24 {offsets = [0, 11, 0], sizes = [8, 1, 128], strides = [1, 1, 1]} : vector<8x16x128xf32> to vector<8x1x128xf32>
    %91 = vector.shape_cast %90 : vector<8x1x128xf32> to vector<8x128xf32>
    %92 = vector.extract_strided_slice %24 {offsets = [0, 12, 0], sizes = [8, 1, 128], strides = [1, 1, 1]} : vector<8x16x128xf32> to vector<8x1x128xf32>
    %93 = vector.shape_cast %92 : vector<8x1x128xf32> to vector<8x128xf32>
    %94 = vector.extract_strided_slice %24 {offsets = [0, 13, 0], sizes = [8, 1, 128], strides = [1, 1, 1]} : vector<8x16x128xf32> to vector<8x1x128xf32>
    %95 = vector.shape_cast %94 : vector<8x1x128xf32> to vector<8x128xf32>
    %96 = arith.addf %91, %93 : vector<8x128xf32>
    %97 = arith.addf %96, %95 : vector<8x128xf32>
    %cst_20 = arith.constant 0.0833333358 : f32
    %98 = vector.broadcast %cst_20 : f32 to vector<8x128xf32>
    %99 = arith.mulf %97, %98 : vector<8x128xf32>
    %100 = vector.extract_strided_slice %24 {offsets = [0, 13, 0], sizes = [8, 1, 128], strides = [1, 1, 1]} : vector<8x16x128xf32> to vector<8x1x128xf32>
    %101 = vector.shape_cast %100 : vector<8x1x128xf32> to vector<8x128xf32>
    %102 = vector.extract_strided_slice %24 {offsets = [0, 14, 0], sizes = [8, 1, 128], strides = [1, 1, 1]} : vector<8x16x128xf32> to vector<8x1x128xf32>
    %103 = vector.shape_cast %102 : vector<8x1x128xf32> to vector<8x128xf32>
    %104 = arith.addf %101, %103 : vector<8x128xf32>
    %cst_21 = arith.constant 1.250000e-01 : f32
    %105 = vector.broadcast %cst_21 : f32 to vector<8x128xf32>
    %106 = arith.mulf %104, %105 : vector<8x128xf32>
    %107 = vector.extract_strided_slice %24 {offsets = [0, 14, 0], sizes = [8, 1, 128], strides = [1, 1, 1]} : vector<8x16x128xf32> to vector<8x1x128xf32>
    %108 = vector.shape_cast %107 : vector<8x1x128xf32> to vector<8x128xf32>
    %109 = vector.extract_strided_slice %24 {offsets = [0, 15, 0], sizes = [8, 1, 128], strides = [1, 1, 1]} : vector<8x16x128xf32> to vector<8x1x128xf32>
    %110 = vector.shape_cast %109 : vector<8x1x128xf32> to vector<8x128xf32>
    %111 = arith.addf %108, %110 : vector<8x128xf32>
    %cst_22 = arith.constant 1.250000e-01 : f32
    %112 = vector.broadcast %cst_22 : f32 to vector<8x128xf32>
    %113 = arith.mulf %111, %112 : vector<8x128xf32>
    %114 = tpu.concatenate %31, %38, %48, %55, %65, %72, %82, %89, %99, %106, %113 in 0 : vector<8x128xf32>, vector<8x128xf32>, vector<8x128xf32>, vector<8x128xf32>, vector<8x128xf32>, vector<8x128xf32>, vector<8x128xf32>, vector<8x128xf32>, vector<8x128xf32>, vector<8x128xf32>, vector<8x128xf32> -> vector<88x128xf32>
    %c0_23 = arith.constant 0 : index
    %c0_24 = arith.constant 0 : index
    %115 = vector.load %arg5[%c0_23, %c0_24] : memref<128x160xf32, #tpu.memory_space<vmem>>, vector<128x160xf32>
    %cst_25 = arith.constant dense<0.000000e+00> : vector<88x160xf32>
    %116 = tpu.matmul %114, %115, %cst_25 {dimension_numbers = #tpu.dot_dimension_numbers<[1], [0], [0], [1], [0, 0, 1, 1], [], []>} : vector<88x128xf32>, vector<128x160xf32>, vector<88x160xf32> -> vector<88x160xf32>
    %cst_26 = arith.constant 0.000000e+00 : f32
    %117 = vector.broadcast %cst_26 : f32 to vector<88x160xf32>
    %118 = arith.maximumf %116, %117 : vector<88x160xf32>
    %c0_27 = arith.constant 0 : index
    %c0_28 = arith.constant 0 : index
    %119 = vector.load %arg6[%c0_27, %c0_28] : memref<160x128xf32, #tpu.memory_space<vmem>>, vector<160x128xf32>
    %cst_29 = arith.constant dense<0.000000e+00> : vector<88x128xf32>
    %120 = tpu.matmul %118, %119, %cst_29 {dimension_numbers = #tpu.dot_dimension_numbers<[1], [0], [0], [1], [0, 0, 1, 1], [], []>} : vector<88x160xf32>, vector<160x128xf32>, vector<88x128xf32> -> vector<88x128xf32>
    %cst_30 = arith.constant 0.000000e+00 : f32
    %121 = vector.broadcast %cst_30 : f32 to vector<88x128xf32>
    %122 = arith.maximumf %120, %121 : vector<88x128xf32>
    %c0_31 = arith.constant 0 : index
    %c0_32 = arith.constant 0 : index
    %123 = vector.load %arg7[%c0_31, %c0_32] : memref<128x128xf32, #tpu.memory_space<vmem>>, vector<128x128xf32>
    %cst_33 = arith.constant dense<0.000000e+00> : vector<88x128xf32>
    %124 = tpu.matmul %122, %123, %cst_33 {dimension_numbers = #tpu.dot_dimension_numbers<[1], [0], [0], [1], [0, 0, 1, 1], [], []>} : vector<88x128xf32>, vector<128x128xf32>, vector<88x128xf32> -> vector<88x128xf32>
    %cst_34 = arith.constant 0.000000e+00 : f32
    %125 = vector.broadcast %cst_34 : f32 to vector<88x128xf32>
    %126 = arith.maximumf %124, %125 : vector<88x128xf32>
    %127 = vector.shape_cast %126 : vector<88x128xf32> to vector<11x8x128xf32>
    %128 = vector.extract_strided_slice %127 {offsets = [0, 0, 0], sizes = [1, 8, 128], strides = [1, 1, 1]} : vector<11x8x128xf32> to vector<1x8x128xf32>
    %129 = vector.shape_cast %128 : vector<1x8x128xf32> to vector<8x128xf32>
    %130 = vector.extract_strided_slice %127 {offsets = [1, 0, 0], sizes = [1, 8, 128], strides = [1, 1, 1]} : vector<11x8x128xf32> to vector<1x8x128xf32>
    %131 = vector.shape_cast %130 : vector<1x8x128xf32> to vector<8x128xf32>
    %132 = vector.extract_strided_slice %127 {offsets = [2, 0, 0], sizes = [1, 8, 128], strides = [1, 1, 1]} : vector<11x8x128xf32> to vector<1x8x128xf32>
    %133 = vector.shape_cast %132 : vector<1x8x128xf32> to vector<8x128xf32>
    %134 = vector.extract_strided_slice %127 {offsets = [3, 0, 0], sizes = [1, 8, 128], strides = [1, 1, 1]} : vector<11x8x128xf32> to vector<1x8x128xf32>
    %135 = vector.shape_cast %134 : vector<1x8x128xf32> to vector<8x128xf32>
    %136 = vector.extract_strided_slice %127 {offsets = [4, 0, 0], sizes = [1, 8, 128], strides = [1, 1, 1]} : vector<11x8x128xf32> to vector<1x8x128xf32>
    %137 = vector.shape_cast %136 : vector<1x8x128xf32> to vector<8x128xf32>
    %138 = vector.extract_strided_slice %127 {offsets = [5, 0, 0], sizes = [1, 8, 128], strides = [1, 1, 1]} : vector<11x8x128xf32> to vector<1x8x128xf32>
    %139 = vector.shape_cast %138 : vector<1x8x128xf32> to vector<8x128xf32>
    %140 = vector.extract_strided_slice %127 {offsets = [6, 0, 0], sizes = [1, 8, 128], strides = [1, 1, 1]} : vector<11x8x128xf32> to vector<1x8x128xf32>
    %141 = vector.shape_cast %140 : vector<1x8x128xf32> to vector<8x128xf32>
    %142 = vector.extract_strided_slice %127 {offsets = [7, 0, 0], sizes = [1, 8, 128], strides = [1, 1, 1]} : vector<11x8x128xf32> to vector<1x8x128xf32>
    %143 = vector.shape_cast %142 : vector<1x8x128xf32> to vector<8x128xf32>
    %144 = vector.extract_strided_slice %127 {offsets = [8, 0, 0], sizes = [1, 8, 128], strides = [1, 1, 1]} : vector<11x8x128xf32> to vector<1x8x128xf32>
    %145 = vector.shape_cast %144 : vector<1x8x128xf32> to vector<8x128xf32>
    %146 = vector.extract_strided_slice %127 {offsets = [9, 0, 0], sizes = [1, 8, 128], strides = [1, 1, 1]} : vector<11x8x128xf32> to vector<1x8x128xf32>
    %147 = vector.shape_cast %146 : vector<1x8x128xf32> to vector<8x128xf32>
    %148 = vector.extract_strided_slice %127 {offsets = [10, 0, 0], sizes = [1, 8, 128], strides = [1, 1, 1]} : vector<11x8x128xf32> to vector<1x8x128xf32>
    %149 = vector.shape_cast %148 : vector<1x8x128xf32> to vector<8x128xf32>
    %150 = arith.addf %129, %131 : vector<8x128xf32>
    %151 = arith.addf %133, %135 : vector<8x128xf32>
    %152 = arith.addf %137, %139 : vector<8x128xf32>
    %153 = arith.addf %141, %143 : vector<8x128xf32>
    %154 = arith.addf %145, %147 : vector<8x128xf32>
    %155 = arith.addf %150, %151 : vector<8x128xf32>
    %156 = arith.addf %152, %153 : vector<8x128xf32>
    %157 = arith.addf %154, %149 : vector<8x128xf32>
    %158 = arith.addf %155, %156 : vector<8x128xf32>
    %159 = arith.addf %158, %157 : vector<8x128xf32>
    %cst_35 = arith.constant 0.0909090936 : f32
    %160 = vector.broadcast %cst_35 : f32 to vector<8x128xf32>
    %161 = arith.mulf %159, %160 : vector<8x128xf32>
    %c0_36 = arith.constant 0 : index
    %c0_37 = arith.constant 0 : index
    %162 = vector.load %arg8[%c0_36, %c0_37] : memref<128x128xf32, #tpu.memory_space<vmem>>, vector<128x128xf32>
    %cst_38 = arith.constant dense<0.000000e+00> : vector<8x128xf32>
    %163 = tpu.matmul %161, %162, %cst_38 {dimension_numbers = #tpu.dot_dimension_numbers<[1], [0], [0], [1], [0, 0, 1, 1], [], []>} : vector<8x128xf32>, vector<128x128xf32>, vector<8x128xf32> -> vector<8x128xf32>
    %c0_39 = arith.constant 0 : index
    %c0_40 = arith.constant 0 : index
    %164 = vector.load %arg9[%c0_39, %c0_40] : memref<1x128xf32, #tpu.memory_space<vmem>>, vector<1x128xf32>
    %165 = vector.broadcast %164 : vector<1x128xf32> to vector<8x128xf32>
    %166 = arith.addf %163, %165 : vector<8x128xf32>
    %cst_41 = arith.constant dense<0.000000e+00> : vector<8xf32>
    %167 = vector.multi_reduction <add>, %166, %cst_41 [1] : vector<8x128xf32> to vector<8xf32>
    %168 = vector.shape_cast %167 : vector<8xf32> to vector<8x1xf32>
    %cst_42 = arith.constant 1.280000e+02 : f32
    %169 = vector.broadcast %cst_42 : f32 to vector<8x1xf32>
    %170 = arith.divf %168, %169 : vector<8x1xf32>
    %171 = vector.broadcast %170 : vector<8x1xf32> to vector<8x128xf32>
    %172 = arith.subf %166, %171 : vector<8x128xf32>
    %173 = arith.mulf %172, %172 : vector<8x128xf32>
    %cst_43 = arith.constant dense<0.000000e+00> : vector<8xf32>
    %174 = vector.multi_reduction <add>, %173, %cst_43 [1] : vector<8x128xf32> to vector<8xf32>
    %175 = vector.shape_cast %174 : vector<8xf32> to vector<8x1xf32>
    %cst_44 = arith.constant 1.280000e+02 : f32
    %176 = vector.broadcast %cst_44 : f32 to vector<8x1xf32>
    %177 = arith.divf %175, %176 : vector<8x1xf32>
    %178 = vector.broadcast %170 : vector<8x1xf32> to vector<8x128xf32>
    %179 = arith.subf %166, %178 : vector<8x128xf32>
    %cst_45 = arith.constant 9.99999974E-6 : f32
    %180 = vector.broadcast %cst_45 : f32 to vector<8x1xf32>
    %181 = arith.addf %177, %180 : vector<8x1xf32>
    %182 = math.rsqrt %181 : vector<8x1xf32>
    %183 = vector.broadcast %182 : vector<8x1xf32> to vector<8x128xf32>
    %184 = arith.mulf %179, %183 : vector<8x128xf32>
    %c0_46 = arith.constant 0 : index
    %c0_47 = arith.constant 0 : index
    %185 = vector.load %arg10[%c0_46, %c0_47] : memref<1x128xf32, #tpu.memory_space<vmem>>, vector<1x128xf32>
    %186 = vector.broadcast %185 : vector<1x128xf32> to vector<8x128xf32>
    %187 = arith.mulf %184, %186 : vector<8x128xf32>
    %c0_48 = arith.constant 0 : index
    %c0_49 = arith.constant 0 : index
    %188 = vector.load %arg11[%c0_48, %c0_49] : memref<1x128xf32, #tpu.memory_space<vmem>>, vector<1x128xf32>
    %189 = vector.broadcast %188 : vector<1x128xf32> to vector<8x128xf32>
    %190 = arith.addf %187, %189 : vector<8x128xf32>
    %c0_50 = arith.constant 0 : index
    %c0_51 = arith.constant 0 : index
    %191 = vector.load %arg12[%c0_50, %c0_51] : memref<8x128xf32, #tpu.memory_space<vmem>>, vector<8x128xf32>
    tpu.vector_store %arg12[%c0_50, %c0_51], %190 {strides = array<i32>} : memref<8x128xf32, #tpu.memory_space<vmem>>, vector<8x128xf32>,
    return
  }
  func.func @transform_0(%arg0: i32) -> (i32, i32) {
    %c0_i32 = arith.constant 0 : i32
    %c0_i32_0 = arith.constant 0 : i32
    return %arg0, %c0_i32 : i32, i32
  }
  func.func @transform_1(%arg0: i32) -> (i32, i32) {
    %c0_i32 = arith.constant 0 : i32
    %c0_i32_0 = arith.constant 0 : i32
    %c0_i32_1 = arith.constant 0 : i32
    return %c0_i32, %c0_i32_0 : i32, i32
  }
  func.func @transform_2(%arg0: i32) -> (i32, i32) {
    %c0_i32 = arith.constant 0 : i32
    %c0_i32_0 = arith.constant 0 : i32
    %c0_i32_1 = arith.constant 0 : i32
    return %c0_i32, %c0_i32_0 : i32, i32
  }
  func.func @transform_3(%arg0: i32) -> (i32, i32) {
    %c0_i32 = arith.constant 0 : i32
    %c0_i32_0 = arith.constant 0 : i32
    %c0_i32_1 = arith.constant 0 : i32
    return %c0_i32, %c0_i32_0 : i32, i32
  }
  func.func @transform_4(%arg0: i32) -> (i32, i32) {
    %c0_i32 = arith.constant 0 : i32
    %c0_i32_0 = arith.constant 0 : i32
    %c0_i32_1 = arith.constant 0 : i32
    return %c0_i32, %c0_i32_0 : i32, i32
  }
  func.func @transform_5(%arg0: i32) -> (i32, i32) {
    %c0_i32 = arith.constant 0 : i32
    %c0_i32_0 = arith.constant 0 : i32
    %c0_i32_1 = arith.constant 0 : i32
    return %c0_i32, %c0_i32_0 : i32, i32
  }
  func.func @transform_6(%arg0: i32) -> (i32, i32) {
    %c0_i32 = arith.constant 0 : i32
    %c0_i32_0 = arith.constant 0 : i32
    %c0_i32_1 = arith.constant 0 : i32
    return %c0_i32, %c0_i32_0 : i32, i32
  }
  func.func @transform_7(%arg0: i32) -> (i32, i32) {
    %c0_i32 = arith.constant 0 : i32
    %c0_i32_0 = arith.constant 0 : i32
    %c0_i32_1 = arith.constant 0 : i32
    return %c0_i32, %c0_i32_0 : i32, i32
  }
  func.func @transform_8(%arg0: i32) -> (i32, i32) {
    %c0_i32 = arith.constant 0 : i32
    %c0_i32_0 = arith.constant 0 : i32
    %c0_i32_1 = arith.constant 0 : i32
    return %c0_i32, %c0_i32_0 : i32, i32
  }
  func.func @transform_9(%arg0: i32) -> (i32, i32) {
    %c0_i32 = arith.constant 0 : i32
    %c0_i32_0 = arith.constant 0 : i32
    %c0_i32_1 = arith.constant 0 : i32
    return %c0_i32, %c0_i32_0 : i32, i32
  }
  func.func @transform_10(%arg0: i32) -> (i32, i32) {
    %c0_i32 = arith.constant 0 : i32
    %c0_i32_0 = arith.constant 0 : i32
    %c0_i32_1 = arith.constant 0 : i32
    return %c0_i32, %c0_i32_0 : i32, i32
  }
  func.func @transform_11(%arg0: i32) -> (i32, i32) {
    %c0_i32 = arith.constant 0 : i32
    %c0_i32_0 = arith.constant 0 : i32
    return %arg0, %c0_i32 : i32, i32
  }
}

</mosaic_0001>

<bundles_post_ra>
// kernel: tpu_custom_call.1
= control target key start
LH: loop header
LB: loop body
LE: loop exit
PB: predicated region body
PF: predicated region fallthrough
CT: control target
= control target key end

     0   :  { %vm110_vm0 = vcmask 449536   ;;  %vm303_vm1 = vcmask 1046528   ;;  %s5175_s0 = inlined_call_operand.vmem [shape: f32[512,55], index: 0, kind: input, shape index: {}]   ;;  %s5176_s1 = inlined_call_operand.vmem [shape: f32[55,128], index: 1, kind: input, shape index: {}]   ;;  %s5177_s2 = inlined_call_operand.vmem [shape: f32[128,160], index: 2, kind: input, shape index: {}]   ;;  %s5178_s3 = inlined_call_operand.vmem [shape: f32[160,128], index: 3, kind: input, shape index: {}]   ;;  %s5179_s4 = inlined_call_operand.vmem [shape: f32[128,160], index: 4, kind: input, shape index: {}]   ;;  %s5180_s5 = inlined_call_operand.vmem [shape: f32[160,128], index: 5, kind: input, shape index: {}]   ;;  %s5181_s6 = inlined_call_operand.vmem [shape: f32[128,128], index: 6, kind: input, shape index: {}]   ;;  %s5182_s7 = inlined_call_operand.vmem [shape: f32[128,128], index: 7, kind: input, shape index: {}]   ;;  %s5183_s8 = inlined_call_operand.vmem [shape: f32[1,128], index: 8, kind: input, shape index: {}]   ;;  %s5184_s9 = inlined_call_operand.vmem [shape: f32[1,128], index: 9, kind: input, shape index: {}]   ;;  %s5185_s10 = inlined_call_operand.vmem [shape: f32[1,128], index: 10, kind: input, shape index: {}]   ;;  %s5186_s11 = inlined_call_operand.hbm [shape: f32[8,128], index: 11, kind: output, shape index: {}]  }
   0x1   :  { %v103_v0 = vld [vmem:[%s5176_s1] sm:$0xff]  ;;  %v104_v1 = vld [vmem:[%s5176_s1 + $0x8] sm:$0xff]  ;;  %v105_v2 = vld [vmem:[%s5176_s1 + $0x10] sm:$0xff] }
   0x2   :  { %v3578_v3 = vpack.c.bf16 %v104_v1, %v103_v0  ;;  %v106_v4 = vld [vmem:[%s5176_s1 + $0x18] sm:$0xff]  ;;  %v107_v6 = vld [vmem:[%s5176_s1 + $0x20] sm:$0xff]  ;;  %v108_v7 = vld [vmem:[%s5176_s1 + $0x28] sm:$0xff] }
   0x3   :  { %v3582_v5 = vpack.c.bf16 %v106_v4, %v105_v2  ;;  %v39_v8 = vld [vmem:[%s5175_s0] sm:$0xff]  ;;  %v3586_v9 = vpack.c.bf16 %v108_v7, %v107_v6  ;;  %v109_v10 = vld [vmem:[%s5176_s1 + $0x30] sm:$0x7f]  ;;  %v40_v11 = vld [vmem:[%s5175_s0 + $0x8] sm:$0xff] }
   0x4   :  { %3579 = vmatprep.subr.bf16.mxu0 %v3578_v3  ;;  %3382 = vmatprep.mubr.msk.f32.mxu0 %vm110_vm0, %v39_v8  ;;  %v41_v12 = vld [vmem:[%s5175_s0 + $0x10] sm:$0xff]  ;;  %v42_v13 = vld [vmem:[%s5175_s0 + $0x18] sm:$0xff]  ;;  %v43_v14 = vld [vmem:[%s5175_s0 + $0x20] sm:$0xff] }
   0x5   :  { %3581 = vmatpush3.bf16.msra.mxu0 %v3578_v3  ;;  %v757_v15 = vld [vmem:[%s5177_s2 + $0x8] sm:$0xff]  ;;  %v759_v16 = vld [vmem:[%s5177_s2 + $0x18] sm:$0xff]  ;;  %v756_v18 = vld [vmem:[%s5177_s2] sm:$0xff] }
   0x6   :  { %3583 = vmatprep.subr.bf16.mxu0 %v3582_v5  ;;  %v3590_v17 = vpack.c.bf16 %v759_v16, %v757_v15  ;;  %v758_v19 = vld [vmem:[%s5177_s2 + $0x10] sm:$0xff]  ;;  %v761_v20 = vld [vmem:[%s5177_s2 + $0x28] sm:$0xff]  ;;  %v763_v22 = vld [vmem:[%s5177_s2 + $0x38] sm:$0xff] }
   0x7   :  { %v3592_v21 = vpack.c.bf16 %v758_v19, %v756_v18  ;;  %v760_v23 = vld [vmem:[%s5177_s2 + $0x20] sm:$0xff]  ;;  %v762_v24 = vld [vmem:[%s5177_s2 + $0x30] sm:$0xff]  ;;  %v3594_v25 = vpack.c.bf16 %v763_v22, %v761_v20  ;;  %v765_v26 = vld [vmem:[%s5177_s2 + $0x48] sm:$0xff] }
   0x8   :  { %3591 = vmatprep.subr.bf16.mxu1 %v3590_v17  ;;  %v44_v27 = vld [vmem:[%s5175_s0 + $0x28] sm:$0xff]  ;;  %v3596_v28 = vpack.c.bf16 %v762_v24, %v760_v23  ;;  %v767_v29 = vld [vmem:[%s5177_s2 + $0x58] sm:$0xff]  ;;  %v45_v30 = vld [vmem:[%s5175_s0 + $0x30] sm:$0xff] }
   0x9   :  { %3585 = vmatpush3.bf16.msra.mxu0 %v3582_v5  ;;  %3593 = vmatpush1.bf16.msra.mxu1 %v3592_v21  ;;  %v3598_v31 = vpack.c.bf16 %v767_v29, %v765_v26  ;;  %v764_v32 = vld [vmem:[%s5177_s2 + $0x40] sm:$0xff]  ;;  %v766_v33 = vld [vmem:[%s5177_s2 + $0x50] sm:$0xff]  ;;  %v769_v34 = vld [vmem:[%s5177_s2 + $0x68] sm:$0xff] }
   0xa   :  { %3587 = vmatprep.subr.bf16.mxu0 %v3586_v9  ;;  %3595 = vmatprep.subr.bf16.mxu1 %v3594_v25  ;;  %v771_v35 = vld [vmem:[%s5177_s2 + $0x78] sm:$0xff]  ;;  %v3600_v37 = vpack.c.bf16 %v766_v33, %v764_v32  ;;  %v47_v38 = vld [vmem:[%s5175_s0 + $0x40] sm:$0xff]  ;;  %v770_v41 = vld [vmem:[%s5177_s2 + $0x70] sm:$0xff] }
   0xb   :  { %v46_v36 = vld [vmem:[%s5175_s0 + $0x38] sm:$0xff]  ;;  %v3602_v39 = vpack.c.bf16 %v771_v35, %v769_v34  ;;  %v768_v40 = vld [vmem:[%s5177_s2 + $0x60] sm:$0xff]  ;;  %v773_v42 = vld [vmem:[%s5177_s2 + $0x88] sm:$0xff] }
   0xc   :  { %v775_v43 = vld [vmem:[%s5177_s2 + $0x98] sm:$0xff] }
   0xd   :  { %3589 = vmatpush3.bf16.msra.mxu0 %v3586_v9  ;;  %3597 = vmatpush1.bf16.msra.mxu1 %v3596_v28 }
   0xe   :  { %3380 = vmatprep.subr.msk.mxu0 %vm303_vm1, %v109_v10  ;;  %3599 = vmatprep.subr.bf16.mxu1 %v3598_v31 }
  0x11   :  { %3381 = vmatpush3.msk.msra.mxu0 %vm303_vm1, %v109_v10 }
  0x12   :  { %3383 = vmatmul.mubr.msk.f32.vlgmr.msra.gmra.mrb[0].mxu0 %vm110_vm0, %v40_v11 }
  0x13   :  { %3385 = vmatprep.mubr.msk.f32.mxu0 %vm110_vm0, %v41_v12 }
  0x16   :  { %3386 = vmatmul.mubr.msk.f32.gmra.mrb[2].mxu0 %vm110_vm0, %v42_v13 }
  0x17   :  { %3388 = vmatprep.mubr.msk.f32.mxu0 %vm110_vm0, %v43_v14 }
  0x1a   :  { %3389 = vmatmul.mubr.msk.f32.gmra.mrb[4].mxu0 %vm110_vm0, %v44_v27 }
  0x1b   :  { %3391 = vmatprep.mubr.msk.f32.mxu0 %vm110_vm0, %v45_v30 }
  0x1e   :  { %3392 = vmatmul.mubr.msk.f32.gmra.mrb[6].mxu0 %vm110_vm0, %v46_v36 }
  0x1f   :  { %16 = vsyncpa [#allocation3], 0  ;;  %3394 = vmatprep.mubr.msk.f32.mxu0 %vm110_vm0, %v47_v38  ;;  %v48_v44 = vld [vmem:[%s5175_s0 + $0x48] sm:$0xff]  ;;  %3601 = vmatpush1.bf16.msra.mxu1 %v3600_v37  ;;  %v3604_v45 = vpack.c.bf16 %v770_v41, %v768_v40  ;;  %v49_v46 = vld [vmem:[%s5175_s0 + $0x50] sm:$0xff]  ;;  %v3606_v47 = vpack.c.bf16 %v775_v43, %v773_v42  ;;  %v3792_v41 = vmov 0.0   ;;  %vm1385_vm2 = vcmask 261120  }
  0x20   :  { %3603 = vmatprep.subr.bf16.mxu1 %v3602_v39  ;;  %v772_v48 = vld [vmem:[%s5177_s2 + $0x80] sm:$0xff]  ;;  %v774_v49 = vld [vmem:[%s5177_s2 + $0x90] sm:$0xff]  ;;  %v777_v50 = vld [vmem:[%s5177_s2 + $0xa8] sm:$0xff]  ;;  %852 = vmatprep.mubr.f32.mxu1 %v3792_v41  ;;  %vm2244_vm3 = vcmask 1041409   ;;  %vm2247_vm4 = vcmask 1042434   ;;  %vm2250_vm5 = vcmask 1043459  }
  0x21   :  { %v779_v51 = vld [vmem:[%s5177_s2 + $0xb8] sm:$0xff]  ;;  %v3608_v53 = vpack.c.bf16 %v774_v49, %v772_v48  ;;  %v51_v54 = vld [vmem:[%s5175_s0 + $0x60] sm:$0xff]  ;;  %v778_v57 = vld [vmem:[%s5177_s2 + $0xb0] sm:$0xff]  ;;  %vm2253_vm6 = vcmask 1044484   ;;  %vm2256_vm7 = vcmask 1045509   ;;  %vm2259_vm8 = vcmask 1046534  }
  0x22   :  { %3395 = vmatmul.mubr.msk.f32.gmra.mrb[8].mxu0 %vm110_vm0, %v48_v44  ;;  %v50_v52 = vld [vmem:[%s5175_s0 + $0x58] sm:$0xff]  ;;  %v3610_v55 = vpack.c.bf16 %v779_v51, %v777_v50  ;;  %v776_v56 = vld [vmem:[%s5177_s2 + $0xa0] sm:$0xff]  ;;  %v781_v58 = vld [vmem:[%s5177_s2 + $0xc8] sm:$0xff]  ;;  %vm2262_vm9 = vcmask 1047559   ;;  %vm3794_vm10 = vmmov 0   ;;  %s3795_s18 = smov [#allocation2]  }
  0x23   :  { %3397 = vmatprep.mubr.msk.f32.mxu0 %vm110_vm0, %v49_v46  ;;  %3605 = vmatpush1.bf16.msra.mxu1 %v3604_v45  ;;  %v783_v59 = vld [vmem:[%s5177_s2 + $0xd8] sm:$0xff]  ;;  %v52_v60 = vld [vmem:[%s5175_s0 + $0x68] sm:$0xff]  ;;  %v3612_v61 = vpack.c.bf16 %v778_v57, %v776_v56  ;;  %v53_v62 = vld [vmem:[%s5175_s0 + $0x70] sm:$0xff]  ;;  %s3102_s19 = sshll.u32 %s3795_s18, 4  ;;  %s3103_s19 = int_to_ptr.vmem [resolvable:$true] %s3102_s19 }
  0x24   :  { %3607 = vmatprep.subr.bf16.mxu1 %v3606_v47  ;;  %v3614_v63 = vpack.c.bf16 %v783_v59, %v781_v58  ;;  %v780_v0 = vld [vmem:[%s5177_s2 + $0xc0] sm:$0xff]  ;;  %v782_v1 = vld [vmem:[%s5177_s2 + $0xd0] sm:$0xff]  ;;  %v54_v2 = vld [vmem:[%s5175_s0 + $0x78] sm:$0xff]  ;;  %v3793_v59 = vmov 0.0|0.0   ;;  %s3768_s1 = scalar_lea.vmem %s3103_s19, 128  ;;  %p3773_p1 = scmp.lt.s32.totalorder %s3103_s19, %s3103_s19 }
  0x25   :  { %v3616_v3 = vpack.c.bf16 %v782_v1, %v780_v0  ;;  %v55_v4 = vld [vmem:[%s5175_s0 + $0x80] sm:$0xff]  ;;  %v56_v5 = vld [vmem:[%s5175_s0 + $0x88] sm:$0xff]  ;;  %v57_v6 = vld [vmem:[%s5175_s0 + $0x90] sm:$0xff]  ;;  %3622 = vmatprep.subr.bf16.mxu0 %v3793_v59  ;;  %p3769_p0 = scmp.ne.s32.totalorder %s3103_s19, %s3768_s1  ;;  %p3774_p2 = scmp.lt.s32.totalorder %s3768_s1, %s3768_s1 }
  0x26   :  { %3398 = vmatmul.mubr.msk.f32.gmra.mrb[10].mxu0 %vm110_vm0, %v50_v52  ;;  %v58_v7 = vld [vmem:[%s5175_s0 + $0x98] sm:$0xff]  ;;  %v59_v8 = vld [vmem:[%s5175_s0 + $0xa0] sm:$0xff]  ;;  %v60_v9 = vld [vmem:[%s5175_s0 + $0xa8] sm:$0xff] }
  0x27   :  { %3400 = vmatprep.mubr.msk.f32.mxu0 %vm110_vm0, %v51_v54  ;;  %3609 = vmatpush1.bf16.msra.mxu1 %v3608_v53  ;;  %v61_v10 = vld [vmem:[%s5175_s0 + $0xb0] sm:$0xff]  ;;  %v62_v11 = vld [vmem:[%s5175_s0 + $0xb8] sm:$0xff]  ;;  %v63_v12 = vld [vmem:[%s5175_s0 + $0xc0] sm:$0xff]  ;;  %p3775_p3 = por %p3774_p2, %p3773_p1 }
  0x28   :  { %3611 = vmatprep.subr.bf16.mxu1 %v3610_v55  ;;  %v64_v13 = vld [vmem:[%s5175_s0 + $0xc8] sm:$0xff]  ;;  %v65_v14 = vld [vmem:[%s5175_s0 + $0xd0] sm:$0xff]  ;;  %v66_v15 = vld [vmem:[%s5175_s0 + $0xd8] sm:$0xff] }
  0x29   :  { %v67_v16 = vld [vmem:[%s5175_s0 + $0xe0] sm:$0xff]  ;;  %v68_v17 = vld [vmem:[%s5175_s0 + $0xe8] sm:$0xff]  ;;  %v69_v18 = vld [vmem:[%s5175_s0 + $0xf0] sm:$0xff]  ;;  %p3776_p4 = pnand %p3775_p3, %p3769_p0 }
  0x2a   :  { %3401 = vmatmul.mubr.msk.f32.gmra.mrb[12].mxu0 %vm110_vm0, %v52_v60  ;;  %v70_v19 = vld [vmem:[%s5175_s0 + $0xf8] sm:$0xff]  ;;  %v71_v20 = vld [vmem:[%s5175_s0 + $0x100] sm:$0xff]  ;;  %v72_v21 = vld [vmem:[%s5175_s0 + $0x108] sm:$0xff] }
  0x2b   :  { %3403 = vmatprep.mubr.msk.f32.mxu0 %vm110_vm0, %v53_v62  ;;  %3613 = vmatpush1.bf16.msra.mxu1 %v3612_v61  ;;  %v73_v22 = vld [vmem:[%s5175_s0 + $0x110] sm:$0xff]  ;;  %v74_v23 = vld [vmem:[%s5175_s0 + $0x118] sm:$0xff]  ;;  %v75_v24 = vld [vmem:[%s5175_s0 + $0x120] sm:$0xff] }
  0x2c   :  { %3615 = vmatprep.subr.bf16.mxu1 %v3614_v63  ;;  %v76_v25 = vld [vmem:[%s5175_s0 + $0x128] sm:$0xff]  ;;  %v77_v26 = vld [vmem:[%s5175_s0 + $0x130] sm:$0xff]  ;;  %v78_v27 = vld [vmem:[%s5175_s0 + $0x138] sm:$0xff] }
  0x2d   :  { %v79_v28 = vld [vmem:[%s5175_s0 + $0x140] sm:$0xff]  ;;  %v80_v29 = vld [vmem:[%s5175_s0 + $0x148] sm:$0xff]  ;;  %v81_v30 = vld [vmem:[%s5175_s0 + $0x150] sm:$0xff] }
  0x2e   :  { %3404 = vmatmul.mubr.msk.f32.gmra.mrb[14].mxu0 %vm110_vm0, %v54_v2  ;;  %v785_v31 = vld [vmem:[%s5177_s2 + $0xe8] sm:$0xff]  ;;  %v787_v32 = vld [vmem:[%s5177_s2 + $0xf8] sm:$0xff]  ;;  %v784_v35 = vld [vmem:[%s5177_s2 + $0xe0] sm:$0xff] }
  0x2f   :  { %3406 = vmatprep.mubr.msk.f32.mxu0 %vm110_vm0, %v55_v4  ;;  %3617 = vmatpush1.bf16.msra.mxu1 %v3616_v3  ;;  %v82_v33 = vld [vmem:[%s5175_s0 + $0x158] sm:$0xff]  ;;  %v3618_v34 = vpack.c.bf16 %v787_v32, %v785_v31  ;;  %v786_v36 = vld [vmem:[%s5177_s2 + $0xf0] sm:$0xff]  ;;  %v83_v37 = vld [vmem:[%s5175_s0 + $0x160] sm:$0xff] }
  0x30   :  { %v3620_v38 = vpack.c.bf16 %v786_v36, %v784_v35  ;;  %v84_v39 = vld [vmem:[%s5175_s0 + $0x168] sm:$0xff]  ;;  %v85_v40 = vld [vmem:[%s5175_s0 + $0x170] sm:$0xff]  ;;  %v86_v42 = vld [vmem:[%s5175_s0 + $0x178] sm:$0xff] }
  0x31   :  { %3619 = vmatprep.subr.bf16.mxu1 %v3618_v34  ;;  %v87_v43 = vld [vmem:[%s5175_s0 + $0x180] sm:$0xff]  ;;  %v88_v44 = vld [vmem:[%s5175_s0 + $0x188] sm:$0xff]  ;;  %v89_v45 = vld [vmem:[%s5175_s0 + $0x190] sm:$0xff] }
  0x32   :  { %3407 = vmatmul.mubr.msk.f32.gmra.mrb[16].mxu0 %vm110_vm0, %v56_v5  ;;  %v90_v46 = vld [vmem:[%s5175_s0 + $0x198] sm:$0xff]  ;;  %v91_v47 = vld [vmem:[%s5175_s0 + $0x1a0] sm:$0xff]  ;;  %v92_v48 = vld [vmem:[%s5175_s0 + $0x1a8] sm:$0xff] }
  0x33   :  { %3409 = vmatprep.mubr.msk.f32.mxu0 %vm110_vm0, %v57_v6  ;;  %3621 = vmatpush1.bf16.msra.mxu1 %v3620_v38  ;;  %v93_v49 = vld [vmem:[%s5175_s0 + $0x1b0] sm:$0xff]  ;;  %v94_v50 = vld [vmem:[%s5175_s0 + $0x1b8] sm:$0xff]  ;;  %v95_v51 = vld [vmem:[%s5175_s0 + $0x1c0] sm:$0xff] }
  0x34   :  { %v96_v52 = vld [vmem:[%s5175_s0 + $0x1c8] sm:$0xff]  ;;  %v97_v53 = vld [vmem:[%s5175_s0 + $0x1d0] sm:$0xff]  ;;  %v98_v54 = vld [vmem:[%s5175_s0 + $0x1d8] sm:$0xff] }
  0x35   :  { %v99_v55 = vld [vmem:[%s5175_s0 + $0x1e0] sm:$0xff]  ;;  %v100_v56 = vld [vmem:[%s5175_s0 + $0x1e8] sm:$0xff]  ;;  %v101_v57 = vld [vmem:[%s5175_s0 + $0x1f0] sm:$0xff] }
  0x36   :  { %3410 = vmatmul.mubr.msk.f32.gmra.mrb[18].mxu0 %vm110_vm0, %v58_v7  ;;  %v102_v58 = vld [vmem:[%s5175_s0 + $0x1f8] sm:$0xff]  ;;  %v1365_v60 = vld [vmem:[%s5178_s3] sm:$0xff]  ;;  %v1366_v61 = vld [vmem:[%s5178_s3 + $0x8] sm:$0xff] }
  0x37   :  { %3412 = vmatprep.mubr.msk.f32.mxu0 %vm110_vm0, %v59_v8  ;;  %v3623_v62 = vpack.c.bf16 %v1366_v61, %v1365_v60  ;;  %v1367_v63 = vld [vmem:[%s5178_s3 + $0x10] sm:$0xff]  ;;  %v1368_v0 = vld [vmem:[%s5178_s3 + $0x18] sm:$0xff]  ;;  %v1369_v2 = vld [vmem:[%s5178_s3 + $0x20] sm:$0xff] }
  0x38   :  { %v3626_v1 = vpack.c.bf16 %v1368_v0, %v1367_v63  ;;  %v1370_v3 = vld [vmem:[%s5178_s3 + $0x28] sm:$0xff]  ;;  %v1371_v7 = vld [vmem:[%s5178_s3 + $0x30] sm:$0xff]  ;;  %v1372_v8 = vld [vmem:[%s5178_s3 + $0x38] sm:$0xff] }
  0x39   :  { %3624 = vmatpush1.bf16.msra.mxu0 %v3623_v62  ;;  %v3629_v4 = vpack.c.bf16 %v1370_v3, %v1369_v2  ;;  %v1376_v34 = vld [vmem:[%s5178_s3 + $0x58] sm:$0xff] }
  0x3a   :  { %3413 = vmatmul.mubr.msk.f32.gmra.mrb[20].mxu0 %vm110_vm0, %v60_v9  ;;  %3625 = vmatprep.subr.bf16.mxu0 %v3793_v59  ;;  %v1380_v60 = vld [vmem:[%s5178_s3 + $0x78] sm:$0xff] }
  0x3b   :  { %3415 = vmatprep.mubr.msk.f32.mxu0 %vm110_vm0, %v61_v10  ;;  %v3632_v10 = vpack.c.bf16 %v1372_v8, %v1371_v7 }
  0x3d   :  { %3627 = vmatpush1.bf16.msra.mxu0 %v3626_v1 }
  0x3e   :  { %3416 = vmatmul.mubr.msk.f32.gmra.mrb[22].mxu0 %vm110_vm0, %v62_v11  ;;  %3628 = vmatprep.subr.bf16.mxu0 %v3793_v59 }
  0x3f   :  { %3418 = vmatprep.mubr.msk.f32.mxu0 %vm110_vm0, %v63_v12 }
  0x41   :  { %3630 = vmatpush1.bf16.msra.mxu0 %v3629_v4 }
  0x42   :  { %3419 = vmatmul.mubr.msk.f32.gmra.mrb[24].mxu0 %vm110_vm0, %v64_v13  ;;  %3631 = vmatprep.subr.bf16.mxu0 %v3793_v59 }
  0x43   :  { %3421 = vmatprep.mubr.msk.f32.mxu0 %vm110_vm0, %v65_v14 }
  0x45   :  { %3633 = vmatpush1.bf16.msra.mxu0 %v3632_v10  ;;  %v1382_v10 = vld [vmem:[%s5178_s3 + $0x88] sm:$0xff] }
  0x46   :  { %3422 = vmatmul.mubr.msk.f32.gmra.mrb[26].mxu0 %vm110_vm0, %v66_v15  ;;  %3634 = vmatprep.subr.bf16.mxu0 %v3793_v59 }
  0x47   :  { %3424 = vmatprep.mubr.msk.f32.mxu0 %vm110_vm0, %v67_v16 }
  0x4a   :  { %3425 = vmatmul.mubr.msk.f32.gmra.mrb[28].mxu0 %vm110_vm0, %v68_v17 }
  0x4b   :  { %3427 = vmatprep.mubr.msk.f32.mxu0 %vm110_vm0, %v69_v18 }
  0x4e   :  { %3428 = vmatmul.mubr.msk.f32.gmra.mrb[30].mxu0 %vm110_vm0, %v70_v19 }
  0x4f   :  { %3430 = vmatprep.mubr.msk.f32.mxu0 %vm110_vm0, %v71_v20 }
  0x52   :  { %3431 = vmatmul.mubr.msk.f32.gmra.mrb[32].mxu0 %vm110_vm0, %v72_v21 }
  0x53   :  { %3433 = vmatprep.mubr.msk.f32.mxu0 %vm110_vm0, %v73_v22  ;;  %v1373_v22 = vld [vmem:[%s5178_s3 + $0x40] sm:$0xff] }
  0x56   :  { %3434 = vmatmul.mubr.msk.f32.gmra.mrb[34].mxu0 %vm110_vm0, %v74_v23  ;;  %v1374_v23 = vld [vmem:[%s5178_s3 + $0x48] sm:$0xff] }
  0x57   :  { %3436 = vmatprep.mubr.msk.f32.mxu0 %vm110_vm0, %v75_v24 }
  0x5a   :  { %3437 = vmatmul.mubr.msk.f32.gmra.mrb[36].mxu0 %vm110_vm0, %v76_v25  ;;  %v3635_v25 = vpack.c.bf16 %v1374_v23, %v1373_v22  ;;  %v1383_v23 = vld [vmem:[%s5178_s3 + $0x90] sm:$0xff] }
  0x5b   :  { %3439 = vmatprep.mubr.msk.f32.mxu0 %vm110_vm0, %v77_v26 }
  0x5c   :  { %3636 = vmatpush1.bf16.msra.mxu0 %v3635_v25 }
  0x5d   :  { %3637 = vmatprep.subr.bf16.mxu0 %v3793_v59 }
  0x5e   :  { %3440 = vmatmul.mubr.msk.f32.gmra.mrb[38].mxu0 %vm110_vm0, %v78_v27 }
  0x5f   :  { %3442 = vmatprep.mubr.msk.f32.mxu0 %vm110_vm0, %v79_v28 }
  0x62   :  { %3443 = vmatmul.mubr.msk.f32.gmra.mrb[40].mxu0 %vm110_vm0, %v80_v29 }
  0x63   :  { %3445 = vmatprep.mubr.msk.f32.mxu0 %vm110_vm0, %v81_v30 }
  0x66   :  { %3446 = vmatmul.mubr.msk.f32.gmra.mrb[42].mxu0 %vm110_vm0, %v82_v33  ;;  %v1375_v33 = vld [vmem:[%s5178_s3 + $0x50] sm:$0xff] }
  0x67   :  { %3448 = vmatprep.mubr.msk.f32.mxu0 %vm110_vm0, %v83_v37  ;;  %v3638_v36 = vpack.c.bf16 %v1376_v34, %v1375_v33 }
  0x69   :  { %3639 = vmatpush1.bf16.msra.mxu0 %v3638_v36 }
  0x6a   :  { %3449 = vmatmul.mubr.msk.f32.gmra.mrb[44].mxu0 %vm110_vm0, %v84_v39  ;;  %3640 = vmatprep.subr.bf16.mxu0 %v3793_v59 }
  0x6b   :  { %3451 = vmatprep.mubr.msk.f32.mxu0 %vm110_vm0, %v85_v40 }
  0x6e   :  { %3452 = vmatmul.mubr.msk.f32.gmra.mrb[46].mxu0 %vm110_vm0, %v86_v42 }
  0x6f   :  { %3454 = vmatprep.mubr.msk.f32.mxu0 %vm110_vm0, %v87_v43 }
  0x72   :  { %3455 = vmatmul.mubr.msk.f32.gmra.mrb[48].mxu0 %vm110_vm0, %v88_v44 }
  0x73   :  { %3457 = vmatprep.mubr.msk.f32.mxu0 %vm110_vm0, %v89_v45 }
  0x76   :  { %3458 = vmatmul.mubr.msk.f32.gmra.mrb[50].mxu0 %vm110_vm0, %v90_v46 }
  0x77   :  { %3460 = vmatprep.mubr.msk.f32.mxu0 %vm110_vm0, %v91_v47  ;;  %v1377_v47 = vld [vmem:[%s5178_s3 + $0x60] sm:$0xff] }
  0x7a   :  { %3461 = vmatmul.mubr.msk.f32.gmra.mrb[52].mxu0 %vm110_vm0, %v92_v48  ;;  %v1378_v48 = vld [vmem:[%s5178_s3 + $0x68] sm:$0xff] }
  0x7b   :  { %3463 = vmatprep.mubr.msk.f32.mxu0 %vm110_vm0, %v93_v49 }
  0x7e   :  { %3464 = vmatmul.mubr.msk.f32.gmra.mrb[54].mxu0 %vm110_vm0, %v94_v50  ;;  %v3641_v50 = vpack.c.bf16 %v1378_v48, %v1377_v47 }
  0x7f   :  { %3466 = vmatprep.mubr.msk.f32.mxu0 %vm110_vm0, %v95_v51 }
  0x80   :  { %3642 = vmatpush1.bf16.msra.mxu0 %v3641_v50 }
  0x81   :  { %3643 = vmatprep.subr.bf16.mxu0 %v3793_v59 }
  0x82   :  { %3467 = vmatmul.mubr.msk.f32.gmra.mrb[56].mxu0 %vm110_vm0, %v96_v52 }
  0x83   :  { %3469 = vmatprep.mubr.msk.f32.mxu0 %vm110_vm0, %v97_v53 }
  0x86   :  { %3470 = vmatmul.mubr.msk.f32.gmra.mrb[58].mxu0 %vm110_vm0, %v98_v54 }
  0x87   :  { %3472 = vmatprep.mubr.msk.f32.mxu0 %vm110_vm0, %v99_v55 }
  0x8a   :  { %3473 = vmatmul.mubr.msk.f32.gmra.mrb[60].mxu0 %vm110_vm0, %v100_v56 }
  0x8b   :  { %3475 = vmatprep.mubr.msk.f32.mxu0 %vm110_vm0, %v101_v57 }
  0x8e   :  { %3476 = vmatmul.mubr.msk.f32.gmra.mrb[62].mxu0 %vm110_vm0, %v102_v58  ;;  %v1379_v58 = vld [vmem:[%s5178_s3 + $0x70] sm:$0xff] }
  0x8f   :  { %v3644_v62 = vpack.c.bf16 %v1380_v60, %v1379_v58 }
  0x91   :  { %3645 = vmatpush1.bf16.msra.mxu0 %v3644_v62 }
  0x92   :  { %3646 = vmatprep.subr.bf16.mxu0 %v3793_v59 }
  0xe5   :  { %v3384_v5 = vpop.f32.mrb[0].mxu0 }
  0xe6   :  { %v373_v6 = vpop.f32.mrb[1].mxu0  ;;  %v693_v13 = vmax.f32 %v3384_v5, 0.0 }
  0xe7   :  { %v692_v9 = vmax.f32 %v373_v6, 0.0 }
  0xe9   :  { %853 = vmatmul.mubr.f32.vlgmr.msra.gmra.mrb[0].mxu1 %v692_v9  ;;  %v3387_v11 = vpop.f32.mrb[2].mxu0  ;;  %v1381_v9 = vld [vmem:[%s5178_s3 + $0x80] sm:$0xff] }
  0xea   :  { %858 = vmatprep.mubr.f32.mxu1 %v3792_v41  ;;  %v383_v12 = vpop.f32.mrb[3].mxu0  ;;  %v695_v19 = vmax.f32 %v3387_v11, 0.0  ;;  %v3647_v11 = vpack.c.bf16 %v1382_v10, %v1381_v9 }
  0xeb   :  { %v694_v14 = vmax.f32 %v383_v12, 0.0 }
  0xec   :  { %3648 = vmatpush1.bf16.msra.mxu0 %v3647_v11 }
  0xed   :  { %859 = vmatmul.mubr.f32.gmra.mrb[2].mxu1 %v693_v13  ;;  %v3390_v15 = vpop.f32.mrb[4].mxu0  ;;  %3649 = vmatprep.subr.bf16.mxu0 %v3793_v59 }
  0xee   :  { %864 = vmatprep.mubr.f32.mxu1 %v3792_v41  ;;  %v393_v16 = vpop.f32.mrb[5].mxu0  ;;  %v697_v28 = vmax.f32 %v3390_v15, 0.0 }
  0xef   :  { %v696_v20 = vmax.f32 %v393_v16, 0.0 }
  0xf1   :  { %865 = vmatmul.mubr.f32.gmra.mrb[4].mxu1 %v694_v14  ;;  %v3393_v17 = vpop.f32.mrb[6].mxu0 }
  0xf2   :  { %870 = vmatprep.mubr.f32.mxu1 %v3792_v41  ;;  %v403_v18 = vpop.f32.mrb[7].mxu0  ;;  %v699_v37 = vmax.f32 %v3393_v17, 0.0 }
  0xf3   :  { %v698_v29 = vmax.f32 %v403_v18, 0.0 }
  0xf5   :  { %871 = vmatmul.mubr.f32.gmra.mrb[6].mxu1 %v695_v19  ;;  %v3396_v21 = vpop.f32.mrb[8].mxu0 }
  0xf6   :  { %876 = vmatprep.mubr.f32.mxu1 %v3792_v41  ;;  %v413_v24 = vpop.f32.mrb[9].mxu0  ;;  %v701_v44 = vmax.f32 %v3396_v21, 0.0 }
  0xf7   :  { %v700_v38 = vmax.f32 %v413_v24, 0.0  ;;  %v1384_v24 = vld [vmem:[%s5178_s3 + $0x98] sm:$0xff] }
  0xf9   :  { %877 = vmatmul.mubr.f32.gmra.mrb[8].mxu1 %v696_v20  ;;  %v3399_v26 = vpop.f32.mrb[10].mxu0 }
  0xfa   :  { %882 = vmatprep.mubr.f32.mxu1 %v3792_v41  ;;  %v423_v27 = vpop.f32.mrb[11].mxu0  ;;  %v703_v53 = vmax.f32 %v3399_v26, 0.0  ;;  %v3650_v26 = vpack.c.bf16 %v1384_v24, %v1383_v23 }
  0xfb   :  { %v702_v45 = vmax.f32 %v423_v27, 0.0 }
  0xfc   :  { %3651 = vmatpush1.bf16.msra.mxu0 %v3650_v26 }
  0xfd   :  { %883 = vmatmul.mubr.f32.gmra.mrb[10].mxu1 %v697_v28  ;;  %v3402_v30 = vpop.f32.mrb[12].mxu0  ;;  %3738 = vmatprep.subr.bf16.mxu0 %v3793_v59 }
  0xfe   :  { %888 = vmatprep.mubr.f32.mxu1 %v3792_v41  ;;  %v433_v31 = vpop.f32.mrb[13].mxu0  ;;  %v705_v63 = vmax.f32 %v3402_v30, 0.0 }
  0xff   :  { %v704_v54 = vmax.f32 %v433_v31, 0.0 }
 0x101   :  { %889 = vmatmul.mubr.f32.gmra.mrb[12].mxu1 %v698_v29  ;;  %v3405_v32 = vpop.f32.mrb[14].mxu0 }
 0x102   :  { %894 = vmatprep.mubr.f32.mxu1 %v3792_v41  ;;  %v443_v35 = vpop.f32.mrb[15].mxu0  ;;  %v707_v5 = vmax.f32 %v3405_v32, 0.0 }
 0x103   :  { %v706_v0 = vmax.f32 %v443_v35, 0.0 }
 0x105   :  { %895 = vmatmul.mubr.f32.gmra.mrb[14].mxu1 %v699_v37  ;;  %v4279_v39 = vpop.f32.mrb[16].mxu0 }
 0x106   :  { %900 = vmatprep.mubr.f32.mxu1 %v3792_v41  ;;  %v453_v40 = vpop.f32.mrb[17].mxu0  ;;  %v709_v14 = vmax.f32 %v4279_v39, 0.0 }
 0x107   :  { %v708_v6 = vmax.f32 %v453_v40, 0.0 }
 0x109   :  { %901 = vmatmul.mubr.f32.gmra.mrb[16].mxu1 %v700_v38  ;;  %v4283_v42 = vpop.f32.mrb[18].mxu0 }
 0x10a   :  { %906 = vmatprep.mubr.f32.mxu1 %v3792_v41  ;;  %v463_v43 = vpop.f32.mrb[19].mxu0  ;;  %v711_v20 = vmax.f32 %v4283_v42, 0.0 }
 0x10b   :  { %v710_v15 = vmax.f32 %v463_v43, 0.0 }
 0x10d   :  { %907 = vmatmul.mubr.f32.gmra.mrb[18].mxu1 %v701_v44  ;;  %v4286_v46 = vpop.f32.mrb[20].mxu0 }
 0x10e   :  { %912 = vmatprep.mubr.f32.mxu1 %v3792_v41  ;;  %v4295_v49 = vpop.f32.mrb[21].mxu0  ;;  %v713_v29 = vmax.f32 %v4286_v46, 0.0 }
 0x10f   :  { %v712_v21 = vmax.f32 %v4295_v49, 0.0 }
 0x111   :  { %913 = vmatmul.mubr.f32.gmra.mrb[20].mxu1 %v702_v45  ;;  %v4297_v51 = vpop.f32.mrb[22].mxu0 }
 0x112   :  { %918 = vmatprep.mubr.f32.mxu1 %v3792_v41  ;;  %v4301_v52 = vpop.f32.mrb[23].mxu0  ;;  %v715_v35 = vmax.f32 %v4297_v51, 0.0 }
 0x113   :  { %v714_v30 = vmax.f32 %v4301_v52, 0.0 }
 0x115   :  { %919 = vmatmul.mubr.f32.gmra.mrb[22].mxu1 %v703_v53  ;;  %v4303_v55 = vpop.f32.mrb[24].mxu0 }
 0x116   :  { %924 = vmatprep.mubr.f32.mxu1 %v3792_v41  ;;  %v4306_v56 = vpop.f32.mrb[25].mxu0  ;;  %v717_v42 = vmax.f32 %v4303_v55, 0.0 }
 0x117   :  { %v716_v36 = vmax.f32 %v4306_v56, 0.0 }
 0x119   :  { %925 = vmatmul.mubr.f32.gmra.mrb[24].mxu1 %v704_v54  ;;  %v4308_v57 = vpop.f32.mrb[26].mxu0 }
 0x11a   :  { %930 = vmatprep.mubr.f32.mxu1 %v3792_v41  ;;  %v4317_v61 = vpop.f32.mrb[27].mxu0  ;;  %v719_v48 = vmax.f32 %v4308_v57, 0.0 }
 0x11b   :  { %v718_v43 = vmax.f32 %v4317_v61, 0.0 }
 0x11d   :  { %931 = vmatmul.mubr.f32.gmra.mrb[26].mxu1 %v705_v63  ;;  %v4319_v1 = vpop.f32.mrb[28].mxu0 }
 0x11e   :  { %936 = vmatprep.mubr.f32.mxu1 %v3792_v41  ;;  %v4323_v2 = vpop.f32.mrb[29].mxu0  ;;  %v721_v54 = vmax.f32 %v4319_v1, 0.0 }
 0x11f   :  { %v720_v49 = vmax.f32 %v4323_v2, 0.0 }
 0x121   :  { %937 = vmatmul.mubr.f32.gmra.mrb[28].mxu1 %v706_v0  ;;  %v4325_v3 = vpop.f32.mrb[30].mxu0 }
 0x122   :  { %942 = vmatprep.mubr.f32.mxu1 %v3792_v41  ;;  %v4328_v4 = vpop.f32.mrb[31].mxu0  ;;  %v723_v61 = vmax.f32 %v4325_v3, 0.0 }
 0x123   :  { %v722_v55 = vmax.f32 %v4328_v4, 0.0 }
 0x125   :  { %943 = vmatmul.mubr.f32.gmra.mrb[30].mxu1 %v707_v5  ;;  %v4330_v7 = vpop.f32.mrb[32].mxu0 }
 0x126   :  { %948 = vmatprep.mubr.f32.mxu1 %v3792_v41  ;;  %v4333_v8 = vpop.f32.mrb[33].mxu0  ;;  %v725_v63 = vmax.f32 %v4330_v7, 0.0 }
 0x127   :  { %v724_v62 = vmax.f32 %v4333_v8, 0.0 }
 0x129   :  { %949 = vmatmul.mubr.f32.gmra.mrb[32].mxu1 %v708_v6  ;;  %v4341_v12 = vpop.f32.mrb[34].mxu0 }
 0x12a   :  { %954 = vmatprep.mubr.f32.mxu1 %v3792_v41  ;;  %v4344_v13 = vpop.f32.mrb[35].mxu0  ;;  %v727_v1 = vmax.f32 %v4341_v12, 0.0 }
 0x12b   :  { %v726_v0 = vmax.f32 %v4344_v13, 0.0 }
 0x12d   :  { %955 = vmatmul.mubr.f32.gmra.mrb[34].mxu1 %v709_v14  ;;  %v4348_v16 = vpop.f32.mrb[36].mxu0 }
 0x12e   :  { %960 = vmatprep.mubr.f32.mxu1 %v3792_v41  ;;  %v4351_v17 = vpop.f32.mrb[37].mxu0  ;;  %v729_v3 = vmax.f32 %v4348_v16, 0.0 }
 0x12f   :  { %v728_v2 = vmax.f32 %v4351_v17, 0.0 }
 0x131   :  { %961 = vmatmul.mubr.f32.gmra.mrb[36].mxu1 %v710_v15  ;;  %v4353_v18 = vpop.f32.mrb[38].mxu0 }
 0x132   :  { %966 = vmatprep.mubr.f32.mxu1 %v3792_v41  ;;  %v4356_v19 = vpop.f32.mrb[39].mxu0  ;;  %v731_v5 = vmax.f32 %v4353_v18, 0.0 }
 0x133   :  { %v730_v4 = vmax.f32 %v4356_v19, 0.0 }
 0x135   :  { %967 = vmatmul.mubr.f32.gmra.mrb[38].mxu1 %v711_v20  ;;  %v4360_v22 = vpop.f32.mrb[40].mxu0 }
 0x136   :  { %972 = vmatprep.mubr.f32.mxu1 %v3792_v41  ;;  %v4369_v25 = vpop.f32.mrb[41].mxu0  ;;  %v733_v7 = vmax.f32 %v4360_v22, 0.0 }
 0x137   :  { %v732_v6 = vmax.f32 %v4369_v25, 0.0 }
 0x139   :  { %973 = vmatmul.mubr.f32.gmra.mrb[40].mxu1 %v712_v21  ;;  %v4371_v27 = vpop.f32.mrb[42].mxu0 }
 0x13a   :  { %978 = vmatprep.mubr.f32.mxu1 %v3792_v41  ;;  %v4375_v28 = vpop.f32.mrb[43].mxu0  ;;  %v735_v9 = vmax.f32 %v4371_v27, 0.0 }
 0x13b   :  { %v734_v8 = vmax.f32 %v4375_v28, 0.0 }
 0x13d   :  { %979 = vmatmul.mubr.f32.gmra.mrb[42].mxu1 %v713_v29  ;;  %v4379_v31 = vpop.f32.mrb[44].mxu0 }
 0x13e   :  { %984 = vmatprep.mubr.f32.mxu1 %v3792_v41  ;;  %v4382_v32 = vpop.f32.mrb[45].mxu0  ;;  %v737_v11 = vmax.f32 %v4379_v31, 0.0 }
 0x13f   :  { %v736_v10 = vmax.f32 %v4382_v32, 0.0 }
 0x141   :  { %985 = vmatmul.mubr.f32.gmra.mrb[44].mxu1 %v714_v30  ;;  %v4384_v33 = vpop.f32.mrb[46].mxu0 }
 0x142   :  { %990 = vmatprep.mubr.f32.mxu1 %v3792_v41  ;;  %v4387_v34 = vpop.f32.mrb[47].mxu0  ;;  %v739_v13 = vmax.f32 %v4384_v33, 0.0 }
 0x143   :  { %v738_v12 = vmax.f32 %v4387_v34, 0.0 }
 0x145   :  { %991 = vmatmul.mubr.f32.gmra.mrb[46].mxu1 %v715_v35  ;;  %v4391_v37 = vpop.f32.mrb[48].mxu0 }
 0x146   :  { %996 = vmatprep.mubr.f32.mxu1 %v3792_v41  ;;  %v4394_v38 = vpop.f32.mrb[49].mxu0  ;;  %v741_v15 = vmax.f32 %v4391_v37, 0.0 }
 0x147   :  { %v740_v14 = vmax.f32 %v4394_v38, 0.0 }
 0x149   :  { %997 = vmatmul.mubr.f32.gmra.mrb[48].mxu1 %v716_v36  ;;  %v4396_v39 = vpop.f32.mrb[50].mxu0 }
 0x14a   :  { %1002 = vmatprep.mubr.f32.mxu1 %v3792_v41  ;;  %v4399_v40 = vpop.f32.mrb[51].mxu0  ;;  %v743_v17 = vmax.f32 %v4396_v39, 0.0 }
 0x14b   :  { %v742_v16 = vmax.f32 %v4399_v40, 0.0 }
 0x14d   :  { %1003 = vmatmul.mubr.f32.gmra.mrb[50].mxu1 %v717_v42  ;;  %v4403_v44 = vpop.f32.mrb[52].mxu0 }
 0x14e   :  { %1008 = vmatprep.mubr.f32.mxu1 %v3792_v41  ;;  %v4406_v45 = vpop.f32.mrb[53].mxu0  ;;  %v745_v19 = vmax.f32 %v4403_v44, 0.0 }
 0x14f   :  { %v744_v18 = vmax.f32 %v4406_v45, 0.0 }
 0x151   :  { %1009 = vmatmul.mubr.f32.gmra.mrb[52].mxu1 %v718_v43  ;;  %v4408_v46 = vpop.f32.mrb[54].mxu0 }
 0x152   :  { %1014 = vmatprep.mubr.f32.mxu1 %v3792_v41  ;;  %v4411_v47 = vpop.f32.mrb[55].mxu0  ;;  %v747_v28 = vmax.f32 %v4408_v46, 0.0 }
 0x153   :  { %v746_v21 = vmax.f32 %v4411_v47, 0.0 }
 0x155   :  { %1015 = vmatmul.mubr.f32.gmra.mrb[54].mxu1 %v719_v48  ;;  %v4415_v50 = vpop.f32.mrb[56].mxu0 }
 0x156   :  { %1020 = vmatprep.mubr.f32.mxu1 %v3792_v41  ;;  %v4418_v51 = vpop.f32.mrb[57].mxu0  ;;  %v749_v38 = vmax.f32 %v4415_v50, 0.0 }
 0x157   :  { %v748_v31 = vmax.f32 %v4418_v51, 0.0 }
 0x159   :  { %1021 = vmatmul.mubr.f32.gmra.mrb[56].mxu1 %v720_v49  ;;  %v4420_v52 = vpop.f32.mrb[58].mxu0 }
 0x15a   :  { %1026 = vmatprep.mubr.f32.mxu1 %v3792_v41  ;;  %v4423_v53 = vpop.f32.mrb[59].mxu0  ;;  %v751_v49 = vmax.f32 %v4420_v52, 0.0 }
 0x15b   :  { %v750_v42 = vmax.f32 %v4423_v53, 0.0 }
 0x15d   :  { %1027 = vmatmul.mubr.f32.gmra.mrb[58].mxu1 %v721_v54  ;;  %v4427_v56 = vpop.f32.mrb[60].mxu0 }
 0x15e   :  { %1032 = vmatprep.mubr.f32.mxu1 %v3792_v41  ;;  %v4430_v57 = vpop.f32.mrb[61].mxu0 }
 0x15f   :  { %v752_v53 = vmax.f32 %v4430_v57, 0.0 }
 0x161   :  { %1033 = vmatmul.mubr.f32.gmra.mrb[60].mxu1 %v722_v55  ;;  %v4432_v58 = vpop.f32.mrb[62].mxu0 }
 0x162   :  { %1038 = vmatprep.mubr.f32.mxu1 %v3792_v41  ;;  %v4435_v60 = vpop.f32.mrb[63].mxu0 }
 0x165   :  { %1039 = vmatmul.mubr.f32.gmra.mrb[62].mxu1 %v723_v61 }
 0x166   :  { %1044 = vmatprep.mubr.f32.mxu1 %v3792_v41 }
 0x169   :  { %1045 = vmatmul.mubr.f32.gmra.mrb[64].mxu1 %v724_v62 }
 0x16a   :  { %1050 = vmatprep.mubr.f32.mxu1 %v3792_v41 }
 0x16d   :  { %1051 = vmatmul.mubr.f32.gmra.mrb[66].mxu1 %v725_v63 }
 0x16e   :  { %1056 = vmatprep.mubr.f32.mxu1 %v3792_v41 }
 0x171   :  { %1057 = vmatmul.mubr.f32.gmra.mrb[68].mxu1 %v726_v0  ;;  %v753_v0 = vmax.f32 %v4427_v56, 0.0 }
 0x172   :  { %1062 = vmatprep.mubr.f32.mxu1 %v3792_v41 }
 0x175   :  { %1063 = vmatmul.mubr.f32.gmra.mrb[70].mxu1 %v727_v1 }
 0x176   :  { %1068 = vmatprep.mubr.f32.mxu1 %v3792_v41 }
 0x179   :  { %1069 = vmatmul.mubr.f32.gmra.mrb[72].mxu1 %v728_v2  ;;  %v754_v2 = vmax.f32 %v4435_v60, 0.0 }
 0x17a   :  { %1074 = vmatprep.mubr.f32.mxu1 %v3792_v41 }
 0x17d   :  { %1075 = vmatmul.mubr.f32.gmra.mrb[74].mxu1 %v729_v3 }
 0x17e   :  { %1080 = vmatprep.mubr.f32.mxu1 %v3792_v41 }
 0x181   :  { %1081 = vmatmul.mubr.f32.gmra.mrb[76].mxu1 %v730_v4 }
 0x182   :  { %1086 = vmatprep.mubr.f32.mxu1 %v3792_v41 }
 0x185   :  { %1087 = vmatmul.mubr.f32.gmra.mrb[78].mxu1 %v731_v5 }
 0x186   :  { %1092 = vmatprep.mubr.f32.mxu1 %v3792_v41 }
 0x189   :  { %1093 = vmatmul.mubr.f32.gmra.mrb[80].mxu1 %v732_v6 }
 0x18a   :  { %1098 = vmatprep.mubr.f32.mxu1 %v3792_v41 }
 0x18d   :  { %1099 = vmatmul.mubr.f32.gmra.mrb[82].mxu1 %v733_v7 }
 0x18e   :  { %1104 = vmatprep.mubr.f32.mxu1 %v3792_v41 }
 0x191   :  { %1105 = vmatmul.mubr.f32.gmra.mrb[84].mxu1 %v734_v8  ;;  %v755_v8 = vmax.f32 %v4432_v58, 0.0 }
 0x192   :  { %1110 = vmatprep.mubr.f32.mxu1 %v3792_v41 }
 0x195   :  { %1111 = vmatmul.mubr.f32.gmra.mrb[86].mxu1 %v735_v9 }
 0x196   :  { %1116 = vmatprep.mubr.f32.mxu1 %v3792_v41 }
 0x199   :  { %1117 = vmatmul.mubr.f32.gmra.mrb[88].mxu1 %v736_v10 }
 0x19a   :  { %1122 = vmatprep.mubr.f32.mxu1 %v3792_v41 }
 0x19d   :  { %1123 = vmatmul.mubr.f32.gmra.mrb[90].mxu1 %v737_v11 }
 0x19e   :  { %1128 = vmatprep.mubr.f32.mxu1 %v3792_v41 }
 0x1a1   :  { %1129 = vmatmul.mubr.f32.gmra.mrb[92].mxu1 %v738_v12 }
 0x1a2   :  { %1134 = vmatprep.mubr.f32.mxu1 %v3792_v41 }
 0x1a5   :  { %1135 = vmatmul.mubr.f32.gmra.mrb[94].mxu1 %v739_v13 }
 0x1a6   :  { %1140 = vmatprep.mubr.f32.mxu1 %v3792_v41 }
 0x1a9   :  { %1141 = vmatmul.mubr.f32.gmra.mrb[96].mxu1 %v740_v14 }
 0x1aa   :  { %1146 = vmatprep.mubr.f32.mxu1 %v3792_v41 }
 0x1ad   :  { %1147 = vmatmul.mubr.f32.gmra.mrb[98].mxu1 %v741_v15 }
 0x1ae   :  { %1152 = vmatprep.mubr.f32.mxu1 %v3792_v41 }
 0x1b1   :  { %1153 = vmatmul.mubr.f32.gmra.mrb[100].mxu1 %v742_v16 }
 0x1b2   :  { %1158 = vmatprep.mubr.f32.mxu1 %v3792_v41 }
 0x1b5   :  { %1159 = vmatmul.mubr.f32.gmra.mrb[102].mxu1 %v743_v17 }
 0x1b6   :  { %1164 = vmatprep.mubr.f32.mxu1 %v3792_v41 }
 0x1b9   :  { %1165 = vmatmul.mubr.f32.gmra.mrb[104].mxu1 %v744_v18 }
 0x1ba   :  { %1170 = vmatprep.mubr.f32.mxu1 %v3792_v41 }
 0x1bc   :  { %v854_v20 = vpop.f32.mrb[0].mxu1 }
 0x1bd   :  { %v856_v22 = vpop.f32.mrb[1].mxu1  ;;  %1171 = vmatmul.mubr.f32.gmra.mrb[106].mxu1 %v745_v19  ;;  %v1237_v24 = vmax.f32 %v854_v20, 0.0 }
 0x1be   :  { %v1238_v23 = vmax.f32 %v856_v22, 0.0  ;;  %1176 = vmatprep.mubr.f32.mxu1 %v3792_v41 }
 0x1c0   :  { %v860_v25 = vpop.f32.mrb[2].mxu1  ;;  %3175 = vmatprep.mubr.msk.f32.mxu0 %vm1385_vm2, %v1238_v23 }
 0x1c1   :  { %v862_v26 = vpop.f32.mrb[3].mxu1  ;;  %1177 = vmatmul.mubr.f32.gmra.mrb[108].mxu1 %v746_v21  ;;  %1643 = vmatmul.mubr.f32.vlgmr.msra.gmra.mrb[64].mxu0 %v1237_v24  ;;  %v1239_v29 = vmax.f32 %v860_v25, 0.0 }
 0x1c2   :  { %v1240_v27 = vmax.f32 %v862_v26, 0.0  ;;  %1182 = vmatprep.mubr.f32.mxu1 %v3792_v41 }
 0x1c4   :  { %v866_v30 = vpop.f32.mrb[4].mxu1  ;;  %3176 = vmatprep.mubr.msk.f32.mxu0 %vm1385_vm2, %v1240_v27 }
 0x1c5   :  { %v868_v32 = vpop.f32.mrb[5].mxu1  ;;  %1183 = vmatmul.mubr.f32.gmra.mrb[110].mxu1 %v747_v28  ;;  %1648 = vmatmul.mubr.f32.gmra.mrb[66].mxu0 %v1239_v29  ;;  %v1241_v34 = vmax.f32 %v866_v30, 0.0 }
 0x1c6   :  { %v1242_v33 = vmax.f32 %v868_v32, 0.0  ;;  %1188 = vmatprep.mubr.f32.mxu1 %v3792_v41 }
 0x1c8   :  { %v872_v35 = vpop.f32.mrb[6].mxu1  ;;  %3177 = vmatprep.mubr.msk.f32.mxu0 %vm1385_vm2, %v1242_v33 }
 0x1c9   :  { %v874_v36 = vpop.f32.mrb[7].mxu1  ;;  %1189 = vmatmul.mubr.f32.gmra.mrb[112].mxu1 %v748_v31  ;;  %1653 = vmatmul.mubr.f32.gmra.mrb[68].mxu0 %v1241_v34  ;;  %v1243_v39 = vmax.f32 %v872_v35, 0.0 }
 0x1ca   :  { %v1244_v37 = vmax.f32 %v874_v36, 0.0  ;;  %1194 = vmatprep.mubr.f32.mxu1 %v3792_v41 }
 0x1cc   :  { %v878_v40 = vpop.f32.mrb[8].mxu1  ;;  %3178 = vmatprep.mubr.msk.f32.mxu0 %vm1385_vm2, %v1244_v37 }
 0x1cd   :  { %v880_v43 = vpop.f32.mrb[9].mxu1  ;;  %1195 = vmatmul.mubr.f32.gmra.mrb[114].mxu1 %v749_v38  ;;  %1658 = vmatmul.mubr.f32.gmra.mrb[70].mxu0 %v1243_v39  ;;  %v1245_v45 = vmax.f32 %v878_v40, 0.0 }
 0x1ce   :  { %v1246_v44 = vmax.f32 %v880_v43, 0.0  ;;  %1200 = vmatprep.mubr.f32.mxu1 %v3792_v41 }
 0x1d0   :  { %v884_v46 = vpop.f32.mrb[10].mxu1  ;;  %3179 = vmatprep.mubr.msk.f32.mxu0 %vm1385_vm2, %v1246_v44 }
 0x1d1   :  { %v886_v47 = vpop.f32.mrb[11].mxu1  ;;  %1201 = vmatmul.mubr.f32.gmra.mrb[116].mxu1 %v750_v42  ;;  %1663 = vmatmul.mubr.f32.gmra.mrb[72].mxu0 %v1245_v45  ;;  %v1247_v50 = vmax.f32 %v884_v46, 0.0 }
 0x1d2   :  { %v1248_v48 = vmax.f32 %v886_v47, 0.0  ;;  %1206 = vmatprep.mubr.f32.mxu1 %v3792_v41 }
 0x1d4   :  { %v890_v51 = vpop.f32.mrb[12].mxu1  ;;  %3180 = vmatprep.mubr.msk.f32.mxu0 %vm1385_vm2, %v1248_v48 }
 0x1d5   :  { %v892_v54 = vpop.f32.mrb[13].mxu1  ;;  %1207 = vmatmul.mubr.f32.gmra.mrb[118].mxu1 %v751_v49  ;;  %1668 = vmatmul.mubr.f32.gmra.mrb[74].mxu0 %v1247_v50  ;;  %v1249_v61 = vmax.f32 %v890_v51, 0.0 }
 0x1d6   :  { %v1250_v55 = vmax.f32 %v892_v54, 0.0  ;;  %1212 = vmatprep.mubr.f32.mxu1 %v3792_v41 }
 0x1d8   :  { %v896_v62 = vpop.f32.mrb[14].mxu1  ;;  %3181 = vmatprep.mubr.msk.f32.mxu0 %vm1385_vm2, %v1250_v55 }
 0x1d9   :  { %v898_v63 = vpop.f32.mrb[15].mxu1  ;;  %1213 = vmatmul.mubr.f32.gmra.mrb[120].mxu1 %v752_v53  ;;  %1673 = vmatmul.mubr.f32.gmra.mrb[76].mxu0 %v1249_v61  ;;  %v1251_v1 = vmax.f32 %v896_v62, 0.0 }
 0x1da   :  { %v1252_v52 = vmax.f32 %v898_v63, 0.0  ;;  %1218 = vmatprep.mubr.f32.mxu1 %v3792_v41 }
 0x1dc   :  { %v902_v57 = vpop.f32.mrb[16].mxu1  ;;  %3182 = vmatprep.mubr.msk.f32.mxu0 %vm1385_vm2, %v1252_v52 }
 0x1dd   :  { %v904_v3 = vpop.f32.mrb[17].mxu1  ;;  %1219 = vmatmul.mubr.f32.gmra.mrb[122].mxu1 %v753_v0  ;;  %1678 = vmatmul.mubr.f32.gmra.mrb[78].mxu0 %v1251_v1  ;;  %v1253_v5 = vmax.f32 %v902_v57, 0.0 }
 0x1de   :  { %v1254_v4 = vmax.f32 %v904_v3, 0.0  ;;  %1224 = vmatprep.mubr.f32.mxu1 %v3792_v41 }
 0x1e0   :  { %v908_v6 = vpop.f32.mrb[18].mxu1  ;;  %3183 = vmatprep.mubr.msk.f32.mxu0 %vm1385_vm2, %v1254_v4  ;;  %v2448_v4 = vld [vmem:[%s5179_s4 + $0x8] sm:$0xff] }
 0x1e1   :  { %v910_v7 = vpop.f32.mrb[19].mxu1  ;;  %1225 = vmatmul.mubr.f32.gmra.mrb[124].mxu1 %v754_v2  ;;  %1683 = vmatmul.mubr.f32.gmra.mrb[80].mxu0 %v1253_v5  ;;  %v1255_v9 = vmax.f32 %v908_v6, 0.0  ;;  %v2450_v5 = vld [vmem:[%s5179_s4 + $0x18] sm:$0xff] }
 0x1e2   :  { %v1256_v56 = vmax.f32 %v910_v7, 0.0  ;;  %1230 = vmatprep.mubr.f32.mxu1 %v3792_v41  ;;  %v3652_v7 = vpack.c.bf16 %v2450_v5, %v2448_v4 }
 0x1e4   :  { %v914_v60 = vpop.f32.mrb[20].mxu1  ;;  %3184 = vmatprep.mubr.msk.f32.mxu0 %vm1385_vm2, %v1256_v56  ;;  %3653 = vmatprep.subr.bf16.mxu1 %v3652_v7 }
 0x1e5   :  { %v916_v10 = vpop.f32.mrb[21].mxu1  ;;  %1231 = vmatmul.mubr.f32.gmra.mrb[126].mxu1 %v755_v8  ;;  %1688 = vmatmul.mubr.f32.gmra.mrb[82].mxu0 %v1255_v9  ;;  %v1257_v12 = vmax.f32 %v914_v60, 0.0 }
 0x1e6   :  { %v1258_v11 = vmax.f32 %v916_v10, 0.0  ;;  %2543 = vmatprep.mubr.f32.mxu1 %v3792_v41  ;;  %v2447_v10 = vld [vmem:[%s5179_s4] sm:$0xff] }
 0x1e8   :  { %v920_v13 = vpop.f32.mrb[22].mxu1  ;;  %3185 = vmatprep.mubr.msk.f32.mxu0 %vm1385_vm2, %v1258_v11  ;;  %v2449_v11 = vld [vmem:[%s5179_s4 + $0x10] sm:$0xff] }
 0x1e9   :  { %v922_v14 = vpop.f32.mrb[23].mxu1  ;;  %1693 = vmatmul.mubr.f32.gmra.mrb[84].mxu0 %v1257_v12  ;;  %v1259_v16 = vmax.f32 %v920_v13, 0.0  ;;  %v3654_v13 = vpack.c.bf16 %v2449_v11, %v2447_v10 }
 0x1ea   :  { %v1260_v15 = vmax.f32 %v922_v14, 0.0 }
 0x1eb   :  { %3655 = vmatpush1.bf16.msra.mxu1 %v3654_v13 }
 0x1ec   :  { %v926_v17 = vpop.f32.mrb[24].mxu1  ;;  %3186 = vmatprep.mubr.msk.f32.mxu0 %vm1385_vm2, %v1260_v15 }
 0x1ed   :  { %v928_v58 = vpop.f32.mrb[25].mxu1  ;;  %1698 = vmatmul.mubr.f32.gmra.mrb[86].mxu0 %v1259_v16  ;;  %v1261_v19 = vmax.f32 %v926_v17, 0.0 }
 0x1ee   :  { %v1262_v18 = vmax.f32 %v928_v58, 0.0 }
 0x1f0   :  { %v932_v20 = vpop.f32.mrb[26].mxu1  ;;  %3187 = vmatprep.mubr.msk.f32.mxu0 %vm1385_vm2, %v1262_v18 }
 0x1f1   :  { %v934_v21 = vpop.f32.mrb[27].mxu1  ;;  %1703 = vmatmul.mubr.f32.gmra.mrb[88].mxu0 %v1261_v19  ;;  %v1263_v23 = vmax.f32 %v932_v20, 0.0 }
 0x1f2   :  { %v1264_v22 = vmax.f32 %v934_v21, 0.0 }
 0x1f4   :  { %v938_v24 = vpop.f32.mrb[28].mxu1  ;;  %3188 = vmatprep.mubr.msk.f32.mxu0 %vm1385_vm2, %v1264_v22 }
 0x1f5   :  { %v940_v25 = vpop.f32.mrb[29].mxu1  ;;  %1708 = vmatmul.mubr.f32.gmra.mrb[90].mxu0 %v1263_v23  ;;  %v1265_v27 = vmax.f32 %v938_v24, 0.0 }
 0x1f6   :  { %v1266_v26 = vmax.f32 %v940_v25, 0.0 }
 0x1f8   :  { %v944_v28 = vpop.f32.mrb[30].mxu1  ;;  %3189 = vmatprep.mubr.msk.f32.mxu0 %vm1385_vm2, %v1266_v26 }
 0x1f9   :  { %v946_v29 = vpop.f32.mrb[31].mxu1  ;;  %1713 = vmatmul.mubr.f32.gmra.mrb[92].mxu0 %v1265_v27  ;;  %v1267_v31 = vmax.f32 %v944_v28, 0.0 }
 0x1fa   :  { %v1268_v30 = vmax.f32 %v946_v29, 0.0 }
 0x1fc   :  { %v950_v32 = vpop.f32.mrb[32].mxu1  ;;  %3190 = vmatprep.mubr.msk.f32.mxu0 %vm1385_vm2, %v1268_v30 }
 0x1fd   :  { %v952_v33 = vpop.f32.mrb[33].mxu1  ;;  %1718 = vmatmul.mubr.f32.gmra.mrb[94].mxu0 %v1267_v31  ;;  %v1269_v35 = vmax.f32 %v950_v32, 0.0 }
 0x1fe   :  { %v1270_v34 = vmax.f32 %v952_v33, 0.0 }
 0x200   :  { %v956_v36 = vpop.f32.mrb[34].mxu1  ;;  %3191 = vmatprep.mubr.msk.f32.mxu0 %vm1385_vm2, %v1270_v34 }
 0x201   :  { %v958_v37 = vpop.f32.mrb[35].mxu1  ;;  %1723 = vmatmul.mubr.f32.gmra.mrb[96].mxu0 %v1269_v35  ;;  %v1271_v39 = vmax.f32 %v956_v36, 0.0 }
 0x202   :  { %v1272_v38 = vmax.f32 %v958_v37, 0.0 }
 0x204   :  { %v962_v40 = vpop.f32.mrb[36].mxu1  ;;  %3192 = vmatprep.mubr.msk.f32.mxu0 %vm1385_vm2, %v1272_v38 }
 0x205   :  { %v964_v42 = vpop.f32.mrb[37].mxu1  ;;  %1728 = vmatmul.mubr.f32.gmra.mrb[98].mxu0 %v1271_v39  ;;  %v1273_v44 = vmax.f32 %v962_v40, 0.0 }
 0x206   :  { %v1274_v43 = vmax.f32 %v964_v42, 0.0 }
 0x208   :  { %v968_v45 = vpop.f32.mrb[38].mxu1  ;;  %3193 = vmatprep.mubr.msk.f32.mxu0 %vm1385_vm2, %v1274_v43 }
 0x209   :  { %v970_v46 = vpop.f32.mrb[39].mxu1  ;;  %1733 = vmatmul.mubr.f32.gmra.mrb[100].mxu0 %v1273_v44  ;;  %v1275_v48 = vmax.f32 %v968_v45, 0.0 }
 0x20a   :  { %v1276_v47 = vmax.f32 %v970_v46, 0.0  ;;  %v2452_v46 = vld [vmem:[%s5179_s4 + $0x28] sm:$0xff] }
 0x20c   :  { %v974_v49 = vpop.f32.mrb[40].mxu1  ;;  %3194 = vmatprep.mubr.msk.f32.mxu0 %vm1385_vm2, %v1276_v47  ;;  %v2454_v47 = vld [vmem:[%s5179_s4 + $0x38] sm:$0xff] }
 0x20d   :  { %v976_v50 = vpop.f32.mrb[41].mxu1  ;;  %1738 = vmatmul.mubr.f32.gmra.mrb[102].mxu0 %v1275_v48  ;;  %v1277_v53 = vmax.f32 %v974_v49, 0.0  ;;  %v2451_v48 = vld [vmem:[%s5179_s4 + $0x20] sm:$0xff] }
 0x20e   :  { %v1278_v51 = vmax.f32 %v976_v50, 0.0  ;;  %v3656_v50 = vpack.c.bf16 %v2454_v47, %v2452_v46 }
 0x210   :  { %v980_v54 = vpop.f32.mrb[42].mxu1  ;;  %3195 = vmatprep.mubr.msk.f32.mxu0 %vm1385_vm2, %v1278_v51  ;;  %v2453_v51 = vld [vmem:[%s5179_s4 + $0x30] sm:$0xff]  ;;  %3657 = vmatprep.subr.bf16.mxu1 %v3656_v50 }
 0x211   :  { %v982_v55 = vpop.f32.mrb[43].mxu1  ;;  %1743 = vmatmul.mubr.f32.gmra.mrb[104].mxu0 %v1277_v53  ;;  %v1279_v62 = vmax.f32 %v980_v54, 0.0  ;;  %v3658_v54 = vpack.c.bf16 %v2453_v51, %v2451_v48 }
 0x212   :  { %v1280_v61 = vmax.f32 %v982_v55, 0.0 }
 0x213   :  { %3659 = vmatpush1.bf16.msra.mxu1 %v3658_v54 }
 0x214   :  { %v986_v63 = vpop.f32.mrb[44].mxu1  ;;  %3196 = vmatprep.mubr.msk.f32.mxu0 %vm1385_vm2, %v1280_v61 }
 0x215   :  { %v988_v52 = vpop.f32.mrb[45].mxu1  ;;  %1748 = vmatmul.mubr.f32.gmra.mrb[106].mxu0 %v1279_v62  ;;  %v1281_v1 = vmax.f32 %v986_v63, 0.0 }
 0x216   :  { %v1282_v0 = vmax.f32 %v988_v52, 0.0 }
 0x218   :  { %v992_v57 = vpop.f32.mrb[46].mxu1  ;;  %3197 = vmatprep.mubr.msk.f32.mxu0 %vm1385_vm2, %v1282_v0 }
 0x219   :  { %v994_v2 = vpop.f32.mrb[47].mxu1  ;;  %1753 = vmatmul.mubr.f32.gmra.mrb[108].mxu0 %v1281_v1  ;;  %v1283_v6 = vmax.f32 %v992_v57, 0.0 }
 0x21a   :  { %v1284_v3 = vmax.f32 %v994_v2, 0.0 }
 0x21c   :  { %v998_v56 = vpop.f32.mrb[48].mxu1  ;;  %3198 = vmatprep.mubr.msk.f32.mxu0 %vm1385_vm2, %v1284_v3 }
 0x21d   :  { %v1000_v8 = vpop.f32.mrb[49].mxu1  ;;  %1758 = vmatmul.mubr.f32.gmra.mrb[110].mxu0 %v1283_v6  ;;  %v1285_v60 = vmax.f32 %v998_v56, 0.0 }
 0x21e   :  { %v1286_v9 = vmax.f32 %v1000_v8, 0.0 }
 0x220   :  { %v1004_v12 = vpop.f32.mrb[50].mxu1  ;;  %3199 = vmatprep.mubr.msk.f32.mxu0 %vm1385_vm2, %v1286_v9 }
 0x221   :  { %v1006_v14 = vpop.f32.mrb[51].mxu1  ;;  %1763 = vmatmul.mubr.f32.gmra.mrb[112].mxu0 %v1285_v60  ;;  %v1287_v16 = vmax.f32 %v1004_v12, 0.0 }
 0x222   :  { %v1288_v15 = vmax.f32 %v1006_v14, 0.0 }
 0x224   :  { %v1010_v17 = vpop.f32.mrb[52].mxu1  ;;  %3200 = vmatprep.mubr.msk.f32.mxu0 %vm1385_vm2, %v1288_v15 }
 0x225   :  { %v1012_v58 = vpop.f32.mrb[53].mxu1  ;;  %1768 = vmatmul.mubr.f32.gmra.mrb[114].mxu0 %v1287_v16  ;;  %v1289_v19 = vmax.f32 %v1010_v17, 0.0 }
 0x226   :  { %v1290_v18 = vmax.f32 %v1012_v58, 0.0 }
 0x228   :  { %v1016_v20 = vpop.f32.mrb[54].mxu1  ;;  %3201 = vmatprep.mubr.msk.f32.mxu0 %vm1385_vm2, %v1290_v18 }
 0x229   :  { %v1018_v21 = vpop.f32.mrb[55].mxu1  ;;  %1773 = vmatmul.mubr.f32.gmra.mrb[116].mxu0 %v1289_v19  ;;  %v1291_v23 = vmax.f32 %v1016_v20, 0.0 }
 0x22a   :  { %v1292_v22 = vmax.f32 %v1018_v21, 0.0  ;;  %v2456_v21 = vld [vmem:[%s5179_s4 + $0x48] sm:$0xff] }
 0x22c   :  { %v1022_v24 = vpop.f32.mrb[56].mxu1  ;;  %3202 = vmatprep.mubr.msk.f32.mxu0 %vm1385_vm2, %v1292_v22  ;;  %v2458_v22 = vld [vmem:[%s5179_s4 + $0x58] sm:$0xff] }
 0x22d   :  { %v1024_v25 = vpop.f32.mrb[57].mxu1  ;;  %1778 = vmatmul.mubr.f32.gmra.mrb[118].mxu0 %v1291_v23  ;;  %v1293_v27 = vmax.f32 %v1022_v24, 0.0  ;;  %v2455_v23 = vld [vmem:[%s5179_s4 + $0x40] sm:$0xff] }
 0x22e   :  { %v1294_v26 = vmax.f32 %v1024_v25, 0.0  ;;  %v3660_v25 = vpack.c.bf16 %v2458_v22, %v2456_v21 }
 0x230   :  { %v1028_v28 = vpop.f32.mrb[58].mxu1  ;;  %3203 = vmatprep.mubr.msk.f32.mxu0 %vm1385_vm2, %v1294_v26  ;;  %v2457_v26 = vld [vmem:[%s5179_s4 + $0x50] sm:$0xff]  ;;  %3661 = vmatprep.subr.bf16.mxu1 %v3660_v25 }
 0x231   :  { %v1030_v29 = vpop.f32.mrb[59].mxu1  ;;  %1783 = vmatmul.mubr.f32.gmra.mrb[120].mxu0 %v1293_v27  ;;  %v1295_v31 = vmax.f32 %v1028_v28, 0.0  ;;  %v3662_v28 = vpack.c.bf16 %v2457_v26, %v2455_v23 }
 0x232   :  { %v1296_v30 = vmax.f32 %v1030_v29, 0.0 }
 0x233   :  { %3663 = vmatpush1.bf16.msra.mxu1 %v3662_v28 }
 0x234   :  { %v1034_v32 = vpop.f32.mrb[60].mxu1  ;;  %3204 = vmatprep.mubr.msk.f32.mxu0 %vm1385_vm2, %v1296_v30 }
 0x235   :  { %v1036_v33 = vpop.f32.mrb[61].mxu1  ;;  %1788 = vmatmul.mubr.f32.gmra.mrb[122].mxu0 %v1295_v31  ;;  %v1297_v35 = vmax.f32 %v1034_v32, 0.0 }
 0x236   :  { %v1298_v34 = vmax.f32 %v1036_v33, 0.0 }
 0x238   :  { %v1040_v36 = vpop.f32.mrb[62].mxu1  ;;  %3205 = vmatprep.mubr.msk.f32.mxu0 %vm1385_vm2, %v1298_v34 }
 0x239   :  { %v1042_v37 = vpop.f32.mrb[63].mxu1  ;;  %1793 = vmatmul.mubr.f32.gmra.mrb[124].mxu0 %v1297_v35  ;;  %v1299_v39 = vmax.f32 %v1040_v36, 0.0 }
 0x23a   :  { %v1300_v38 = vmax.f32 %v1042_v37, 0.0 }
 0x23c   :  { %v1046_v40 = vpop.f32.mrb[64].mxu1  ;;  %3206 = vmatprep.mubr.msk.f32.mxu0 %vm1385_vm2, %v1300_v38 }
 0x23d   :  { %v1048_v42 = vpop.f32.mrb[65].mxu1  ;;  %1798 = vmatmul.mubr.f32.gmra.mrb[126].mxu0 %v1299_v39  ;;  %v1301_v44 = vmax.f32 %v1046_v40, 0.0 }
 0x23e   :  { %v1302_v43 = vmax.f32 %v1048_v42, 0.0 }
 0x240   :  { %v1052_v45 = vpop.f32.mrb[66].mxu1  ;;  %3207 = vmatprep.mubr.msk.f32.mxu0 %vm1385_vm2, %v1302_v43 }
 0x241   :  { %v1054_v49 = vpop.f32.mrb[67].mxu1  ;;  %1803 = vmatmul.mubr.f32.gmra.mrb[128].mxu0 %v1301_v44  ;;  %v1303_v55 = vmax.f32 %v1052_v45, 0.0 }
 0x242   :  { %v1304_v53 = vmax.f32 %v1054_v49, 0.0 }
 0x244   :  { %v1058_v61 = vpop.f32.mrb[68].mxu1  ;;  %3208 = vmatprep.mubr.msk.f32.mxu0 %vm1385_vm2, %v1304_v53 }
 0x245   :  { %v1060_v62 = vpop.f32.mrb[69].mxu1  ;;  %1808 = vmatmul.mubr.f32.gmra.mrb[130].mxu0 %v1303_v55  ;;  %v1305_v52 = vmax.f32 %v1058_v61, 0.0 }
 0x246   :  { %v1306_v63 = vmax.f32 %v1060_v62, 0.0 }
 0x248   :  { %v1064_v0 = vpop.f32.mrb[70].mxu1  ;;  %3209 = vmatprep.mubr.msk.f32.mxu0 %vm1385_vm2, %v1306_v63 }
 0x249   :  { %v1066_v1 = vpop.f32.mrb[71].mxu1  ;;  %1813 = vmatmul.mubr.f32.gmra.mrb[132].mxu0 %v1305_v52  ;;  %v1307_v2 = vmax.f32 %v1064_v0, 0.0  ;;  %v2460_v0 = vld [vmem:[%s5179_s4 + $0x68] sm:$0xff] }
 0x24a   :  { %v1308_v57 = vmax.f32 %v1066_v1, 0.0  ;;  %v2462_v1 = vld [vmem:[%s5179_s4 + $0x78] sm:$0xff] }
 0x24c   :  { %v1070_v3 = vpop.f32.mrb[72].mxu1  ;;  %3210 = vmatprep.mubr.msk.f32.mxu0 %vm1385_vm2, %v1308_v57 }
 0x24d   :  { %v1072_v4 = vpop.f32.mrb[73].mxu1  ;;  %1818 = vmatmul.mubr.f32.gmra.mrb[134].mxu0 %v1307_v2  ;;  %v1309_v6 = vmax.f32 %v1070_v3, 0.0  ;;  %v3664_v2 = vpack.c.bf16 %v2462_v1, %v2460_v0  ;;  %v2459_v3 = vld [vmem:[%s5179_s4 + $0x60] sm:$0xff] }
 0x24e   :  { %v1310_v5 = vmax.f32 %v1072_v4, 0.0  ;;  %v2461_v4 = vld [vmem:[%s5179_s4 + $0x70] sm:$0xff] }
 0x24f   :  { %3665 = vmatprep.subr.bf16.mxu1 %v3664_v2 }
 0x250   :  { %v1076_v7 = vpop.f32.mrb[74].mxu1  ;;  %3211 = vmatprep.mubr.msk.f32.mxu0 %vm1385_vm2, %v1310_v5 }
 0x251   :  { %v1078_v56 = vpop.f32.mrb[75].mxu1  ;;  %1823 = vmatmul.mubr.f32.gmra.mrb[136].mxu0 %v1309_v6  ;;  %v1311_v9 = vmax.f32 %v1076_v7, 0.0  ;;  %v3666_v6 = vpack.c.bf16 %v2461_v4, %v2459_v3 }
 0x252   :  { %v1312_v8 = vmax.f32 %v1078_v56, 0.0 }
 0x253   :  { %3667 = vmatpush1.bf16.msra.mxu1 %v3666_v6 }
 0x254   :  { %v1082_v60 = vpop.f32.mrb[76].mxu1  ;;  %3212 = vmatprep.mubr.msk.f32.mxu0 %vm1385_vm2, %v1312_v8 }
 0x255   :  { %v1084_v10 = vpop.f32.mrb[77].mxu1  ;;  %1828 = vmatmul.mubr.f32.gmra.mrb[138].mxu0 %v1311_v9  ;;  %v1313_v12 = vmax.f32 %v1082_v60, 0.0 }
 0x256   :  { %v1314_v11 = vmax.f32 %v1084_v10, 0.0 }
 0x258   :  { %v1088_v13 = vpop.f32.mrb[78].mxu1  ;;  %3213 = vmatprep.mubr.msk.f32.mxu0 %vm1385_vm2, %v1314_v11 }
 0x259   :  { %v1090_v14 = vpop.f32.mrb[79].mxu1  ;;  %1833 = vmatmul.mubr.f32.gmra.mrb[140].mxu0 %v1313_v12  ;;  %v1315_v16 = vmax.f32 %v1088_v13, 0.0 }
 0x25a   :  { %v1316_v15 = vmax.f32 %v1090_v14, 0.0 }
 0x25c   :  { %v1094_v17 = vpop.f32.mrb[80].mxu1  ;;  %3214 = vmatprep.mubr.msk.f32.mxu0 %vm1385_vm2, %v1316_v15 }
 0x25d   :  { %v1096_v58 = vpop.f32.mrb[81].mxu1  ;;  %1838 = vmatmul.mubr.f32.gmra.mrb[142].mxu0 %v1315_v16  ;;  %v1317_v19 = vmax.f32 %v1094_v17, 0.0 }
 0x25e   :  { %v1318_v18 = vmax.f32 %v1096_v58, 0.0 }
 0x260   :  { %v1100_v20 = vpop.f32.mrb[82].mxu1  ;;  %3215 = vmatprep.mubr.msk.f32.mxu0 %vm1385_vm2, %v1318_v18 }
 0x261   :  { %v1102_v24 = vpop.f32.mrb[83].mxu1  ;;  %1843 = vmatmul.mubr.f32.gmra.mrb[144].mxu0 %v1317_v19  ;;  %v1319_v29 = vmax.f32 %v1100_v20, 0.0 }
 0x262   :  { %v1320_v27 = vmax.f32 %v1102_v24, 0.0 }
 0x264   :  { %v1106_v30 = vpop.f32.mrb[84].mxu1  ;;  %3216 = vmatprep.mubr.msk.f32.mxu0 %vm1385_vm2, %v1320_v27 }
 0x265   :  { %v1108_v31 = vpop.f32.mrb[85].mxu1  ;;  %1848 = vmatmul.mubr.f32.gmra.mrb[146].mxu0 %v1319_v29  ;;  %v1321_v33 = vmax.f32 %v1106_v30, 0.0 }
 0x266   :  { %v1322_v32 = vmax.f32 %v1108_v31, 0.0 }
 0x268   :  { %v1112_v34 = vpop.f32.mrb[86].mxu1  ;;  %3217 = vmatprep.mubr.msk.f32.mxu0 %vm1385_vm2, %v1322_v32 }
 0x269   :  { %v1114_v35 = vpop.f32.mrb[87].mxu1  ;;  %1853 = vmatmul.mubr.f32.gmra.mrb[148].mxu0 %v1321_v33  ;;  %v1323_v37 = vmax.f32 %v1112_v34, 0.0 }
 0x26a   :  { %v1324_v36 = vmax.f32 %v1114_v35, 0.0 }
 0x26c   :  { %v1118_v38 = vpop.f32.mrb[88].mxu1  ;;  %3218 = vmatprep.mubr.msk.f32.mxu0 %vm1385_vm2, %v1324_v36 }
 0x26d   :  { %v1120_v39 = vpop.f32.mrb[89].mxu1  ;;  %1858 = vmatmul.mubr.f32.gmra.mrb[150].mxu0 %v1323_v37  ;;  %v1325_v42 = vmax.f32 %v1118_v38, 0.0 }
 0x26e   :  { %v1326_v40 = vmax.f32 %v1120_v39, 0.0 }
 0x270   :  { %v1124_v43 = vpop.f32.mrb[90].mxu1  ;;  %3219 = vmatprep.mubr.msk.f32.mxu0 %vm1385_vm2, %v1326_v40 }
 0x271   :  { %v1126_v44 = vpop.f32.mrb[91].mxu1  ;;  %1863 = vmatmul.mubr.f32.gmra.mrb[152].mxu0 %v1325_v42  ;;  %v1327_v46 = vmax.f32 %v1124_v43, 0.0 }
 0x272   :  { %v1328_v45 = vmax.f32 %v1126_v44, 0.0  ;;  %v2464_v44 = vld [vmem:[%s5179_s4 + $0x88] sm:$0xff] }
 0x274   :  { %v1130_v47 = vpop.f32.mrb[92].mxu1  ;;  %3220 = vmatprep.mubr.msk.f32.mxu0 %vm1385_vm2, %v1328_v45  ;;  %v2466_v45 = vld [vmem:[%s5179_s4 + $0x98] sm:$0xff] }
 0x275   :  { %v1132_v48 = vpop.f32.mrb[93].mxu1  ;;  %1868 = vmatmul.mubr.f32.gmra.mrb[154].mxu0 %v1327_v46  ;;  %v1329_v50 = vmax.f32 %v1130_v47, 0.0  ;;  %v2463_v46 = vld [vmem:[%s5179_s4 + $0x80] sm:$0xff] }
 0x276   :  { %v1330_v49 = vmax.f32 %v1132_v48, 0.0 }
 0x278   :  { %v1136_v51 = vpop.f32.mrb[94].mxu1  ;;  %3221 = vmatprep.mubr.msk.f32.mxu0 %vm1385_vm2, %v1330_v49  ;;  %v3668_v49 = vpack.c.bf16 %v2466_v45, %v2464_v44 }
 0x279   :  { %v1138_v53 = vpop.f32.mrb[95].mxu1  ;;  %1873 = vmatmul.mubr.f32.gmra.mrb[156].mxu0 %v1329_v50  ;;  %v1331_v55 = vmax.f32 %v1136_v51, 0.0  ;;  %v2465_v50 = vld [vmem:[%s5179_s4 + $0x90] sm:$0xff] }
 0x27a   :  { %v1332_v54 = vmax.f32 %v1138_v53, 0.0  ;;  %3669 = vmatprep.subr.bf16.mxu1 %v3668_v49 }
 0x27c   :  { %v1142_v61 = vpop.f32.mrb[96].mxu1  ;;  %3222 = vmatprep.mubr.msk.f32.mxu0 %vm1385_vm2, %v1332_v54 }
 0x27d   :  { %v1144_v62 = vpop.f32.mrb[97].mxu1  ;;  %1878 = vmatmul.mubr.f32.gmra.mrb[158].mxu0 %v1331_v55  ;;  %v1333_v52 = vmax.f32 %v1142_v61, 0.0  ;;  %v3670_v61 = vpack.c.bf16 %v2465_v50, %v2463_v46 }
 0x27e   :  { %v1334_v63 = vmax.f32 %v1144_v62, 0.0 }
 0x27f   :  { %3671 = vmatpush1.bf16.msra.mxu1 %v3670_v61 }
 0x280   :  { %v1148_v57 = vpop.f32.mrb[98].mxu1  ;;  %3223 = vmatprep.mubr.msk.f32.mxu0 %vm1385_vm2, %v1334_v63 }
 0x281   :  { %v1150_v5 = vpop.f32.mrb[99].mxu1  ;;  %1883 = vmatmul.mubr.f32.gmra.mrb[160].mxu0 %v1333_v52  ;;  %v1335_v56 = vmax.f32 %v1148_v57, 0.0 }
 0x282   :  { %v1336_v7 = vmax.f32 %v1150_v5, 0.0 }
 0x284   :  { %v1154_v8 = vpop.f32.mrb[100].mxu1  ;;  %3224 = vmatprep.mubr.msk.f32.mxu0 %vm1385_vm2, %v1336_v7 }
 0x285   :  { %v1156_v9 = vpop.f32.mrb[101].mxu1  ;;  %1888 = vmatmul.mubr.f32.gmra.mrb[162].mxu0 %v1335_v56  ;;  %v1337_v10 = vmax.f32 %v1154_v8, 0.0 }
 0x286   :  { %v1338_v60 = vmax.f32 %v1156_v9, 0.0 }
 0x288   :  { %v1160_v11 = vpop.f32.mrb[102].mxu1  ;;  %3225 = vmatprep.mubr.msk.f32.mxu0 %vm1385_vm2, %v1338_v60 }
 0x289   :  { %v1162_v12 = vpop.f32.mrb[103].mxu1  ;;  %1893 = vmatmul.mubr.f32.gmra.mrb[164].mxu0 %v1337_v10  ;;  %v1339_v14 = vmax.f32 %v1160_v11, 0.0 }
 0x28a   :  { %v1340_v13 = vmax.f32 %v1162_v12, 0.0 }
 0x28c   :  { %v1166_v15 = vpop.f32.mrb[104].mxu1  ;;  %3226 = vmatprep.mubr.msk.f32.mxu0 %vm1385_vm2, %v1340_v13 }
 0x28d   :  { %v1168_v16 = vpop.f32.mrb[105].mxu1  ;;  %1898 = vmatmul.mubr.f32.gmra.mrb[166].mxu0 %v1339_v14  ;;  %v1341_v58 = vmax.f32 %v1166_v15, 0.0 }
 0x28e   :  { %v1342_v17 = vmax.f32 %v1168_v16, 0.0 }
 0x290   :  { %v1172_v18 = vpop.f32.mrb[106].mxu1  ;;  %3227 = vmatprep.mubr.msk.f32.mxu0 %vm1385_vm2, %v1342_v17 }
 0x291   :  { %v1174_v19 = vpop.f32.mrb[107].mxu1  ;;  %1903 = vmatmul.mubr.f32.gmra.mrb[168].mxu0 %v1341_v58  ;;  %v1343_v21 = vmax.f32 %v1172_v18, 0.0 }
 0x292   :  { %v1344_v20 = vmax.f32 %v1174_v19, 0.0 }
 0x294   :  { %v1178_v22 = vpop.f32.mrb[108].mxu1  ;;  %v1644_v23 = vpop.f32.mrb[64].mxu0  ;;  %3228 = vmatprep.mubr.msk.f32.mxu0 %vm1385_vm2, %v1344_v20 }
 0x295   :  { %v1180_v24 = vpop.f32.mrb[109].mxu1  ;;  %v1646_v25 = vpop.f32.mrb[65].mxu0  ;;  %1908 = vmatmul.mubr.f32.gmra.mrb[170].mxu0 %v1343_v21  ;;  %v1345_v27 = vmax.f32 %v1178_v22, 0.0  ;;  %v1963_v36 = vmax.f32 %v1644_v23, 0.0 }
 0x296   :  { %v1346_v26 = vmax.f32 %v1180_v24, 0.0 }
 0x298   :  { %v1184_v28 = vpop.f32.mrb[110].mxu1  ;;  %v1649_v29 = vpop.f32.mrb[66].mxu0  ;;  %3229 = vmatprep.mubr.msk.f32.mxu0 %vm1385_vm2, %v1346_v26 }
 0x299   :  { %v1186_v30 = vpop.f32.mrb[111].mxu1  ;;  %v1651_v31 = vpop.f32.mrb[67].mxu0  ;;  %1913 = vmatmul.mubr.f32.gmra.mrb[172].mxu0 %v1345_v27  ;;  %v1347_v33 = vmax.f32 %v1184_v28, 0.0  ;;  %v1964_v51 = vmax.f32 %v1649_v29, 0.0 }
 0x29a   :  { %v1348_v32 = vmax.f32 %v1186_v30, 0.0 }
 0x29c   :  { %v1190_v34 = vpop.f32.mrb[112].mxu1  ;;  %v1654_v35 = vpop.f32.mrb[68].mxu0  ;;  %3230 = vmatprep.mubr.msk.f32.mxu0 %vm1385_vm2, %v1348_v32 }
 0x29d   :  { %v1965_v37 = vmax.f32 %v1654_v35, 0.0  ;;  %v1192_v38 = vpop.f32.mrb[113].mxu1  ;;  %v1656_v39 = vpop.f32.mrb[69].mxu0  ;;  %1918 = vmatmul.mubr.f32.gmra.mrb[174].mxu0 %v1347_v33  ;;  %v1349_v42 = vmax.f32 %v1190_v34, 0.0 }
 0x29e   :  { %v1350_v40 = vmax.f32 %v1192_v38, 0.0 }
 0x29f   :  { %v2027_v43 = vadd.f32 %v1965_v37, %v1963_v36 }
 0x2a0   :  { %v1196_v47 = vpop.f32.mrb[114].mxu1  ;;  %v1659_v48 = vpop.f32.mrb[70].mxu0  ;;  %3231 = vmatprep.mubr.msk.f32.mxu0 %vm1385_vm2, %v1350_v40 }
 0x2a1   :  { %v1966_v53 = vmax.f32 %v1659_v48, 0.0  ;;  %v1198_v54 = vpop.f32.mrb[115].mxu1  ;;  %v1661_v55 = vpop.f32.mrb[71].mxu0  ;;  %1923 = vmatmul.mubr.f32.gmra.mrb[176].mxu0 %v1349_v42  ;;  %v1351_v63 = vmax.f32 %v1196_v47, 0.0  ;;  %v2468_v47 = vld [vmem:[%s5179_s4 + $0xa8] sm:$0xff]  ;;  %v2470_v48 = vld [vmem:[%s5179_s4 + $0xb8] sm:$0xff] }
 0x2a2   :  { %v1352_v62 = vmax.f32 %v1198_v54, 0.0  ;;  %v3672_v50 = vpack.c.bf16 %v2470_v48, %v2468_v47 }
 0x2a3   :  { %v2028_v52 = vadd.f32 %v1966_v53, %v1964_v51  ;;  %v2467_v51 = vld [vmem:[%s5179_s4 + $0xa0] sm:$0xff]  ;;  %v2469_v53 = vld [vmem:[%s5179_s4 + $0xb0] sm:$0xff] }
 0x2a4   :  { %v1202_v0 = vpop.f32.mrb[116].mxu1  ;;  %v1664_v1 = vpop.f32.mrb[72].mxu0  ;;  %3232 = vmatprep.mubr.msk.f32.mxu0 %vm1385_vm2, %v1352_v62  ;;  %v3674_v55 = vpack.c.bf16 %v2469_v53, %v2467_v51  ;;  %3673 = vmatprep.subr.bf16.mxu1 %v3672_v50 }
 0x2a5   :  { %v1204_v57 = vpop.f32.mrb[117].mxu1  ;;  %v1666_v2 = vpop.f32.mrb[73].mxu0  ;;  %1928 = vmatmul.mubr.f32.gmra.mrb[178].mxu0 %v1351_v63  ;;  %v1353_v4 = vmax.f32 %v1202_v0, 0.0  ;;  %v1967_v11 = vmax.f32 %v1664_v1, 0.0 }
 0x2a6   :  { %v1354_v3 = vmax.f32 %v1204_v57, 0.0  ;;  %3675 = vmatpush1.bf16.msra.mxu1 %v3674_v55 }
 0x2a8   :  { %v1208_v5 = vpop.f32.mrb[118].mxu1  ;;  %v1669_v6 = vpop.f32.mrb[74].mxu0  ;;  %3233 = vmatprep.mubr.msk.f32.mxu0 %vm1385_vm2, %v1354_v3 }
 0x2a9   :  { %v1210_v7 = vpop.f32.mrb[119].mxu1  ;;  %v1671_v56 = vpop.f32.mrb[75].mxu0  ;;  %1933 = vmatmul.mubr.f32.gmra.mrb[180].mxu0 %v1353_v4  ;;  %v1355_v9 = vmax.f32 %v1208_v5, 0.0  ;;  %v1968_v19 = vmax.f32 %v1669_v6, 0.0 }
 0x2aa   :  { %v1356_v8 = vmax.f32 %v1210_v7, 0.0 }
 0x2ac   :  { %v1214_v60 = vpop.f32.mrb[120].mxu1  ;;  %v1674_v10 = vpop.f32.mrb[76].mxu0  ;;  %3234 = vmatprep.mubr.msk.f32.mxu0 %vm1385_vm2, %v1356_v8 }
 0x2ad   :  { %v1969_v12 = vmax.f32 %v1674_v10, 0.0  ;;  %v1216_v13 = vpop.f32.mrb[121].mxu1  ;;  %v1676_v14 = vpop.f32.mrb[77].mxu0  ;;  %1938 = vmatmul.mubr.f32.gmra.mrb[182].mxu0 %v1355_v9  ;;  %v1357_v16 = vmax.f32 %v1214_v60, 0.0 }
 0x2ae   :  { %v1358_v15 = vmax.f32 %v1216_v13, 0.0 }
 0x2af   :  { %v2043_v17 = vadd.f32 %v1969_v12, %v1967_v11 }
 0x2b0   :  { %v1220_v58 = vpop.f32.mrb[122].mxu1  ;;  %v1679_v18 = vpop.f32.mrb[78].mxu0  ;;  %3235 = vmatprep.mubr.msk.f32.mxu0 %vm1385_vm2, %v1358_v15 }
 0x2b1   :  { %v2059_v20 = vadd.f32 %v2043_v17, %v2027_v43  ;;  %v1970_v21 = vmax.f32 %v1679_v18, 0.0  ;;  %v1222_v22 = vpop.f32.mrb[123].mxu1  ;;  %v1681_v23 = vpop.f32.mrb[79].mxu0  ;;  %1943 = vmatmul.mubr.f32.gmra.mrb[184].mxu0 %v1357_v16  ;;  %v1359_v25 = vmax.f32 %v1220_v58, 0.0 }
 0x2b2   :  { %v1360_v24 = vmax.f32 %v1222_v22, 0.0 }
 0x2b3   :  { %v2044_v26 = vadd.f32 %v1970_v21, %v1968_v19  ;;  %v2083_v57 = vrot.slane %v2059_v20, 1  ;;  %v2115_v5 = vrot.slane %v2059_v20, 2 }
 0x2b4   :  { %v1226_v27 = vpop.f32.mrb[124].mxu1  ;;  %v1684_v28 = vpop.f32.mrb[80].mxu0  ;;  %3236 = vmatprep.mubr.msk.f32.mxu0 %vm1385_vm2, %v1360_v24 }
 0x2b5   :  { %v2060_v29 = vadd.f32 %v2044_v26, %v2028_v52  ;;  %v1228_v30 = vpop.f32.mrb[125].mxu1  ;;  %v1686_v31 = vpop.f32.mrb[81].mxu0  ;;  %1948 = vmatmul.mubr.f32.gmra.mrb[186].mxu0 %v1359_v25  ;;  %v1361_v34 = vmax.f32 %v1226_v27, 0.0  ;;  %v1971_v44 = vmax.f32 %v1684_v28, 0.0  ;;  %v2099_v4 = vadd.f32 %v2083_v57, %v2059_v20 }
 0x2b6   :  { %v1362_v32 = vmax.f32 %v1228_v30, 0.0 }
 0x2b7   :  { %v2155_v33 = vrot.slane %v2060_v29, 1  ;;  %v2131_v9 = vadd.f32 %v2115_v5, %v2099_v4  ;;  %v2107_v16 = vmul.f32 0.125, %v2099_v4  ;;  %v2195_v58 = vrot.slane %v2060_v29, 2 }
 0x2b8   :  { %v1232_v35 = vpop.f32.mrb[126].mxu1  ;;  %v1689_v36 = vpop.f32.mrb[82].mxu0  ;;  %3237 = vmatprep.mubr.msk.f32.mxu0 %vm1385_vm2, %v1362_v32 }
 0x2b9   :  { %v2171_v37 = vadd.f32 %v2155_v33, %v2059_v20  ;;  %v1234_v38 = vpop.f32.mrb[127].mxu1  ;;  %v1691_v39 = vpop.f32.mrb[83].mxu0  ;;  %1953 = vmatmul.mubr.f32.gmra.mrb[188].mxu0 %v1361_v34  ;;  %v1363_v42 = vmax.f32 %v1232_v35, 0.0  ;;  %v1972_v61 = vmax.f32 %v1689_v36, 0.0  ;;  %v2187_v10 = vadd.f32 %v2155_v33, %v2060_v29 }
 0x2ba   :  { %v1364_v40 = vmax.f32 %v1234_v38, 0.0  ;;  %v2139_v17 = vmul.f32 0.083333336, %v2131_v9  ;;  %v2265_v28 = vrot.slane %v2107_v16, 1  ;;  %v2303_v31 = vrot.slane %v2107_v16, 4 }
 0x2bb   :  { %v2179_v21 = vmul.f32 0.125, %v2171_v37  ;;  %v2211_v22 = vadd.f32 %v2195_v58, %v2187_v10  ;;  %v4639_v20 = vmul.f32 0.125, %v2187_v10 }
 0x2bc   :  { %v1694_v43 = vpop.f32.mrb[84].mxu0  ;;  %3238 = vmatprep.mubr.msk.f32.mxu0 %vm1385_vm2, %v1364_v40  ;;  %v2288_v30 = vrot.slane %v2139_v17, 2  ;;  %v2318_v32 = vrot.slane %v2139_v17, 5 }
 0x2bd   :  { %v1973_v45 = vmax.f32 %v1694_v43, 0.0  ;;  %v1696_v46 = vpop.f32.mrb[85].mxu0  ;;  %1958 = vmatmul.mubr.f32.gmra.mrb[190].mxu0 %v1363_v42  ;;  %v2219_v29 = vmul.f32 0.083333336, %v2211_v22  ;;  %v2341_v36 = vrot.slane %v2179_v21, 7  ;;  %v2387_v37 = vrot.slane %v4639_v20, 2 }
 0x2be   :  { %v2417_v38 = vrot.slane %v4639_v20, 5  ;;  %v2432_v46 = vrot.slane %v4639_v20, 6  ;;  %3575 = vmatprep.mubr.msk.f32.mxu0 %vm3794_vm10, %v3792_v41 }
 0x2bf   :  { %v2029_v49 = vadd.f32 %v1973_v45, %v1971_v44  ;;  %v2402_v9 = vrot.slane %v2219_v29, 3 }
 0x2c0   :  { %v1699_v54 = vpop.f32.mrb[86].mxu0 }
 0x2c1   :  { %v1974_v62 = vmax.f32 %v1699_v54, 0.0  ;;  %v1701_v63 = vpop.f32.mrb[87].mxu0 }
 0x2c3   :  { %v2030_v52 = vadd.f32 %v1974_v62, %v1972_v61 }
 0x2c4   :  { %v1704_v0 = vpop.f32.mrb[88].mxu0 }
 0x2c5   :  { %v1706_v1 = vpop.f32.mrb[89].mxu0  ;;  %v1975_v7 = vmax.f32 %v1704_v0, 0.0 }
 0x2c8   :  { %v1709_v2 = vpop.f32.mrb[90].mxu0 }
 0x2c9   :  { %v1711_v3 = vpop.f32.mrb[91].mxu0  ;;  %v1976_v12 = vmax.f32 %v1709_v2, 0.0  ;;  %v2472_v2 = vld [vmem:[%s5179_s4 + $0xc8] sm:$0xff] }
 0x2ca   :  { %v2474_v3 = vld [vmem:[%s5179_s4 + $0xd8] sm:$0xff] }
 0x2cb   :  { %v3676_v10 = vpack.c.bf16 %v2474_v3, %v2472_v2 }
 0x2cc   :  { %v1714_v6 = vpop.f32.mrb[92].mxu0 }
 0x2cd   :  { %v1977_v56 = vmax.f32 %v1714_v6, 0.0  ;;  %v1716_v8 = vpop.f32.mrb[93].mxu0  ;;  %3677 = vmatprep.subr.bf16.mxu1 %v3676_v10 }
 0x2cf   :  { %v2045_v60 = vadd.f32 %v1977_v56, %v1975_v7 }
 0x2d0   :  { %v1719_v11 = vpop.f32.mrb[94].mxu0 }
 0x2d1   :  { %v2061_v13 = vadd.f32 %v2045_v60, %v2029_v49  ;;  %v1978_v14 = vmax.f32 %v1719_v11, 0.0  ;;  %v1721_v15 = vpop.f32.mrb[95].mxu0  ;;  %v2471_v11 = vld [vmem:[%s5179_s4 + $0xc0] sm:$0xff] }
 0x2d3   :  { %v2084_v18 = vrot.slane %v2061_v13, 1  ;;  %v2046_v19 = vadd.f32 %v1978_v14, %v1976_v12  ;;  %v2116_v25 = vrot.slane %v2061_v13, 2  ;;  %v2473_v12 = vld [vmem:[%s5179_s4 + $0xd0] sm:$0xff] }
 0x2d4   :  { %v1724_v23 = vpop.f32.mrb[96].mxu0  ;;  %v3678_v17 = vpack.c.bf16 %v2473_v12, %v2471_v11 }
 0x2d5   :  { %v2100_v24 = vadd.f32 %v2084_v18, %v2061_v13  ;;  %v2062_v26 = vadd.f32 %v2046_v19, %v2030_v52  ;;  %v1726_v27 = vpop.f32.mrb[97].mxu0  ;;  %v1979_v62 = vmax.f32 %v1724_v23, 0.0 }
 0x2d6   :  { %3679 = vmatpush1.bf16.msra.mxu1 %v3678_v17 }
 0x2d7   :  { %v2108_v33 = vmul.f32 0.125, %v2100_v24  ;;  %v2132_v34 = vadd.f32 %v2116_v25, %v2100_v24  ;;  %v2156_v35 = vrot.slane %v2062_v26, 1  ;;  %v2196_v48 = vrot.slane %v2062_v26, 2 }
 0x2d8   :  { %v1729_v39 = vpop.f32.mrb[98].mxu0 }
 0x2d9   :  { %v2140_v40 = vmul.f32 0.083333336, %v2132_v34  ;;  %v2243_v42 = vrot.slane %v2108_v33, 7  ;;  %v2304_v43 = vrot.slane %v2108_v33, 3  ;;  %v2172_v44 = vadd.f32 %v2156_v35, %v2061_v13  ;;  %v1731_v45 = vpop.f32.mrb[99].mxu0 }
 0x2da   :  { %v2188_v47 = vadd.f32 %v2156_v35, %v2062_v26  ;;  %v4645_v49 = vsel %vm2244_vm3, %v2108_v33, %v2265_v28  ;;  %v1980_v18 = vmax.f32 %v1729_v39, 0.0 }
 0x2db   :  { %v2289_v50 = vrot.slane %v2140_v40, 1  ;;  %v2319_v51 = vrot.slane %v2140_v40, 4  ;;  %v2180_v53 = vmul.f32 0.125, %v2172_v44  ;;  %v4648_v54 = vsel %vm2244_vm3, %v2243_v42, %v2107_v16 }
 0x2dc   :  { %v2212_v55 = vadd.f32 %v2196_v48, %v2188_v47  ;;  %v2228_v61 = vmul.f32 0.125, %v2188_v47  ;;  %v1734_v63 = vpop.f32.mrb[100].mxu0  ;;  %v4651_v52 = vsel %vm2244_vm3, %v2304_v43, %v2303_v31 }
 0x2dd   :  { %v2342_v0 = vrot.slane %v2180_v53, 6  ;;  %v1981_v1 = vmax.f32 %v1734_v63, 0.0  ;;  %v1736_v57 = vpop.f32.mrb[101].mxu0  ;;  %v4660_v4 = vsel %vm2244_vm3, %v2289_v50, %v2288_v30  ;;  %v4663_v5 = vsel %vm2244_vm3, %v2319_v51, %v2318_v32 }
 0x2de   :  { %v2220_v6 = vmul.f32 0.083333336, %v2212_v55  ;;  %v2388_v7 = vrot.slane %v2228_v61, 1  ;;  %v2418_v56 = vrot.slane %v2228_v61, 4  ;;  %v2433_v8 = vrot.slane %v2228_v61, 5 }
 0x2df   :  { %v2031_v60 = vadd.f32 %v1981_v1, %v1979_v62  ;;  %v4672_v13 = vsel %vm2244_vm3, %v2342_v0, %v2341_v36 }
 0x2e0   :  { %v2364_v14 = vrot.slane %v2220_v6, 7  ;;  %v2403_v15 = vrot.slane %v2220_v6, 2  ;;  %v1739_v16 = vpop.f32.mrb[102].mxu0  ;;  %v4675_v58 = vsel %vm2244_vm3, %v2388_v7, %v2387_v37  ;;  %v4678_v22 = vsel %vm2244_vm3, %v2418_v56, %v2417_v38 }
 0x2e1   :  { %v1982_v19 = vmax.f32 %v1739_v16, 0.0  ;;  %v1741_v21 = vpop.f32.mrb[103].mxu0  ;;  %v4681_v20 = vsel %vm2244_vm3, %v2433_v8, %v2432_v46  ;;  %v2476_v8 = vld [vmem:[%s5179_s4 + $0xe8] sm:$0xff] }
 0x2e2   :  { %v4684_v23 = vsel %vm2244_vm3, %v2364_v14, %v2219_v29  ;;  %v4687_v24 = vsel %vm2244_vm3, %v2403_v15, %v2402_v9  ;;  %v2478_v9 = vld [vmem:[%s5179_s4 + $0xf8] sm:$0xff] }
 0x2e3   :  { %v2032_v25 = vadd.f32 %v1982_v19, %v1980_v18  ;;  %v3680_v11 = vpack.c.bf16 %v2478_v9, %v2476_v8 }
 0x2e4   :  { %v1744_v26 = vpop.f32.mrb[104].mxu0 }
 0x2e5   :  { %v1746_v27 = vpop.f32.mrb[105].mxu0  ;;  %v1983_v32 = vmax.f32 %v1744_v26, 0.0  ;;  %3681 = vmatprep.subr.bf16.mxu1 %v3680_v11 }
 0x2e8   :  { %v1749_v28 = vpop.f32.mrb[106].mxu0 }
 0x2e9   :  { %v1751_v30 = vpop.f32.mrb[107].mxu0  ;;  %v1984_v37 = vmax.f32 %v1749_v28, 0.0  ;;  %v2475_v28 = vld [vmem:[%s5179_s4 + $0xe0] sm:$0xff] }
 0x2ea   :  { %v2477_v30 = vld [vmem:[%s5179_s4 + $0xf0] sm:$0xff] }
 0x2ec   :  { %v1754_v31 = vpop.f32.mrb[108].mxu0 }
 0x2ed   :  { %v1985_v33 = vmax.f32 %v1754_v31, 0.0  ;;  %v1756_v34 = vpop.f32.mrb[109].mxu0 }
 0x2ef   :  { %v2047_v35 = vadd.f32 %v1985_v33, %v1983_v32  ;;  %v3682_v32 = vpack.c.bf16 %v2477_v30, %v2475_v28 }
 0x2f0   :  { %v1759_v36 = vpop.f32.mrb[110].mxu0 }
 0x2f1   :  { %v2063_v38 = vadd.f32 %v2047_v35, %v2031_v60  ;;  %v1986_v39 = vmax.f32 %v1759_v36, 0.0  ;;  %v1761_v40 = vpop.f32.mrb[111].mxu0  ;;  %3683 = vmatpush1.bf16.msra.mxu1 %v3682_v32 }
 0x2f2   :  { %3684 = vmatprep.subr.bf16.mxu1 %v3793_v59 }
 0x2f3   :  { %v2085_v29 = vrot.slane %v2063_v38, 1  ;;  %v2048_v42 = vadd.f32 %v1986_v39, %v1984_v37  ;;  %v2117_v45 = vrot.slane %v2063_v38, 2 }
 0x2f4   :  { %v1764_v43 = vpop.f32.mrb[112].mxu0 }
 0x2f5   :  { %v2101_v44 = vadd.f32 %v2085_v29, %v2063_v38  ;;  %v2064_v46 = vadd.f32 %v2048_v42, %v2032_v25  ;;  %v1766_v47 = vpop.f32.mrb[113].mxu0  ;;  %v1987_v60 = vmax.f32 %v1764_v43, 0.0 }
 0x2f7   :  { %v2109_v48 = vmul.f32 0.125, %v2101_v44  ;;  %v2133_v50 = vadd.f32 %v2117_v45, %v2101_v44  ;;  %v2157_v51 = vrot.slane %v2064_v46, 1  ;;  %v2197_v53 = vrot.slane %v2064_v46, 2 }
 0x2f8   :  { %v1769_v55 = vpop.f32.mrb[114].mxu0 }
 0x2f9   :  { %v2141_v61 = vmul.f32 0.083333336, %v2133_v50  ;;  %v2246_v62 = vrot.slane %v2109_v48, 6  ;;  %v2173_v63 = vadd.f32 %v2157_v51, %v2063_v38  ;;  %v2189_v0 = vadd.f32 %v2157_v51, %v2064_v46  ;;  %v1771_v1 = vpop.f32.mrb[115].mxu0 }
 0x2fa   :  { %v2267_v57 = vrot.slane %v2109_v48, 7  ;;  %v2306_v2 = vrot.slane %v2109_v48, 2  ;;  %v1988_v35 = vmax.f32 %v1769_v55, 0.0 }
 0x2fb   :  { %v2321_v3 = vrot.slane %v2141_v61, 3  ;;  %v2181_v6 = vmul.f32 0.125, %v2173_v63  ;;  %v2213_v7 = vadd.f32 %v2197_v53, %v2189_v0  ;;  %v2229_v56 = vmul.f32 0.125, %v2189_v0 }
 0x2fc   :  { %v1774_v10 = vpop.f32.mrb[116].mxu0  ;;  %v4697_v12 = vsel %vm2247_vm4, %v2246_v62, %v4648_v54  ;;  %v4701_v14 = vsel %vm2247_vm4, %v2267_v57, %v4645_v49  ;;  %v4705_v25 = vsel %vm2247_vm4, %v2141_v61, %v4660_v4  ;;  %v4709_v26 = vsel %vm2247_vm4, %v2306_v2, %v4651_v52 }
 0x2fd   :  { %v2221_v15 = vmul.f32 0.083333336, %v2213_v7  ;;  %v2344_v16 = vrot.slane %v2181_v6, 5  ;;  %v2420_v17 = vrot.slane %v2229_v56, 3  ;;  %v2435_v18 = vrot.slane %v2229_v56, 4  ;;  %v1776_v19 = vpop.f32.mrb[117].mxu0 }
 0x2fe   :  { %v1989_v21 = vmax.f32 %v1774_v10, 0.0  ;;  %v4713_v54 = vsel %vm2247_vm4, %v2321_v3, %v4663_v5  ;;  %v4727_v52 = vsel %vm2247_vm4, %v2229_v56, %v4675_v58 }
 0x2ff   :  { %v2366_v49 = vrot.slane %v2221_v15, 6  ;;  %v2405_v27 = vrot.slane %v2221_v15, 1  ;;  %v4723_v4 = vsel %vm2247_vm4, %v2344_v16, %v4672_v13  ;;  %v4731_v33 = vsel %vm2247_vm4, %v2420_v17, %v4678_v22 }
 0x300   :  { %v2033_v5 = vadd.f32 %v1989_v21, %v1987_v60  ;;  %v1779_v31 = vpop.f32.mrb[118].mxu0  ;;  %v4735_v34 = vsel %vm2247_vm4, %v2435_v18, %v4681_v20 }
 0x301   :  { %v1990_v36 = vmax.f32 %v1779_v31, 0.0  ;;  %v1781_v37 = vpop.f32.mrb[119].mxu0  ;;  %v4739_v13 = vsel %vm2247_vm4, %v2366_v49, %v4684_v23  ;;  %v4743_v58 = vsel %vm2247_vm4, %v2405_v27, %v4687_v24 }
 0x303   :  { %v2034_v38 = vadd.f32 %v1990_v36, %v1988_v35 }
 0x304   :  { %v1784_v22 = vpop.f32.mrb[120].mxu0 }
 0x305   :  { %v1786_v39 = vpop.f32.mrb[121].mxu0  ;;  %v1991_v42 = vmax.f32 %v1784_v22, 0.0 }
 0x308   :  { %v1789_v40 = vpop.f32.mrb[122].mxu0 }
 0x309   :  { %v1791_v20 = vpop.f32.mrb[123].mxu0  ;;  %v1992_v23 = vmax.f32 %v1789_v40, 0.0 }
 0x30c   :  { %v1794_v29 = vpop.f32.mrb[124].mxu0 }
 0x30d   :  { %v1993_v43 = vmax.f32 %v1794_v29, 0.0  ;;  %v1796_v44 = vpop.f32.mrb[125].mxu0 }
 0x30f   :  { %v2049_v45 = vadd.f32 %v1993_v43, %v1991_v42 }
 0x310   :  { %v1799_v46 = vpop.f32.mrb[126].mxu0 }
 0x311   :  { %v2065_v47 = vadd.f32 %v2049_v45, %v2033_v5  ;;  %v1994_v48 = vmax.f32 %v1799_v46, 0.0  ;;  %v1801_v50 = vpop.f32.mrb[127].mxu0 }
 0x313   :  { %v2086_v24 = vrot.slane %v2065_v47, 1  ;;  %v2050_v51 = vadd.f32 %v1994_v48, %v1992_v23  ;;  %v2118_v61 = vrot.slane %v2065_v47, 2 }
 0x314   :  { %v1804_v53 = vpop.f32.mrb[128].mxu0 }
 0x315   :  { %v2102_v55 = vadd.f32 %v2086_v24, %v2065_v47  ;;  %v2066_v62 = vadd.f32 %v2050_v51, %v2034_v38  ;;  %v1806_v63 = vpop.f32.mrb[129].mxu0  ;;  %v1995_v60 = vmax.f32 %v1804_v53, 0.0 }
 0x317   :  { %v2110_v0 = vmul.f32 0.125, %v2102_v55  ;;  %v2134_v1 = vadd.f32 %v2118_v61, %v2102_v55  ;;  %v2158_v57 = vrot.slane %v2066_v62, 1  ;;  %v2198_v2 = vrot.slane %v2066_v62, 2 }
 0x318   :  { %v1809_v3 = vpop.f32.mrb[130].mxu0 }
 0x319   :  { %v2142_v6 = vmul.f32 0.083333336, %v2134_v1  ;;  %v2249_v7 = vrot.slane %v2110_v0, 5  ;;  %v2174_v56 = vadd.f32 %v2158_v57, %v2065_v47  ;;  %v2190_v8 = vadd.f32 %v2158_v57, %v2066_v62  ;;  %v1811_v9 = vpop.f32.mrb[131].mxu0 }
 0x31a   :  { %v2269_v10 = vrot.slane %v2110_v0, 6  ;;  %v2308_v11 = vrot.slane %v2110_v0, 1  ;;  %v1996_v29 = vmax.f32 %v1809_v3, 0.0 }
 0x31b   :  { %v2182_v15 = vmul.f32 0.125, %v2174_v56  ;;  %v2214_v16 = vadd.f32 %v2198_v2, %v2190_v8  ;;  %v2230_v17 = vmul.f32 0.125, %v2190_v8  ;;  %v4748_v18 = vsel %vm2250_vm5, %v2249_v7, %v4697_v12 }
 0x31c   :  { %v1814_v19 = vpop.f32.mrb[132].mxu0  ;;  %v4752_v21 = vsel %vm2250_vm5, %v2269_v10, %v4701_v14  ;;  %v2292_v49 = vrot.slane %v2142_v6, 7  ;;  %v2309_v27 = vsel %vm2250_vm5, %v2308_v11, %v4709_v26  ;;  %v2323_v28 = vrot.slane %v2142_v6, 2 }
 0x31d   :  { %v2222_v30 = vmul.f32 0.083333336, %v2214_v16  ;;  %v2346_v5 = vrot.slane %v2182_v15, 4  ;;  %v1997_v31 = vmax.f32 %v1814_v19, 0.0  ;;  %v1816_v32 = vpop.f32.mrb[133].mxu0  ;;  %v2391_v35 = vrot.slane %v2230_v17, 7 }
 0x31e   :  { %v4758_v36 = vsel %vm2250_vm5, %v2292_v49, %v4705_v25  ;;  %v4762_v12 = vsel %vm2250_vm5, %v2323_v28, %v4713_v54  ;;  %v2422_v14 = vrot.slane %v2230_v17, 2  ;;  %v2437_v37 = vrot.slane %v2230_v17, 3 }
 0x31f   :  { %v2368_v38 = vrot.slane %v2222_v30, 5  ;;  %v2035_v22 = vadd.f32 %v1997_v31, %v1995_v60  ;;  %v4766_v26 = vsel %vm2250_vm5, %v2346_v5, %v4723_v4  ;;  %v4770_v39 = vsel %vm2250_vm5, %v2391_v35, %v4727_v52 }
 0x320   :  { %v1819_v40 = vpop.f32.mrb[134].mxu0  ;;  %v4774_v25 = vsel %vm2250_vm5, %v2222_v30, %v4743_v58  ;;  %v4778_v54 = vsel %vm2250_vm5, %v2422_v14, %v4731_v33  ;;  %v4782_v20 = vsel %vm2250_vm5, %v2437_v37, %v4735_v34 }
 0x321   :  { %v1998_v4 = vmax.f32 %v1819_v40, 0.0  ;;  %v1821_v42 = vpop.f32.mrb[135].mxu0  ;;  %v4786_v52 = vsel %vm2250_vm5, %v2368_v38, %v4739_v13 }
 0x323   :  { %v2036_v43 = vadd.f32 %v1998_v4, %v1996_v29 }
 0x324   :  { %v1824_v44 = vpop.f32.mrb[136].mxu0 }
 0x325   :  { %v1826_v45 = vpop.f32.mrb[137].mxu0  ;;  %v1999_v47 = vmax.f32 %v1824_v44, 0.0 }
 0x328   :  { %v1829_v58 = vpop.f32.mrb[138].mxu0 }
 0x329   :  { %v1831_v46 = vpop.f32.mrb[139].mxu0  ;;  %v2000_v34 = vmax.f32 %v1829_v58, 0.0 }
 0x32c   :  { %v1834_v23 = vpop.f32.mrb[140].mxu0 }
 0x32d   :  { %v2001_v33 = vmax.f32 %v1834_v23, 0.0  ;;  %v1836_v48 = vpop.f32.mrb[141].mxu0 }
 0x32f   :  { %v2051_v50 = vadd.f32 %v2001_v33, %v1999_v47 }
 0x330   :  { %v1839_v24 = vpop.f32.mrb[142].mxu0 }
 0x331   :  { %v2067_v51 = vadd.f32 %v2051_v50, %v2035_v22  ;;  %v2002_v53 = vmax.f32 %v1839_v24, 0.0  ;;  %v1841_v55 = vpop.f32.mrb[143].mxu0 }
 0x333   :  { %v2087_v61 = vrot.slane %v2067_v51, 1  ;;  %v2052_v62 = vadd.f32 %v2002_v53, %v2000_v34  ;;  %v2119_v0 = vrot.slane %v2067_v51, 2 }
 0x334   :  { %v1844_v63 = vpop.f32.mrb[144].mxu0 }
 0x335   :  { %v2103_v13 = vadd.f32 %v2087_v61, %v2067_v51  ;;  %v2068_v1 = vadd.f32 %v2052_v62, %v2036_v43  ;;  %v1846_v57 = vpop.f32.mrb[145].mxu0  ;;  %v2003_v30 = vmax.f32 %v1844_v63, 0.0 }
 0x337   :  { %v2111_v2 = vmul.f32 0.125, %v2103_v13  ;;  %v2135_v3 = vadd.f32 %v2119_v0, %v2103_v13  ;;  %v2159_v6 = vrot.slane %v2068_v1, 1  ;;  %v2199_v9 = vrot.slane %v2068_v1, 2 }
 0x338   :  { %v1849_v7 = vpop.f32.mrb[146].mxu0 }
 0x339   :  { %v2175_v56 = vadd.f32 %v2159_v6, %v2067_v51  ;;  %v2191_v8 = vadd.f32 %v2159_v6, %v2068_v1  ;;  %v1851_v60 = vpop.f32.mrb[147].mxu0  ;;  %v2252_v10 = vrot.slane %v2111_v2, 4  ;;  %v2271_v11 = vrot.slane %v2111_v2, 5 }
 0x33a   :  { %v2143_v15 = vmul.f32 0.083333336, %v2135_v3  ;;  %v4789_v16 = vsel %vm2253_vm6, %v2111_v2, %v2309_v27  ;;  %v2004_v46 = vmax.f32 %v1849_v7, 0.0 }
 0x33b   :  { %v2183_v17 = vmul.f32 0.125, %v2175_v56  ;;  %v2215_v19 = vadd.f32 %v2199_v9, %v2191_v8  ;;  %v2231_v49 = vmul.f32 0.125, %v2191_v8  ;;  %v4793_v28 = vsel %vm2253_vm6, %v2252_v10, %v4748_v18 }
 0x33c   :  { %v1854_v5 = vpop.f32.mrb[148].mxu0  ;;  %v4797_v31 = vsel %vm2253_vm6, %v2271_v11, %v4752_v21  ;;  %v2294_v32 = vrot.slane %v2143_v15, 6  ;;  %v2325_v35 = vrot.slane %v2143_v15, 1 }
 0x33d   :  { %v2223_v14 = vmul.f32 0.083333336, %v2215_v19  ;;  %v2348_v37 = vrot.slane %v2183_v17, 3  ;;  %v2005_v38 = vmax.f32 %v1854_v5, 0.0  ;;  %v1856_v27 = vpop.f32.mrb[149].mxu0  ;;  %v2393_v22 = vrot.slane %v2231_v49, 6 }
 0x33e   :  { %v4801_v40 = vsel %vm2253_vm6, %v2294_v32, %v4758_v36  ;;  %v2326_v18 = vsel %vm2253_vm6, %v2325_v35, %v4762_v12  ;;  %v2424_v29 = vrot.slane %v2231_v49, 1  ;;  %v2439_v4 = vrot.slane %v2231_v49, 2 }
 0x33f   :  { %v2037_v42 = vadd.f32 %v2005_v38, %v2003_v30  ;;  %v4807_v21 = vsel %vm2253_vm6, %v2348_v37, %v4766_v26  ;;  %v2370_v43 = vrot.slane %v2223_v14, 4  ;;  %v4811_v44 = vsel %vm2253_vm6, %v2393_v22, %v4770_v39 }
 0x340   :  { %v1859_v45 = vpop.f32.mrb[150].mxu0  ;;  %v2408_v58 = vrot.slane %v2223_v14, 7  ;;  %v2425_v36 = vsel %vm2253_vm6, %v2424_v29, %v4778_v54  ;;  %v4817_v12 = vsel %vm2253_vm6, %v2439_v4, %v4782_v20 }
 0x341   :  { %v2006_v23 = vmax.f32 %v1859_v45, 0.0  ;;  %v1861_v47 = vpop.f32.mrb[151].mxu0  ;;  %v4821_v26 = vsel %vm2253_vm6, %v2370_v43, %v4786_v52 }
 0x342   :  { %v4825_v39 = vsel %vm2253_vm6, %v2408_v58, %v4774_v25 }
 0x343   :  { %v2038_v33 = vadd.f32 %v2006_v23, %v2004_v46 }
 0x344   :  { %v1864_v48 = vpop.f32.mrb[152].mxu0 }
 0x345   :  { %v1866_v50 = vpop.f32.mrb[153].mxu0  ;;  %v2007_v51 = vmax.f32 %v1864_v48, 0.0 }
 0x348   :  { %v1869_v24 = vpop.f32.mrb[154].mxu0 }
 0x349   :  { %v1871_v54 = vpop.f32.mrb[155].mxu0  ;;  %v2008_v62 = vmax.f32 %v1869_v24, 0.0 }
 0x34c   :  { %v1874_v34 = vpop.f32.mrb[156].mxu0 }
 0x34d   :  { %v2009_v20 = vmax.f32 %v1874_v34, 0.0  ;;  %v1876_v53 = vpop.f32.mrb[157].mxu0 }
 0x34f   :  { %v2053_v55 = vadd.f32 %v2009_v20, %v2007_v51 }
 0x350   :  { %v1879_v61 = vpop.f32.mrb[158].mxu0 }
 0x351   :  { %v2069_v63 = vadd.f32 %v2053_v55, %v2037_v42  ;;  %v2010_v13 = vmax.f32 %v1879_v61, 0.0  ;;  %v1881_v52 = vpop.f32.mrb[159].mxu0 }
 0x353   :  { %v2088_v0 = vrot.slane %v2069_v63, 1  ;;  %v2054_v1 = vadd.f32 %v2010_v13, %v2008_v62  ;;  %v2120_v2 = vrot.slane %v2069_v63, 2 }
 0x354   :  { %v1884_v57 = vpop.f32.mrb[160].mxu0 }
 0x355   :  { %v2104_v25 = vadd.f32 %v2088_v0, %v2069_v63  ;;  %v2070_v3 = vadd.f32 %v2054_v1, %v2038_v33  ;;  %v1886_v6 = vpop.f32.mrb[161].mxu0  ;;  %v2011_v19 = vmax.f32 %v1884_v57, 0.0 }
 0x357   :  { %v2112_v7 = vmul.f32 0.125, %v2104_v25  ;;  %v2160_v56 = vrot.slane %v2070_v3, 1  ;;  %v2136_v8 = vadd.f32 %v2120_v2, %v2104_v25  ;;  %v2200_v11 = vrot.slane %v2070_v3, 2 }
 0x358   :  { %v1889_v9 = vpop.f32.mrb[162].mxu0 }
 0x359   :  { %v2176_v60 = vadd.f32 %v2160_v56, %v2069_v63  ;;  %v2192_v10 = vadd.f32 %v2160_v56, %v2070_v3  ;;  %v1891_v15 = vpop.f32.mrb[163].mxu0  ;;  %v2255_v17 = vrot.slane %v2112_v7, 3  ;;  %v2273_v49 = vrot.slane %v2112_v7, 4 }
 0x35a   :  { %v2144_v30 = vmul.f32 0.083333336, %v2136_v8  ;;  %v2311_v5 = vrot.slane %v2112_v7, 7  ;;  %v2012_v24 = vmax.f32 %v1889_v9, 0.0 }
 0x35b   :  { %v2216_v32 = vadd.f32 %v2200_v11, %v2192_v10  ;;  %v2232_v35 = vmul.f32 0.125, %v2192_v10  ;;  %v4829_v14 = vsel %vm2256_vm7, %v2255_v17, %v4793_v28  ;;  %v2184_v37 = vmul.f32 0.125, %v2176_v60 }
 0x35c   :  { %v1894_v38 = vpop.f32.mrb[164].mxu0  ;;  %v4833_v27 = vsel %vm2256_vm7, %v2273_v49, %v4797_v31  ;;  %v2296_v22 = vrot.slane %v2144_v30, 5  ;;  %v4837_v29 = vsel %vm2256_vm7, %v2311_v5, %v4789_v16  ;;  %v4840_v4 = vsel %vm2256_vm7, %v2144_v30, %v2326_v18 }
 0x35d   :  { %v2224_v42 = vmul.f32 0.083333336, %v2216_v32  ;;  %v2013_v43 = vmax.f32 %v1894_v38, 0.0  ;;  %v1896_v45 = vpop.f32.mrb[165].mxu0  ;;  %v2350_v58 = vrot.slane %v2184_v37, 2  ;;  %v2395_v28 = vrot.slane %v2232_v35, 5 }
 0x35e   :  { %v4844_v46 = vsel %vm2256_vm7, %v2296_v22, %v4801_v40  ;;  %v4847_v31 = vsel %vm2256_vm7, %v2232_v35, %v2425_v36  ;;  %v2441_v23 = vrot.slane %v2232_v35, 1 }
 0x35f   :  { %v2039_v47 = vadd.f32 %v2013_v43, %v2011_v19  ;;  %v4851_v16 = vsel %vm2256_vm7, %v2350_v58, %v4807_v21  ;;  %v2372_v18 = vrot.slane %v2224_v42, 3  ;;  %v4855_v33 = vsel %vm2256_vm7, %v2395_v28, %v4811_v44 }
 0x360   :  { %v1899_v48 = vpop.f32.mrb[166].mxu0  ;;  %v2410_v50 = vrot.slane %v2224_v42, 6  ;;  %v2442_v40 = vsel %vm2256_vm7, %v2441_v23, %v4817_v12 }
 0x361   :  { %v2014_v54 = vmax.f32 %v1899_v48, 0.0  ;;  %v1901_v36 = vpop.f32.mrb[167].mxu0  ;;  %v4861_v34 = vsel %vm2256_vm7, %v2372_v18, %v4821_v26 }
 0x362   :  { %v4865_v21 = vsel %vm2256_vm7, %v2410_v50, %v4825_v39 }
 0x363   :  { %v2040_v51 = vadd.f32 %v2014_v54, %v2012_v24 }
 0x364   :  { %v1904_v20 = vpop.f32.mrb[168].mxu0 }
 0x365   :  { %v1906_v44 = vpop.f32.mrb[169].mxu0  ;;  %v2015_v62 = vmax.f32 %v1904_v20, 0.0 }
 0x368   :  { %v1909_v53 = vpop.f32.mrb[170].mxu0 }
 0x369   :  { %v1911_v55 = vpop.f32.mrb[171].mxu0  ;;  %v2016_v0 = vmax.f32 %v1909_v53, 0.0 }
 0x36c   :  { %v1914_v61 = vpop.f32.mrb[172].mxu0 }
 0x36d   :  { %v2017_v63 = vmax.f32 %v1914_v61, 0.0  ;;  %v1916_v12 = vpop.f32.mrb[173].mxu0 }
 0x36f   :  { %v2055_v13 = vadd.f32 %v2017_v63, %v2015_v62 }
 0x370   :  { %v1919_v52 = vpop.f32.mrb[174].mxu0 }
 0x371   :  { %v2071_v1 = vadd.f32 %v2055_v13, %v2039_v47  ;;  %v2018_v57 = vmax.f32 %v1919_v52, 0.0  ;;  %v1921_v26 = vpop.f32.mrb[175].mxu0 }
 0x373   :  { %v2089_v25 = vrot.slane %v2071_v1, 1  ;;  %v2056_v2 = vadd.f32 %v2018_v57, %v2016_v0  ;;  %v2121_v6 = vrot.slane %v2071_v1, 2 }
 0x374   :  { %v1924_v3 = vpop.f32.mrb[176].mxu0 }
 0x375   :  { %v2105_v39 = vadd.f32 %v2089_v25, %v2071_v1  ;;  %v2072_v7 = vadd.f32 %v2056_v2, %v2040_v51  ;;  %v1926_v56 = vpop.f32.mrb[177].mxu0  ;;  %v2019_v30 = vmax.f32 %v1924_v3, 0.0 }
 0x377   :  { %v2113_v8 = vmul.f32 0.125, %v2105_v39  ;;  %v2161_v9 = vrot.slane %v2072_v7, 1  ;;  %v2137_v60 = vadd.f32 %v2121_v6, %v2105_v39  ;;  %v2201_v15 = vrot.slane %v2072_v7, 2 }
 0x378   :  { %v1929_v10 = vpop.f32.mrb[178].mxu0 }
 0x379   :  { %v2193_v11 = vadd.f32 %v2161_v9, %v2072_v7  ;;  %v1931_v17 = vpop.f32.mrb[179].mxu0  ;;  %v2258_v19 = vrot.slane %v2113_v8, 2  ;;  %v2275_v49 = vrot.slane %v2113_v8, 3  ;;  %v2145_v5 = vmul.f32 0.083333336, %v2137_v60  ;;  %v2633_v60 = vld [vmem:[%s5180_s5 + $0x8] sm:$0xff] }
 0x37a   :  { %v2313_v32 = vrot.slane %v2113_v8, 6  ;;  %v2177_v35 = vadd.f32 %v2161_v9, %v2071_v1  ;;  %v2632_v9 = vld [vmem:[%s5180_s5] sm:$0xff] }
 0x37b   :  { %v2233_v37 = vmul.f32 0.125, %v2193_v11  ;;  %v4869_v38 = vsel %vm2259_vm8, %v2258_v19, %v4829_v14  ;;  %v4873_v22 = vsel %vm2259_vm8, %v2275_v49, %v4833_v27  ;;  %v2217_v42 = vadd.f32 %v2201_v15, %v2193_v11 }
 0x37c   :  { %v1934_v43 = vpop.f32.mrb[180].mxu0  ;;  %v2298_v45 = vrot.slane %v2145_v5, 4  ;;  %v4877_v58 = vsel %vm2259_vm8, %v2313_v32, %v4837_v29  ;;  %v2328_v28 = vrot.slane %v2145_v5, 7  ;;  %v2185_v23 = vmul.f32 0.125, %v2177_v35 }
 0x37d   :  { %v2021_v47 = vmax.f32 %v1934_v43, 0.0  ;;  %v1936_v18 = vpop.f32.mrb[181].mxu0  ;;  %v2225_v48 = vmul.f32 0.083333336, %v2217_v42  ;;  %v2397_v50 = vrot.slane %v2233_v37, 4  ;;  %v2427_v24 = vrot.slane %v2233_v37, 7 }
 0x37e   :  { %v4881_v14 = vsel %vm2259_vm8, %v2298_v45, %v4844_v46  ;;  %v4885_v27 = vsel %vm2259_vm8, %v2328_v28, %v4840_v4  ;;  %v2352_v54 = vrot.slane %v2185_v23, 1  ;;  %v4888_v36 = vsel %vm2259_vm8, %v2233_v37, %v2442_v40  ;;  %v2634_v42 = vld [vmem:[%s5180_s5 + $0x10] sm:$0xff]  ;;  %v2635_v43 = vld [vmem:[%s5180_s5 + $0x18] sm:$0xff] }
 0x37f   :  { %v2041_v29 = vadd.f32 %v2021_v47, %v2019_v30  ;;  %v2374_v51 = vrot.slane %v2225_v48, 2  ;;  %v4892_v20 = vsel %vm2259_vm8, %v2397_v50, %v4855_v33  ;;  %v2412_v44 = vrot.slane %v2225_v48, 5 }
 0x380   :  { %v1939_v53 = vpop.f32.mrb[182].mxu0  ;;  %v2353_v46 = vsel %vm2259_vm8, %v2352_v54, %v4851_v16  ;;  %v4898_v55 = vsel %vm2259_vm8, %v2427_v24, %v4847_v31  ;;  %v2020_v4 = vmax.f32 %v1929_v10, 0.0  ;;  %v3685_v17 = vpack.c.bf16 %v2633_v60, %v2632_v9  ;;  %v2816_v9 = vld [vmem:[%s5181_s6] sm:$0xff]  ;;  %v2817_v60 = vld [vmem:[%s5181_s6 + $0x8] sm:$0xff] }
 0x381   :  { %v2022_v61 = vmax.f32 %v1939_v53, 0.0  ;;  %v1941_v62 = vpop.f32.mrb[183].mxu0  ;;  %v4902_v40 = vsel %vm2259_vm8, %v2374_v51, %v4861_v34  ;;  %v4906_v33 = vsel %vm2259_vm8, %v2412_v44, %v4865_v21  ;;  %v2637_v53 = vld [vmem:[%s5180_s5 + $0x28] sm:$0xff] }
 0x383   :  { %v2042_v63 = vadd.f32 %v2022_v61, %v2020_v4 }
 0x384   :  { %v1944_v12 = vpop.f32.mrb[184].mxu0 }
 0x385   :  { %v1946_v13 = vpop.f32.mrb[185].mxu0  ;;  %v2023_v1 = vmax.f32 %v1944_v12, 0.0 }
 0x388   :  { %v1949_v52 = vpop.f32.mrb[186].mxu0 }
 0x389   :  { %v1951_v16 = vpop.f32.mrb[187].mxu0  ;;  %v2024_v2 = vmax.f32 %v1949_v52, 0.0 }
 0x38c   :  { %v1954_v0 = vpop.f32.mrb[188].mxu0 }
 0x38d   :  { %v2025_v31 = vmax.f32 %v1954_v0, 0.0  ;;  %v1956_v57 = vpop.f32.mrb[189].mxu0  ;;  %v2642_v0 = vld [vmem:[%s5180_s5 + $0x50] sm:$0xff] }
 0x38e   :  { %v2644_v57 = vld [vmem:[%s5180_s5 + $0x60] sm:$0xff] }
 0x38f   :  { %v2057_v26 = vadd.f32 %v2025_v31, %v2023_v1  ;;  %v2643_v1 = vld [vmem:[%s5180_s5 + $0x58] sm:$0xff] }
 0x390   :  { %v1959_v25 = vpop.f32.mrb[190].mxu0  ;;  %v3700_v31 = vpack.c.bf16 %v2643_v1, %v2642_v0 }
 0x391   :  { %v2073_v3 = vadd.f32 %v2057_v26, %v2041_v29  ;;  %v2026_v39 = vmax.f32 %v1959_v25, 0.0  ;;  %v1961_v34 = vpop.f32.mrb[191].mxu0  ;;  %v3688_v29 = vpack.c.bf16 %v2635_v43, %v2634_v42  ;;  %v2645_v26 = vld [vmem:[%s5180_s5 + $0x68] sm:$0xff]  ;;  %v2820_v43 = vld [vmem:[%s5181_s6 + $0x20] sm:$0xff] }
 0x392   :  { %v3703_v25 = vpack.c.bf16 %v2645_v26, %v2644_v57  ;;  %v2648_v34 = vld [vmem:[%s5180_s5 + $0x80] sm:$0xff]  ;;  %v2831_v57 = vld [vmem:[%s5181_s6 + $0x78] sm:$0xff] }
 0x393   :  { %v2090_v6 = vrot.slane %v2073_v3, 1  ;;  %v2058_v7 = vadd.f32 %v2026_v39, %v2024_v2  ;;  %v2122_v8 = vrot.slane %v2073_v3, 2  ;;  %v2646_v2 = vld [vmem:[%s5180_s5 + $0x70] sm:$0xff] }
 0x395   :  { %v2106_v56 = vadd.f32 %v2090_v6, %v2073_v3  ;;  %v2074_v21 = vadd.f32 %v2058_v7, %v2042_v63  ;;  %v2649_v6 = vld [vmem:[%s5180_s5 + $0x88] sm:$0xff] }
 0x396   :  { %v3709_v7 = vpack.c.bf16 %v2649_v6, %v2648_v34 }
 0x397   :  { %v2114_v10 = vmul.f32 0.125, %v2106_v56  ;;  %v2138_v11 = vadd.f32 %v2122_v8, %v2106_v56  ;;  %v2162_v15 = vrot.slane %v2074_v21, 1  ;;  %v2202_v32 = vrot.slane %v2074_v21, 2  ;;  %v2650_v56 = vld [vmem:[%s5180_s5 + $0x90] sm:$0xff] }
 0x399   :  { %v2261_v19 = vrot.slane %v2114_v10, 1  ;;  %v2277_v49 = vrot.slane %v2114_v10, 2  ;;  %v2146_v30 = vmul.f32 0.083333336, %v2138_v11  ;;  %v2315_v5 = vrot.slane %v2114_v10, 5 }
 0x39a   :  { %v2178_v35 = vadd.f32 %v2162_v15, %v2073_v3  ;;  %v2194_v37 = vadd.f32 %v2162_v15, %v2074_v21  ;;  %v2647_v3 = vld [vmem:[%s5180_s5 + $0x78] sm:$0xff] }
 0x39b   :  { %v2263_v45 = vsel %vm2262_vm9, %v2261_v19, %v4869_v38  ;;  %v2278_v28 = vsel %vm2262_vm9, %v2277_v49, %v4873_v22  ;;  %v2300_v23 = vrot.slane %v2146_v30, 3  ;;  %v2316_v47 = vsel %vm2262_vm9, %v2315_v5, %v4877_v58  ;;  %v2636_v58 = vld [vmem:[%s5180_s5 + $0x20] sm:$0xff]  ;;  %v2651_v21 = vld [vmem:[%s5180_s5 + $0x98] sm:$0xff]  ;;  %v2818_v49 = vld [vmem:[%s5181_s6 + $0x10] sm:$0xff] }
 0x39c   :  { %2544 = vmatmul.mubr.f32.vlgmr.msra.gmra.mrb[128].mxu1 %v2263_v45  ;;  %v2330_v18 = vrot.slane %v2146_v30, 6  ;;  %v2186_v48 = vmul.f32 0.125, %v2178_v35  ;;  %v2218_v50 = vadd.f32 %v2202_v32, %v2194_v37  ;;  %v2234_v24 = vmul.f32 0.125, %v2194_v37  ;;  %v2819_v30 = vld [vmem:[%s5181_s6 + $0x18] sm:$0xff]  ;;  %v2821_v45 = vld [vmem:[%s5181_s6 + $0x28] sm:$0xff] }
 0x39d   :  { %2549 = vmatprep.mubr.f32.mxu1 %v3792_v41  ;;  %v2301_v54 = vsel %vm2262_vm9, %v2300_v23, %v4881_v14  ;;  %3686 = vmatpush1.bf16.msra.mxu1 %v3685_v17  ;;  %v3691_v12 = vpack.c.bf16 %v2637_v53, %v2636_v58  ;;  %v3706_v39 = vpack.c.bf16 %v2647_v3, %v2646_v2  ;;  %v2825_v58 = vld [vmem:[%s5181_s6 + $0x48] sm:$0xff] }
 0x39e   :  { %v2331_v38 = vsel %vm2262_vm9, %v2330_v18, %v4885_v27  ;;  %v2354_v22 = vsel %vm2262_vm9, %v2186_v48, %v2353_v46  ;;  %v2226_v51 = vmul.f32 0.083333336, %v2218_v50  ;;  %v2399_v44 = vrot.slane %v2234_v24, 3  ;;  %3687 = vmatprep.subr.bf16.mxu1 %v3793_v59  ;;  %v2822_v50 = vld [vmem:[%s5181_s6 + $0x30] sm:$0xff] }
 0x39f   :  { %v2429_v14 = vrot.slane %v2234_v24, 6  ;;  %v2444_v4 = vrot.slane %v2234_v24, 7  ;;  %v3712_v8 = vpack.c.bf16 %v2651_v21, %v2650_v56  ;;  %v3715_v17 = vpack.c.bf16 %v2817_v60, %v2816_v9  ;;  %v2823_v24 = vld [vmem:[%s5181_s6 + $0x38] sm:$0xff] }
 0x3a0   :  { %2550 = vmatmul.mubr.f32.gmra.mrb[130].mxu1 %v2278_v28  ;;  %v2376_v61 = vrot.slane %v2226_v51, 1  ;;  %v2400_v27 = vsel %vm2262_vm9, %v2399_v44, %v4892_v20  ;;  %v2414_v46 = vrot.slane %v2226_v51, 4  ;;  %v2638_v20 = vld [vmem:[%s5180_s5 + $0x30] sm:$0xff]  ;;  %v3718_v37 = vpack.c.bf16 %v2819_v30, %v2818_v49  ;;  %v2824_v44 = vld [vmem:[%s5181_s6 + $0x40] sm:$0xff]  ;;  %v2975_v49 = vld [vmem:[%s5182_s7 + $0x8] sm:$0xff] }
 0x3a1   :  { %2555 = vmatprep.mubr.f32.mxu1 %v3792_v41  ;;  %v2430_v62 = vsel %vm2262_vm9, %v2429_v14, %v4898_v55  ;;  %v2445_v63 = vsel %vm2262_vm9, %v2444_v4, %v4888_v36  ;;  %3689 = vmatpush1.bf16.msra.mxu1 %v3688_v29  ;;  %v2639_v55 = vld [vmem:[%s5180_s5 + $0x38] sm:$0xff]  ;;  %v3721_v18 = vpack.c.bf16 %v2821_v45, %v2820_v43  ;;  %v2980_v43 = vld [vmem:[%s5182_s7 + $0x30] sm:$0xff] }
 0x3a2   :  { %v2377_v13 = vsel %vm2262_vm9, %v2376_v61, %v4902_v40  ;;  %v2415_v52 = vsel %vm2262_vm9, %v2414_v46, %v4906_v33  ;;  %3690 = vmatprep.subr.bf16.mxu1 %v3793_v59  ;;  %v3694_v36 = vpack.c.bf16 %v2639_v55, %v2638_v20  ;;  %v2640_v40 = vld [vmem:[%s5180_s5 + $0x40] sm:$0xff]  ;;  %v2641_v33 = vld [vmem:[%s5180_s5 + $0x48] sm:$0xff]  ;;  %v3727_v61 = vpack.c.bf16 %v2825_v58, %v2824_v44  ;;  %v2826_v46 = vld [vmem:[%s5181_s6 + $0x50] sm:$0xff] }
 0x3a3   :  { %v3697_v16 = vpack.c.bf16 %v2641_v33, %v2640_v40  ;;  %v2828_v55 = vld [vmem:[%s5181_s6 + $0x60] sm:$0xff] }
 0x3a4   :  { %2556 = vmatmul.mubr.f32.gmra.mrb[132].mxu1 %v2301_v54 }
 0x3a5   :  { %2561 = vmatprep.mubr.f32.mxu1 %v3792_v41  ;;  %3692 = vmatpush1.bf16.msra.mxu1 %v3691_v12 }
 0x3a6   :  { %3693 = vmatprep.subr.bf16.mxu1 %v3793_v59 }
 0x3a8   :  { %2562 = vmatmul.mubr.f32.gmra.mrb[134].mxu1 %v2316_v47 }
 0x3a9   :  { %2567 = vmatprep.mubr.f32.mxu1 %v3792_v41  ;;  %3695 = vmatpush1.bf16.msra.mxu1 %v3694_v36  ;;  %v2829_v36 = vld [vmem:[%s5181_s6 + $0x68] sm:$0xff] }
 0x3aa   :  { %3696 = vmatprep.subr.bf16.mxu1 %v3793_v59  ;;  %v3733_v0 = vpack.c.bf16 %v2829_v36, %v2828_v55 }
 0x3ac   :  { %2568 = vmatmul.mubr.f32.gmra.mrb[136].mxu1 %v2331_v38 }
 0x3ad   :  { %2573 = vmatprep.mubr.f32.mxu1 %v3792_v41  ;;  %3698 = vmatpush1.bf16.msra.mxu1 %v3697_v16 }
 0x3ae   :  { %3699 = vmatprep.subr.bf16.mxu1 %v3793_v59 }
 0x3b0   :  { %2574 = vmatmul.mubr.f32.gmra.mrb[138].mxu1 %v2354_v22  ;;  %v3724_v22 = vpack.c.bf16 %v2823_v24, %v2822_v50  ;;  %v2984_v50 = vld [vmem:[%s5182_s7 + $0x50] sm:$0xff]  ;;  %v2985_v24 = vld [vmem:[%s5182_s7 + $0x58] sm:$0xff] }
 0x3b1   :  { %2579 = vmatprep.mubr.f32.mxu1 %v3792_v41  ;;  %3701 = vmatpush1.bf16.msra.mxu1 %v3700_v31  ;;  %v2830_v31 = vld [vmem:[%s5181_s6 + $0x70] sm:$0xff] }
 0x3b2   :  { %3702 = vmatprep.subr.bf16.mxu1 %v3793_v59  ;;  %v3736_v3 = vpack.c.bf16 %v2831_v57, %v2830_v31 }
 0x3b4   :  { %2580 = vmatmul.mubr.f32.gmra.mrb[140].mxu1 %v2377_v13 }
 0x3b5   :  { %2585 = vmatprep.mubr.f32.mxu1 %v3792_v41  ;;  %3704 = vmatpush1.bf16.msra.mxu1 %v3703_v25 }
 0x3b6   :  { %3705 = vmatprep.subr.bf16.mxu1 %v3793_v59 }
 0x3b8   :  { %2586 = vmatmul.mubr.f32.gmra.mrb[142].mxu1 %v2400_v27 }
 0x3b9   :  { %2591 = vmatprep.mubr.f32.mxu1 %v3792_v41  ;;  %3707 = vmatpush1.bf16.msra.mxu1 %v3706_v39 }
 0x3ba   :  { %3708 = vmatprep.subr.bf16.mxu1 %v3793_v59 }
 0x3bc   :  { %2592 = vmatmul.mubr.f32.gmra.mrb[144].mxu1 %v2415_v52 }
 0x3bd   :  { %2597 = vmatprep.mubr.f32.mxu1 %v3792_v41  ;;  %3710 = vmatpush1.bf16.msra.mxu1 %v3709_v7 }
 0x3be   :  { %3711 = vmatprep.subr.bf16.mxu1 %v3793_v59 }
 0x3c0   :  { %2598 = vmatmul.mubr.f32.gmra.mrb[146].mxu1 %v2430_v62  ;;  %v2827_v62 = vld [vmem:[%s5181_s6 + $0x58] sm:$0xff] }
 0x3c1   :  { %2603 = vmatprep.mubr.f32.mxu1 %v3792_v41  ;;  %3713 = vmatpush1.bf16.msra.mxu1 %v3712_v8  ;;  %v3730_v52 = vpack.c.bf16 %v2827_v62, %v2826_v46 }
 0x3c2   :  { %3714 = vmatprep.subr.bf16.mxu1 %v3793_v59 }
 0x3c4   :  { %2604 = vmatmul.mubr.f32.gmra.mrb[148].mxu1 %v2445_v63 }
 0x46f   :  { %v2545_v10 = vpop.f32.mrb[128].mxu1 }
 0x470   :  { %v2547_v11 = vpop.f32.mrb[129].mxu1  ;;  %v2610_v19 = vmax.f32 %v2545_v10, 0.0 }
 0x471   :  { %v2611_v15 = vmax.f32 %v2547_v11, 0.0 }
 0x473   :  { %v2551_v5 = vpop.f32.mrb[130].mxu1  ;;  %3239 = vmatprep.mubr.msk.f32.mxu1 %vm1385_vm2, %v2611_v15 }
 0x474   :  { %v2553_v32 = vpop.f32.mrb[131].mxu1  ;;  %2750 = vmatmul.mubr.f32.vlgmr.msra.gmra.mrb[150].mxu1 %v2610_v19  ;;  %v2612_v42 = vmax.f32 %v2551_v5, 0.0  ;;  %v2974_v19 = vld [vmem:[%s5182_s7] sm:$0xff]  ;;  %v2976_v5 = vld [vmem:[%s5182_s7 + $0x10] sm:$0xff] }
 0x475   :  { %v2613_v35 = vmax.f32 %v2553_v32, 0.0  ;;  %3716 = vmatpush3.bf16.msra.mxu1 %v3715_v17  ;;  %v3739_v30 = vpack.c.bf16 %v2975_v49, %v2974_v19  ;;  %v2977_v32 = vld [vmem:[%s5182_s7 + $0x18] sm:$0xff] }
 0x476   :  { %3717 = vmatprep.subr.bf16.mxu1 %v3793_v59 }
 0x477   :  { %v2557_v28 = vpop.f32.mrb[132].mxu1  ;;  %3240 = vmatprep.mubr.msk.f32.mxu1 %vm1385_vm2, %v2613_v35  ;;  %3740 = vmatpush3.bf16.msra.mxu0 %v3739_v30  ;;  %v3742_v35 = vpack.c.bf16 %v2977_v32, %v2976_v5 }
 0x478   :  { %v2559_v23 = vpop.f32.mrb[133].mxu1  ;;  %2755 = vmatmul.mubr.f32.gmra.mrb[152].mxu1 %v2612_v42  ;;  %v2614_v48 = vmax.f32 %v2557_v28, 0.0  ;;  %3741 = vmatprep.subr.bf16.mxu0 %v3793_v59  ;;  %v2979_v42 = vld [vmem:[%s5182_s7 + $0x28] sm:$0xff]  ;;  %v2981_v28 = vld [vmem:[%s5182_s7 + $0x38] sm:$0xff] }
 0x479   :  { %v2615_v47 = vmax.f32 %v2559_v23, 0.0  ;;  %3719 = vmatpush3.bf16.msra.mxu1 %v3718_v37  ;;  %v2978_v37 = vld [vmem:[%s5182_s7 + $0x20] sm:$0xff]  ;;  %v3748_v23 = vpack.c.bf16 %v2981_v28, %v2980_v43 }
 0x47a   :  { %3720 = vmatprep.subr.bf16.mxu1 %v3793_v59  ;;  %v3745_v45 = vpack.c.bf16 %v2979_v42, %v2978_v37 }
 0x47b   :  { %v2563_v54 = vpop.f32.mrb[134].mxu1  ;;  %3241 = vmatprep.mubr.msk.f32.mxu1 %vm1385_vm2, %v2615_v47  ;;  %3743 = vmatpush3.bf16.msra.mxu0 %v3742_v35  ;;  %v2982_v47 = vld [vmem:[%s5182_s7 + $0x40] sm:$0xff] }
 0x47c   :  { %v2565_v29 = vpop.f32.mrb[135].mxu1  ;;  %2760 = vmatmul.mubr.f32.gmra.mrb[154].mxu1 %v2614_v48  ;;  %v2616_v51 = vmax.f32 %v2563_v54, 0.0  ;;  %3744 = vmatprep.subr.bf16.mxu0 %v3793_v59  ;;  %v3754_v54 = vpack.c.bf16 %v2985_v24, %v2984_v50 }
 0x47d   :  { %v2617_v38 = vmax.f32 %v2565_v29, 0.0  ;;  %3722 = vmatpush3.bf16.msra.mxu1 %v3721_v18  ;;  %v2983_v18 = vld [vmem:[%s5182_s7 + $0x48] sm:$0xff]  ;;  %v2986_v29 = vld [vmem:[%s5182_s7 + $0x60] sm:$0xff] }
 0x47e   :  { %3723 = vmatprep.subr.bf16.mxu1 %v3793_v59  ;;  %v3751_v48 = vpack.c.bf16 %v2983_v18, %v2982_v47 }
 0x47f   :  { %v2569_v53 = vpop.f32.mrb[136].mxu1  ;;  %3242 = vmatprep.mubr.msk.f32.mxu1 %vm1385_vm2, %v2617_v38  ;;  %3746 = vmatpush3.bf16.msra.mxu0 %v3745_v45  ;;  %v2987_v38 = vld [vmem:[%s5182_s7 + $0x68] sm:$0xff] }
 0x480   :  { %v2571_v14 = vpop.f32.mrb[137].mxu1  ;;  %2765 = vmatmul.mubr.f32.gmra.mrb[156].mxu1 %v2616_v51  ;;  %v2618_v27 = vmax.f32 %v2569_v53, 0.0  ;;  %3747 = vmatprep.subr.bf16.mxu0 %v3793_v59 }
 0x481   :  { %v2619_v4 = vmax.f32 %v2571_v14, 0.0  ;;  %3725 = vmatpush3.bf16.msra.mxu1 %v3724_v22  ;;  %v3757_v22 = vpack.c.bf16 %v2987_v38, %v2986_v29 }
 0x482   :  { %3726 = vmatprep.subr.bf16.mxu1 %v3793_v59 }
 0x483   :  { %v2575_v63 = vpop.f32.mrb[138].mxu1  ;;  %3243 = vmatprep.mubr.msk.f32.mxu1 %vm1385_vm2, %v2619_v4  ;;  %3749 = vmatpush3.bf16.msra.mxu0 %v3748_v23 }
 0x484   :  { %v2577_v12 = vpop.f32.mrb[139].mxu1  ;;  %2770 = vmatmul.mubr.f32.gmra.mrb[158].mxu1 %v2618_v27  ;;  %v2620_v20 = vmax.f32 %v2575_v63, 0.0  ;;  %3750 = vmatprep.subr.bf16.mxu0 %v3793_v59 }
 0x485   :  { %v2621_v13 = vmax.f32 %v2577_v12, 0.0  ;;  %3728 = vmatpush3.bf16.msra.mxu1 %v3727_v61 }
 0x486   :  { %3729 = vmatprep.subr.bf16.mxu1 %v3793_v59 }
 0x487   :  { %v2581_v40 = vpop.f32.mrb[140].mxu1  ;;  %3244 = vmatprep.mubr.msk.f32.mxu1 %vm1385_vm2, %v2621_v13  ;;  %3752 = vmatpush3.bf16.msra.mxu0 %v3751_v48 }
 0x488   :  { %v2583_v33 = vpop.f32.mrb[141].mxu1  ;;  %2775 = vmatmul.mubr.f32.gmra.mrb[160].mxu1 %v2620_v20  ;;  %v2622_v1 = vmax.f32 %v2581_v40, 0.0  ;;  %3753 = vmatprep.subr.bf16.mxu0 %v3793_v59 }
 0x489   :  { %v2623_v16 = vmax.f32 %v2583_v33, 0.0  ;;  %3731 = vmatpush3.bf16.msra.mxu1 %v3730_v52 }
 0x48a   :  { %3732 = vmatprep.subr.bf16.mxu1 %v3793_v59 }
 0x48b   :  { %v2587_v26 = vpop.f32.mrb[142].mxu1  ;;  %3245 = vmatprep.mubr.msk.f32.mxu1 %vm1385_vm2, %v2623_v16  ;;  %3755 = vmatpush3.bf16.msra.mxu0 %v3754_v54 }
 0x48c   :  { %v2589_v25 = vpop.f32.mrb[143].mxu1  ;;  %2780 = vmatmul.mubr.f32.gmra.mrb[162].mxu1 %v2622_v1  ;;  %v2624_v39 = vmax.f32 %v2587_v26, 0.0  ;;  %3756 = vmatprep.subr.bf16.mxu0 %v3793_v59 }
 0x48d   :  { %v2625_v2 = vmax.f32 %v2589_v25, 0.0  ;;  %3734 = vmatpush3.bf16.msra.mxu1 %v3733_v0 }
 0x48e   :  { %3735 = vmatprep.subr.bf16.mxu1 %v3793_v59 }
 0x48f   :  { %v2593_v34 = vpop.f32.mrb[144].mxu1  ;;  %3246 = vmatprep.mubr.msk.f32.mxu1 %vm1385_vm2, %v2625_v2  ;;  %3758 = vmatpush3.bf16.msra.mxu0 %v3757_v22 }
 0x490   :  { %v2595_v6 = vpop.f32.mrb[145].mxu1  ;;  %2785 = vmatmul.mubr.f32.gmra.mrb[164].mxu1 %v2624_v39  ;;  %v2626_v56 = vmax.f32 %v2593_v34, 0.0  ;;  %3759 = vmatprep.subr.bf16.mxu0 %v3793_v59 }
 0x491   :  { %v2627_v7 = vmax.f32 %v2595_v6, 0.0  ;;  %3737 = vmatpush3.bf16.msra.mxu1 %v3736_v3 }
 0x493   :  { %v2599_v21 = vpop.f32.mrb[146].mxu1  ;;  %3247 = vmatprep.mubr.msk.f32.mxu1 %vm1385_vm2, %v2627_v7 }
 0x494   :  { %v2601_v8 = vpop.f32.mrb[147].mxu1  ;;  %2790 = vmatmul.mubr.f32.gmra.mrb[166].mxu1 %v2626_v56  ;;  %v2628_v60 = vmax.f32 %v2599_v21, 0.0  ;;  %v2988_v56 = vld [vmem:[%s5182_s7 + $0x70] sm:$0xff]  ;;  %v2989_v21 = vld [vmem:[%s5182_s7 + $0x78] sm:$0xff] }
 0x495   :  { %v2629_v9 = vmax.f32 %v2601_v8, 0.0  ;;  %v3760_v8 = vpack.c.bf16 %v2989_v21, %v2988_v56 }
 0x497   :  { %v2605_v10 = vpop.f32.mrb[148].mxu1  ;;  %3248 = vmatprep.mubr.msk.f32.mxu1 %vm1385_vm2, %v2629_v9  ;;  %3761 = vmatpush3.bf16.msra.mxu0 %v3760_v8 }
 0x498   :  { %v2607_v11 = vpop.f32.mrb[149].mxu1  ;;  %2795 = vmatmul.mubr.f32.gmra.mrb[168].mxu1 %v2628_v60  ;;  %v2630_v17 = vmax.f32 %v2605_v10, 0.0 }
 0x499   :  { %v2631_v15 = vmax.f32 %v2607_v11, 0.0 }
 0x49b   :  { %3249 = vmatprep.mubr.msk.f32.mxu1 %vm1385_vm2, %v2631_v15 }
 0x49c   :  { %2800 = vmatmul.mubr.f32.gmra.mrb[170].mxu1 %v2630_v17 }
 0x49d   :  { %3510 = vmatprep.mubr.msk.f32.mxu1 %vm3794_vm10, %v3792_v41 }
 0x547   :  { %v2751_v51 = vpop.f32.mrb[150].mxu1 }
 0x548   :  { %v2805_v44 = vmax.f32 %v2751_v51, 0.0  ;;  %v2753_v58 = vpop.f32.mrb[151].mxu1 }
 0x54a   :  { %3511 = vmatmul.mubr.f32.vlgmr.msra.gmra.mrb[172].mxu1 %v2805_v44 }
 0x54b   :  { %v2756_v53 = vpop.f32.mrb[152].mxu1  ;;  %3513 = vmatprep.mubr.msk.f32.mxu1 %vm3794_vm10, %v3792_v41 }
 0x54c   :  { %v2806_v14 = vmax.f32 %v2756_v53, 0.0  ;;  %v2758_v4 = vpop.f32.mrb[153].mxu1 }
 0x54e   :  { %3514 = vmatmul.mubr.f32.gmra.mrb[174].mxu1 %v2806_v14 }
 0x54f   :  { %v2761_v61 = vpop.f32.mrb[154].mxu1  ;;  %3516 = vmatprep.mubr.msk.f32.mxu1 %vm3794_vm10, %v3792_v41 }
 0x550   :  { %v2807_v27 = vmax.f32 %v2761_v61, 0.0  ;;  %v2763_v46 = vpop.f32.mrb[155].mxu1 }
 0x552   :  { %3517 = vmatmul.mubr.f32.gmra.mrb[176].mxu1 %v2807_v27 }
 0x553   :  { %v2766_v62 = vpop.f32.mrb[156].mxu1  ;;  %3519 = vmatprep.mubr.msk.f32.mxu1 %vm3794_vm10, %v3792_v41 }
 0x554   :  { %v2808_v59 = vmax.f32 %v2766_v62, 0.0  ;;  %v2768_v63 = vpop.f32.mrb[157].mxu1 }
 0x556   :  { %3520 = vmatmul.mubr.f32.gmra.mrb[178].mxu1 %v2808_v59 }
 0x557   :  { %v2771_v12 = vpop.f32.mrb[158].mxu1  ;;  %3522 = vmatprep.mubr.msk.f32.mxu1 %vm3794_vm10, %v3792_v41 }
 0x558   :  { %v2809_v13 = vmax.f32 %v2771_v12, 0.0  ;;  %v2773_v52 = vpop.f32.mrb[159].mxu1 }
 0x55a   :  { %3523 = vmatmul.mubr.f32.gmra.mrb[180].mxu1 %v2809_v13 }
 0x55b   :  { %v2776_v20 = vpop.f32.mrb[160].mxu1  ;;  %3525 = vmatprep.mubr.msk.f32.mxu1 %vm3794_vm10, %v3792_v41 }
 0x55c   :  { %v2810_v55 = vmax.f32 %v2776_v20, 0.0  ;;  %v2778_v36 = vpop.f32.mrb[161].mxu1 }
 0x55e   :  { %3526 = vmatmul.mubr.f32.gmra.mrb[182].mxu1 %v2810_v55  ;;  %v3250_v55 = vld [vmem:[%s5183_s8] ss:$0 sm:$0xff] }
 0x55f   :  { %v2781_v40 = vpop.f32.mrb[162].mxu1  ;;  %3528 = vmatprep.mubr.msk.f32.mxu1 %vm3794_vm10, %v3792_v41 }
 0x560   :  { %v2811_v33 = vmax.f32 %v2781_v40, 0.0  ;;  %v2783_v16 = vpop.f32.mrb[163].mxu1 }
 0x562   :  { %3529 = vmatmul.mubr.f32.gmra.mrb[184].mxu1 %v2811_v33 }
 0x563   :  { %v2786_v0 = vpop.f32.mrb[164].mxu1  ;;  %3531 = vmatprep.mubr.msk.f32.mxu1 %vm3794_vm10, %v3792_v41 }
 0x564   :  { %v2812_v1 = vmax.f32 %v2786_v0, 0.0  ;;  %v2788_v31 = vpop.f32.mrb[165].mxu1 }
 0x566   :  { %3532 = vmatmul.mubr.f32.gmra.mrb[186].mxu1 %v2812_v1 }
 0x567   :  { %v2791_v57 = vpop.f32.mrb[166].mxu1  ;;  %3534 = vmatprep.mubr.msk.f32.mxu1 %vm3794_vm10, %v3792_v41 }
 0x568   :  { %v2813_v26 = vmax.f32 %v2791_v57, 0.0  ;;  %v2793_v25 = vpop.f32.mrb[167].mxu1 }
 0x56a   :  { %3535 = vmatmul.mubr.f32.gmra.mrb[188].mxu1 %v2813_v26 }
 0x56b   :  { %v2796_v2 = vpop.f32.mrb[168].mxu1  ;;  %3537 = vmatprep.mubr.msk.f32.mxu1 %vm3794_vm10, %v3792_v41 }
 0x56c   :  { %v2814_v3 = vmax.f32 %v2796_v2, 0.0  ;;  %v2798_v39 = vpop.f32.mrb[169].mxu1 }
 0x56e   :  { %3538 = vmatmul.mubr.f32.gmra.mrb[190].mxu1 %v2814_v3  ;;  %v3251_v3 = vld [vmem:[%s5184_s9] ss:$0 sm:$0xff] }
 0x56f   :  { %v2801_v34 = vpop.f32.mrb[170].mxu1  ;;  %3540 = vmatprep.mubr.msk.f32.mxu1 %vm3794_vm10, %v3792_v41 }
 0x570   :  { %v2815_v6 = vmax.f32 %v2801_v34, 0.0  ;;  %v2803_v7 = vpop.f32.mrb[171].mxu1  ;;  %v3252_v34 = vld [vmem:[%s5185_s10] ss:$0 sm:$0xff] }
 0x572   :  { %3541 = vmatmul.mubr.f32.gmra.mrb[192].mxu1 %v2815_v6 }
 0x61d   :  { %v2898_v9 = vpop.f32.mrb[172].mxu1 }
 0x61e   :  { %v3512_v60 = vpop.f32.mrb[173].mxu1  ;;  %v2952_v11 = vmax.f32 %v2898_v9, 0.0 }
 0x621   :  { %v2903_v10 = vpop.f32.mrb[174].mxu1 }
 0x622   :  { %v2953_v15 = vmax.f32 %v2903_v10, 0.0  ;;  %v3515_v17 = vpop.f32.mrb[175].mxu1 }
 0x624   :  { %v2963_v41 = vadd.f32 %v2953_v15, %v2952_v11 }
 0x625   :  { %v2908_v19 = vpop.f32.mrb[176].mxu1 }
 0x626   :  { %v3518_v49 = vpop.f32.mrb[177].mxu1  ;;  %v2954_v5 = vmax.f32 %v2908_v19, 0.0 }
 0x629   :  { %v2913_v30 = vpop.f32.mrb[178].mxu1 }
 0x62a   :  { %v2955_v32 = vmax.f32 %v2913_v30, 0.0  ;;  %v3521_v35 = vpop.f32.mrb[179].mxu1 }
 0x62c   :  { %v2964_v37 = vadd.f32 %v2955_v32, %v2954_v5 }
 0x62d   :  { %v2918_v42 = vpop.f32.mrb[180].mxu1 }
 0x62e   :  { %v2968_v43 = vadd.f32 %v2964_v37, %v2963_v41  ;;  %v3524_v45 = vpop.f32.mrb[181].mxu1  ;;  %v2956_v23 = vmax.f32 %v2918_v42, 0.0 }
 0x631   :  { %v2923_v28 = vpop.f32.mrb[182].mxu1 }
 0x632   :  { %v2957_v47 = vmax.f32 %v2923_v28, 0.0  ;;  %v3527_v18 = vpop.f32.mrb[183].mxu1 }
 0x634   :  { %v2965_v48 = vadd.f32 %v2957_v47, %v2956_v23 }
 0x635   :  { %v2928_v50 = vpop.f32.mrb[184].mxu1 }
 0x636   :  { %v3530_v24 = vpop.f32.mrb[185].mxu1  ;;  %v2958_v29 = vmax.f32 %v2928_v50, 0.0 }
 0x639   :  { %v2933_v54 = vpop.f32.mrb[186].mxu1 }
 0x63a   :  { %v2959_v38 = vmax.f32 %v2933_v54, 0.0  ;;  %v3533_v22 = vpop.f32.mrb[187].mxu1 }
 0x63c   :  { %v2966_v51 = vadd.f32 %v2959_v38, %v2958_v29 }
 0x63d   :  { %v2938_v44 = vpop.f32.mrb[188].mxu1 }
 0x63e   :  { %v2969_v58 = vadd.f32 %v2966_v51, %v2965_v48  ;;  %v3536_v53 = vpop.f32.mrb[189].mxu1  ;;  %v2960_v61 = vmax.f32 %v2938_v44, 0.0 }
 0x640   :  { %v2971_v14 = vadd.f32 %v2969_v58, %v2968_v43 }
 0x641   :  { %v2943_v4 = vpop.f32.mrb[190].mxu1 }
 0x642   :  { %v2961_v27 = vmax.f32 %v2943_v4, 0.0  ;;  %v3539_v46 = vpop.f32.mrb[191].mxu1 }
 0x644   :  { %v2967_v62 = vadd.f32 %v2961_v27, %v2960_v61 }
 0x645   :  { %v2948_v59 = vpop.f32.mrb[192].mxu1 }
 0x646   :  { %v2962_v63 = vmax.f32 %v2948_v59, 0.0  ;;  %v3542_v12 = vpop.f32.mrb[193].mxu1 }
 0x648   :  { %v2970_v13 = vadd.f32 %v2967_v62, %v2962_v63 }
 0x64a   :  { %v2972_v52 = vadd.f32 %v2971_v14, %v2970_v13 }
 0x64c   :  { %v2973_v20 = vmul.f32 0.09090909, %v2972_v52 }
 0x64e   :  { %3576 = vmatmul.mubr.f32.vlgmr.msra.gmra.mrb[192].mxu0 %v2973_v20 }
 0x721   :  { %v3063_v36 = vpop.f32.mrb[192].mxu0 }
 0x722   :  { %v3064_v40 = vadd.f32 %v3250_v55, %v3063_v36  ;;  %v3577_v33 = vpop.f32.mrb[193].mxu0 }
 0x724   :  { %3067 = vadd.xlane.f32.xlu0 %v3064_v40 }
 0x7b1   :  { %v3068_v16 = vpop.xlane.xlu0 %3067 }
 0x7b2   :  { %v3070_v0 = vmul.f32 0.0078125, %v3068_v16 }
 0x7b4   :  { %v3071_v1 = vsub.f32 %v3064_v40, %v3070_v0 }
 0x7b6   :  { %v3072_v31 = vmul.f32 %v3071_v1, %v3071_v1 }
 0x7b8   :  { %3073 = vadd.xlane.f32.xlu0 %v3072_v31 }
 0x845   :  { %v3074_v57 = vpop.xlane.xlu0 %3073 }
 0x846   :  { %v3075_v26 = vmul.f32 0.0078125, %v3074_v57 }
 0x848   :  { %v3076_v25 = vadd.f32 1e-05, %v3075_v26 }
 0x84a   :  { %3766 = vrsqrt.f32 %v3076_v25 }
 0x854   :  { %v3767_v2 = vpop.eup %3766 }
 0x855   :  { %v3078_v39 = vmul.f32 %v3767_v2, %v3071_v1 }
 0x857   :  { %v3086_v6 = vmul.f32 %v3251_v3, %v3078_v39 }
 0x859   :  { %v3094_v7 = vadd.f32 %v3252_v34, %v3086_v6 }
 0x85b   :  { %3095 = vst [vmem:[#allocation2] sm:$0xff] %v3094_v7 }
 0x85c   :  { %3779 = shalt.err (!%p3776_p4)
}
 0x85d   :  { %s3780_s21 = scalar_lea.hbm %s5186_s11, 128 }
 0x85e   :  { %p3781_p5 = scmp.ne.s32.totalorder %s5186_s11, %s3780_s21  ;;  %p3784_p6 = scmp.lt.u32.totalorder %s3780_s21, %s5186_s11 }
 0x860   :  { %p3786_p7 = pnand %p3784_p6, %p3781_p5 }
 0x862   :  { %3789 = shalt.err (!%p3786_p7)
}
 0x863   :  { %3105 = dma.vmem_to_hbm [thread:$0]  %s3103_s19, 128, %s5186_s11, [#allocation3]  }
 0x864   :  { %3790 = dma.done.wait [#allocation3], 128  }
 0x865   :  { %3791 = vsyncadd [#allocation3], 4294967168 }
 0x866   :  { %3109 = vsyncpa [#allocation3], 1 }

</bundles_post_ra>
